<compile_context>
chip_gen: v7x
topology: tpu7x:2x2x1
jax: 0.10.0
libtpu: 0.0.40
codegen_flags: <defaults>
</compile_context>

<pallas_src>
import functools

import numpy as np
import jax
import jax.numpy as jnp
from jax import lax
from jax.experimental import pallas as pl
from jax.experimental.pallas import tpu as pltpu

BN_EPS = 1e-5


def _full_spec(shape):
    zeros = (0,) * len(shape)
    return pl.BlockSpec(shape, lambda i, _z=zeros: _z)


# --------------------------------------------------------------------------
# In-kernel building blocks (traced inside the single fused kernel)
# --------------------------------------------------------------------------
def _conv_bn_relu(a, wcat, gamma, beta):
    """Conv1d(k=3, pad=1) + train-mode BatchNorm1d + ReLU on an (L, Cin) tile.

    a:      (L, Cin) f32 activation (length on sublanes, channels on lanes)
    wcat:   (3*Cin, Cout) = [W[:,:,0].T ; W[:,:,1].T ; W[:,:,2].T]
            bf16 when Cin is lane-aligned (Cin % 128 == 0), else f32.
    gamma/beta: (1, Cout) f32.
    Conv bias is omitted: it is exactly cancelled by the BN mean subtraction.
    """
    L, cin = a.shape
    z = jnp.zeros((1, cin), jnp.float32)
    prev = jnp.concatenate([z, a[:-1, :]], axis=0)   # x[l-1]
    nxt = jnp.concatenate([a[1:, :], z], axis=0)     # x[l+1]

    if cin % 128 == 0:
        # Lane-aligned: one longer-K matmul instead of three skinny ones.
        xc = jnp.concatenate([prev, a, nxt], axis=1).astype(wcat.dtype)
        y = jnp.dot(xc, wcat, preferred_element_type=jnp.float32)
    else:
        # Tiny first layer (Cin=4): keep everything f32, three small dots.
        w0 = wcat[0:cin, :]
        w1 = wcat[cin:2 * cin, :]
        w2 = wcat[2 * cin:3 * cin, :]
        y = (jnp.dot(prev, w0, preferred_element_type=jnp.float32)
             + jnp.dot(a, w1, preferred_element_type=jnp.float32)
             + jnp.dot(nxt, w2, preferred_element_type=jnp.float32))

    # BatchNorm1d over the "batch" axis (= length axis here), per channel.
    mean = jnp.mean(y, axis=0, keepdims=True)
    var = jnp.mean(jnp.square(y - mean), axis=0, keepdims=True)
    scale = gamma * lax.rsqrt(var + BN_EPS)
    y = (y - mean) * scale + beta
    return jnp.maximum(y, 0.0)


def _lstm_gates(g, c, H):
    # PyTorch gate order: i, f, g, o
    i = jax.nn.sigmoid(g[:, 0 * H:1 * H])
    f = jax.nn.sigmoid(g[:, 1 * H:2 * H])
    gg = jnp.tanh(g[:, 2 * H:3 * H])
    o = jax.nn.sigmoid(g[:, 3 * H:4 * H])
    c = f * c + i * gg
    h = o * jnp.tanh(c)
    return h, c


def _net_kernel(x0_ref,
                w1_ref, g1_ref, be1_ref,
                w2_ref, g2_ref, be2_ref,
                w3_ref, g3_ref, be3_ref,
                w4_ref, g4_ref, be4_ref,
                wih0_ref, whh0_ref, b0_ref,
                wih1_ref, whh1_ref, b1_ref,
                wfc_ref, bfc_ref,
                o_ref, *, B, S):
    bf16 = jnp.bfloat16

    # ---- fused conv / BN / ReLU stack (activations stay in VMEM/vregs) ----
    a = x0_ref[...]                                            # (L, Cin0) f32
    a = _conv_bn_relu(a, w1_ref[...], g1_ref[...], be1_ref[...])
    a = _conv_bn_relu(a, w2_ref[...], g2_ref[...], be2_ref[...])
    a = _conv_bn_relu(a, w3_ref[...], g3_ref[...], be3_ref[...])
    a = _conv_bn_relu(a, w4_ref[...], g4_ref[...], be4_ref[...])
    # a: (L, C) f32 with row l = b*S + s  (torch x.view(B, S, -1) layout)

    H = whh0_ref.shape[0]
    wih0, whh0, b0 = wih0_ref[...], whh0_ref[...], b0_ref[...]
    wih1, whh1, b1 = wih1_ref[...], whh1_ref[...], b1_ref[...]
    wfc, bfc = wfc_ref[...], bfc_ref[...]

    # ---- LSTM layer 0: hoisted input projection + unrolled recurrence ----
    gi0 = jnp.dot(a.astype(bf16), wih0,
                  preferred_element_type=jnp.float32) + b0     # (B*S, 4H)
    h1 = jnp.zeros((B, H), jnp.float32)
    c1 = jnp.zeros((B, H), jnp.float32)
    h1_steps = []
    for t in range(S):                                         # static unroll
        gin = jnp.concatenate(
            [gi0[b * S + t:b * S + t + 1, :] for b in range(B)], axis=0)
        g = gin + jnp.dot(h1.astype(bf16), whh0,
                          preferred_element_type=jnp.float32)
        h1, c1 = _lstm_gates(g, c1, H)
        h1_steps.append(h1)
    h1_all = jnp.concatenate(h1_steps, axis=0)                 # (S*B, H), row t*B+b

    # ---- LSTM layer 1 ----
    gi1 = jnp.dot(h1_all.astype(bf16), wih1,
                  preferred_element_type=jnp.float32) + b1     # (S*B, 4H)
    h2 = jnp.zeros((B, H), jnp.float32)
    c2 = jnp.zeros((B, H), jnp.float32)
    h2_steps = []
    for t in range(S):                                         # static unroll
        g = gi1[t * B:(t + 1) * B, :] + jnp.dot(
            h2.astype(bf16), whh1, preferred_element_type=jnp.float32)
        h2, c2 = _lstm_gates(g, c2, H)
        h2_steps.append(h2)
    h2_all = jnp.concatenate(h2_steps, axis=0)                 # (S*B, H), row t*B+b

    # ---- final Linear: one batched matmul, single dense 2-D store ----
    o_ref[...] = jnp.dot(h2_all.astype(bf16), wfc,
                         preferred_element_type=jnp.float32) + bfc


# --------------------------------------------------------------------------
# Wrapper: parameter layout prep + single pallas_call
# --------------------------------------------------------------------------
def convlstm_forward(x, params):
    B, S, D = x.shape
    L = B * S
    # torch: x.view(dim_in, B*S) -> conv runs on the unbatched (C_in, L) view;
    # we work on the transposed (L, C_in) layout (channels on lanes).
    x_lc = x.reshape(D, L).T.astype(jnp.float32)

    conv_args = []
    for (W, _b, g, be) in params["conv"]:
        cout, cin, _ = W.shape
        wcat = jnp.concatenate([W[:, :, 0].T, W[:, :, 1].T, W[:, :, 2].T],
                               axis=0)                     # (3*Cin, Cout)
        if cin % 128 == 0:
            wcat = wcat.astype(jnp.bfloat16)               # halves weight DMA
        conv_args += [wcat, g.reshape(1, cout), be.reshape(1, cout)]

    (wih0, whh0, bih0, bhh0), (wih1, whh1, bih1, bhh1) = params["lstm"]
    wfc, bfc = params["fc"]
    dout = wfc.shape[0]
    lstm_args = [
        wih0.T.astype(jnp.bfloat16), whh0.T.astype(jnp.bfloat16),
        (bih0 + bhh0).reshape(1, -1),
        wih1.T.astype(jnp.bfloat16), whh1.T.astype(jnp.bfloat16),
        (bih1 + bhh1).reshape(1, -1),
        wfc.T.astype(jnp.bfloat16), bfc.reshape(1, -1),
    ]

    args = [x_lc] + conv_args + lstm_args
    kernel = functools.partial(_net_kernel, B=B, S=S)
    out2d = pl.pallas_call(
        kernel,
        out_shape=jax.ShapeDtypeStruct((L, dout), jnp.float32),
        grid=(1,),
        in_specs=[_full_spec(a.shape) for a in args],
        out_specs=_full_spec((L, dout)),
        compiler_params=pltpu.CompilerParams(
            dimension_semantics=("arbitrary",)),
    )(*args)
    # Kernel output rows are time-major (row = t*B + b); back to batch_first.
    return jnp.transpose(out2d.reshape(S, B, dout), (1, 0, 2))


# --------------------------------------------------------------------------
# Deterministic parameter init + pure-JAX reference for validation
# --------------------------------------------------------------------------
def init_params(key, dim_in, dim_out, layer_dims, H):
    keys = iter(jax.random.split(key, 32))
    conv = []
    c_in = dim_in
    for c_out in layer_dims:
        W = 0.1 * jax.random.normal(next(keys), (c_out, c_in, 3), jnp.float32)
        b = 0.1 * jax.random.normal(next(keys), (c_out,), jnp.float32)
        g = 1.0 + 0.05 * jax.random.normal(next(keys), (c_out,), jnp.float32)
        be = 0.05 * jax.random.normal(next(keys), (c_out,), jnp.float32)
        conv.append((W, b, g, be))
        c_in = c_out
    lstm = []
    in_dim = layer_dims[-1]
    for _ in range(2):
        wih = 0.1 * jax.random.normal(next(keys), (4 * H, in_dim), jnp.float32)
        whh = 0.1 * jax.random.normal(next(keys), (4 * H, H), jnp.float32)
        bih = 0.1 * jax.random.normal(next(keys), (4 * H,), jnp.float32)
        bhh = 0.1 * jax.random.normal(next(keys), (4 * H,), jnp.float32)
        lstm.append((wih, whh, bih, bhh))
        in_dim = H
    wfc = 0.1 * jax.random.normal(next(keys), (dim_out, H), jnp.float32)
    bfc = 0.1 * jax.random.normal(next(keys), (dim_out,), jnp.float32)
    return {"conv": conv, "lstm": lstm, "fc": (wfc, bfc)}


def reference_forward(x, params):
    # Full-precision pure-JAX reference (includes the conv bias, which the
    # kernel drops since train-mode BN cancels it exactly).
    with jax.default_matmul_precision("highest"):
        B, S, D = x.shape
        L = B * S
        h = x.reshape(D, L).astype(jnp.float32)            # (Cin, L) torch layout
        for (W, b, g, be) in params["conv"]:
            hp = jnp.pad(h, ((0, 0), (1, 1)))
            y = b[:, None] + sum(jnp.dot(W[:, :, k], hp[:, k:k + L])
                                 for k in range(3))
            mean = y.mean(axis=1, keepdims=True)
            var = jnp.square(y - mean).mean(axis=1, keepdims=True)
            y = (y - mean) / jnp.sqrt(var + BN_EPS) * g[:, None] + be[:, None]
            h = jnp.maximum(y, 0.0)
        xs = jnp.transpose(h.T.reshape(B, S, -1), (1, 0, 2))   # (S, B, feat)
        H = params["lstm"][0][1].shape[1]
        for (wih, whh, bih, bhh) in params["lstm"]:
            def step(carry, xt, wih=wih, whh=whh, bih=bih, bhh=bhh):
                hh, cc = carry
                gg = xt @ wih.T + bih + hh @ whh.T + bhh
                i, f, g_, o = jnp.split(gg, 4, axis=-1)
                i, f, o = jax.nn.sigmoid(i), jax.nn.sigmoid(f), jax.nn.sigmoid(o)
                g_ = jnp.tanh(g_)
                cc = f * cc + i * g_
                hh = o * jnp.tanh(cc)
                return (hh, cc), hh
            z = jnp.zeros((B, H), jnp.float32)
            _, xs = lax.scan(step, (z, z), xs)
        wfc, bfc = params["fc"]
        y = xs @ wfc.T + bfc
        return jnp.transpose(y, (1, 0, 2))


if __name__ == "__main__":
    B, S, dim_in, dim_out, H = 2, 8, 4, 8, 32
    layer_dims = [512, 256, 128, 64]

    key = jax.random.PRNGKey(0)
    kx, kp = jax.random.split(key)
    x = jax.random.normal(kx, (B, S, dim_in), jnp.float32)
    params = init_params(kp, dim_in, dim_out, layer_dims, H)

    y = jax.jit(convlstm_forward)(x, params)
    y = jax.block_until_ready(y)
    assert y.shape == (B, S, dim_out)

    y_ref = reference_forward(x, params)
    # Tolerance accounts for single-pass bf16 MXU inputs (per perf review).
    if not np.allclose(np.asarray(y), np.asarray(y_ref), atol=2e-2, rtol=2e-2):
        raise AssertionError("Pallas kernel output mismatch vs JAX reference")

    # TODO(synk): BatchNorm running-statistics updates (train-mode side state)
    # are not modeled; only the forward output is reproduced.
    print("KERNEL_OK")
</pallas_src>

<mosaic_0001>
module attributes {stable_mosaic.version = 11 : i64} {
  func.func @_net_kernel(%arg0: i32, %arg1: memref<16x4xf32, #tpu.memory_space<vmem>>, %arg2: memref<12x512xf32, #tpu.memory_space<vmem>>, %arg3: memref<1x512xf32, #tpu.memory_space<vmem>>, %arg4: memref<1x512xf32, #tpu.memory_space<vmem>>, %arg5: memref<1536x256xbf16, #tpu.memory_space<vmem>>, %arg6: memref<1x256xf32, #tpu.memory_space<vmem>>, %arg7: memref<1x256xf32, #tpu.memory_space<vmem>>, %arg8: memref<768x128xbf16, #tpu.memory_space<vmem>>, %arg9: memref<1x128xf32, #tpu.memory_space<vmem>>, %arg10: memref<1x128xf32, #tpu.memory_space<vmem>>, %arg11: memref<384x64xbf16, #tpu.memory_space<vmem>>, %arg12: memref<1x64xf32, #tpu.memory_space<vmem>>, %arg13: memref<1x64xf32, #tpu.memory_space<vmem>>, %arg14: memref<64x128xbf16, #tpu.memory_space<vmem>>, %arg15: memref<32x128xbf16, #tpu.memory_space<vmem>>, %arg16: memref<1x128xf32, #tpu.memory_space<vmem>>, %arg17: memref<32x128xbf16, #tpu.memory_space<vmem>>, %arg18: memref<32x128xbf16, #tpu.memory_space<vmem>>, %arg19: memref<1x128xf32, #tpu.memory_space<vmem>>, %arg20: memref<32x8xbf16, #tpu.memory_space<vmem>>, %arg21: memref<1x8xf32, #tpu.memory_space<vmem>>, %arg22: memref<16x8xf32, #tpu.memory_space<vmem>>) attributes {dimension_semantics = [#tpu.dimension_semantics<arbitrary>], iteration_bounds = array<i64: 1>, scalar_prefetch = 0 : i64, scratch_operands = 0 : i64, tpu.core_type = #tpu.core_type<tc>, window_params = [{pipeline_mode = #tpu.pipeline_mode<synchronous>, transform_indices = @transform_0, window_bounds = array<i64: 16, 4>}, {pipeline_mode = #tpu.pipeline_mode<synchronous>, transform_indices = @transform_1, window_bounds = array<i64: 12, 512>}, {pipeline_mode = #tpu.pipeline_mode<synchronous>, transform_indices = @transform_2, window_bounds = array<i64: 1, 512>}, {pipeline_mode = #tpu.pipeline_mode<synchronous>, transform_indices = @transform_3, window_bounds = array<i64: 1, 512>}, {pipeline_mode = #tpu.pipeline_mode<synchronous>, transform_indices = @transform_4, window_bounds = array<i64: 1536, 256>}, {pipeline_mode = #tpu.pipeline_mode<synchronous>, transform_indices = @transform_5, window_bounds = array<i64: 1, 256>}, {pipeline_mode = #tpu.pipeline_mode<synchronous>, transform_indices = @transform_6, window_bounds = array<i64: 1, 256>}, {pipeline_mode = #tpu.pipeline_mode<synchronous>, transform_indices = @transform_7, window_bounds = array<i64: 768, 128>}, {pipeline_mode = #tpu.pipeline_mode<synchronous>, transform_indices = @transform_8, window_bounds = array<i64: 1, 128>}, {pipeline_mode = #tpu.pipeline_mode<synchronous>, transform_indices = @transform_9, window_bounds = array<i64: 1, 128>}, {pipeline_mode = #tpu.pipeline_mode<synchronous>, transform_indices = @transform_10, window_bounds = array<i64: 384, 64>}, {pipeline_mode = #tpu.pipeline_mode<synchronous>, transform_indices = @transform_11, window_bounds = array<i64: 1, 64>}, {pipeline_mode = #tpu.pipeline_mode<synchronous>, transform_indices = @transform_12, window_bounds = array<i64: 1, 64>}, {pipeline_mode = #tpu.pipeline_mode<synchronous>, transform_indices = @transform_13, window_bounds = array<i64: 64, 128>}, {pipeline_mode = #tpu.pipeline_mode<synchronous>, transform_indices = @transform_14, window_bounds = array<i64: 32, 128>}, {pipeline_mode = #tpu.pipeline_mode<synchronous>, transform_indices = @transform_15, window_bounds = array<i64: 1, 128>}, {pipeline_mode = #tpu.pipeline_mode<synchronous>, transform_indices = @transform_16, window_bounds = array<i64: 32, 128>}, {pipeline_mode = #tpu.pipeline_mode<synchronous>, transform_indices = @transform_17, window_bounds = array<i64: 32, 128>}, {pipeline_mode = #tpu.pipeline_mode<synchronous>, transform_indices = @transform_18, window_bounds = array<i64: 1, 128>}, {pipeline_mode = #tpu.pipeline_mode<synchronous>, transform_indices = @transform_19, window_bounds = array<i64: 32, 8>}, {pipeline_mode = #tpu.pipeline_mode<synchronous>, transform_indices = @transform_20, window_bounds = array<i64: 1, 8>}, {pipeline_mode = #tpu.pipeline_mode<synchronous>, transform_indices = @transform_21, window_bounds = array<i64: 16, 8>}]} {
    %c0 = arith.constant 0 : index
    %c0_0 = arith.constant 0 : index
    %0 = vector.load %arg1[%c0, %c0_0] : memref<16x4xf32, #tpu.memory_space<vmem>>, vector<16x4xf32>
    %c0_1 = arith.constant 0 : index
    %c0_2 = arith.constant 0 : index
    %1 = vector.load %arg2[%c0_1, %c0_2] : memref<12x512xf32, #tpu.memory_space<vmem>>, vector<12x512xf32>
    %c0_3 = arith.constant 0 : index
    %c0_4 = arith.constant 0 : index
    %2 = vector.load %arg3[%c0_3, %c0_4] : memref<1x512xf32, #tpu.memory_space<vmem>>, vector<1x512xf32>
    %c0_5 = arith.constant 0 : index
    %c0_6 = arith.constant 0 : index
    %3 = vector.load %arg4[%c0_5, %c0_6] : memref<1x512xf32, #tpu.memory_space<vmem>>, vector<1x512xf32>
    %cst = arith.constant 0.000000e+00 : f32
    %4 = vector.broadcast %cst : f32 to vector<1x4xf32>
    %5 = vector.extract_strided_slice %0 {offsets = [0, 0], sizes = [15, 4], strides = [1, 1]} : vector<16x4xf32> to vector<15x4xf32>
    %6 = tpu.concatenate %4, %5 in 0 : vector<1x4xf32>, vector<15x4xf32> -> vector<16x4xf32>
    %7 = vector.extract_strided_slice %0 {offsets = [1, 0], sizes = [15, 4], strides = [1, 1]} : vector<16x4xf32> to vector<15x4xf32>
    %8 = tpu.concatenate %7, %4 in 0 : vector<15x4xf32>, vector<1x4xf32> -> vector<16x4xf32>
    %9 = vector.extract_strided_slice %1 {offsets = [0, 0], sizes = [4, 512], strides = [1, 1]} : vector<12x512xf32> to vector<4x512xf32>
    %10 = vector.extract_strided_slice %1 {offsets = [4, 0], sizes = [4, 512], strides = [1, 1]} : vector<12x512xf32> to vector<4x512xf32>
    %11 = vector.extract_strided_slice %1 {offsets = [8, 0], sizes = [4, 512], strides = [1, 1]} : vector<12x512xf32> to vector<4x512xf32>
    %cst_7 = arith.constant dense<0.000000e+00> : vector<16x512xf32>
    %12 = tpu.matmul %6, %9, %cst_7 {dimension_numbers = #tpu.dot_dimension_numbers<[1], [0], [0], [1], [0, 0, 1, 1], [], []>} : vector<16x4xf32>, vector<4x512xf32>, vector<16x512xf32> -> vector<16x512xf32>
    %cst_8 = arith.constant dense<0.000000e+00> : vector<16x512xf32>
    %13 = tpu.matmul %0, %10, %cst_8 {dimension_numbers = #tpu.dot_dimension_numbers<[1], [0], [0], [1], [0, 0, 1, 1], [], []>} : vector<16x4xf32>, vector<4x512xf32>, vector<16x512xf32> -> vector<16x512xf32>
    %14 = arith.addf %12, %13 : vector<16x512xf32>
    %cst_9 = arith.constant dense<0.000000e+00> : vector<16x512xf32>
    %15 = tpu.matmul %8, %11, %cst_9 {dimension_numbers = #tpu.dot_dimension_numbers<[1], [0], [0], [1], [0, 0, 1, 1], [], []>} : vector<16x4xf32>, vector<4x512xf32>, vector<16x512xf32> -> vector<16x512xf32>
    %16 = arith.addf %14, %15 : vector<16x512xf32>
    %cst_10 = arith.constant dense<0.000000e+00> : vector<512xf32>
    %17 = vector.multi_reduction <add>, %16, %cst_10 [0] : vector<16x512xf32> to vector<512xf32>
    %18 = vector.shape_cast %17 : vector<512xf32> to vector<1x512xf32>
    %cst_11 = arith.constant 1.600000e+01 : f32
    %19 = vector.broadcast %cst_11 : f32 to vector<1x512xf32>
    %20 = arith.divf %18, %19 : vector<1x512xf32>
    %21 = vector.broadcast %20 : vector<1x512xf32> to vector<16x512xf32>
    %22 = arith.subf %16, %21 : vector<16x512xf32>
    %23 = arith.mulf %22, %22 : vector<16x512xf32>
    %cst_12 = arith.constant dense<0.000000e+00> : vector<512xf32>
    %24 = vector.multi_reduction <add>, %23, %cst_12 [0] : vector<16x512xf32> to vector<512xf32>
    %25 = vector.shape_cast %24 : vector<512xf32> to vector<1x512xf32>
    %cst_13 = arith.constant 1.600000e+01 : f32
    %26 = vector.broadcast %cst_13 : f32 to vector<1x512xf32>
    %27 = arith.divf %25, %26 : vector<1x512xf32>
    %cst_14 = arith.constant 9.99999974E-6 : f32
    %28 = vector.broadcast %cst_14 : f32 to vector<1x512xf32>
    %29 = arith.addf %27, %28 : vector<1x512xf32>
    %30 = math.rsqrt %29 : vector<1x512xf32>
    %31 = arith.mulf %2, %30 : vector<1x512xf32>
    %32 = vector.broadcast %20 : vector<1x512xf32> to vector<16x512xf32>
    %33 = arith.subf %16, %32 : vector<16x512xf32>
    %34 = vector.broadcast %31 : vector<1x512xf32> to vector<16x512xf32>
    %35 = arith.mulf %33, %34 : vector<16x512xf32>
    %36 = vector.broadcast %3 : vector<1x512xf32> to vector<16x512xf32>
    %37 = arith.addf %35, %36 : vector<16x512xf32>
    %cst_15 = arith.constant 0.000000e+00 : f32
    %38 = vector.broadcast %cst_15 : f32 to vector<16x512xf32>
    %39 = arith.maximumf %37, %38 : vector<16x512xf32>
    %c0_16 = arith.constant 0 : index
    %c0_17 = arith.constant 0 : index
    %40 = vector.load %arg5[%c0_16, %c0_17] : memref<1536x256xbf16, #tpu.memory_space<vmem>>, vector<1536x256xbf16>
    %c0_18 = arith.constant 0 : index
    %c0_19 = arith.constant 0 : index
    %41 = vector.load %arg6[%c0_18, %c0_19] : memref<1x256xf32, #tpu.memory_space<vmem>>, vector<1x256xf32>
    %c0_20 = arith.constant 0 : index
    %c0_21 = arith.constant 0 : index
    %42 = vector.load %arg7[%c0_20, %c0_21] : memref<1x256xf32, #tpu.memory_space<vmem>>, vector<1x256xf32>
    %cst_22 = arith.constant 0.000000e+00 : f32
    %43 = vector.broadcast %cst_22 : f32 to vector<1x512xf32>
    %44 = vector.extract_strided_slice %39 {offsets = [0, 0], sizes = [15, 512], strides = [1, 1]} : vector<16x512xf32> to vector<15x512xf32>
    %45 = tpu.concatenate %43, %44 in 0 : vector<1x512xf32>, vector<15x512xf32> -> vector<16x512xf32>
    %46 = vector.extract_strided_slice %39 {offsets = [1, 0], sizes = [15, 512], strides = [1, 1]} : vector<16x512xf32> to vector<15x512xf32>
    %47 = tpu.concatenate %46, %43 in 0 : vector<15x512xf32>, vector<1x512xf32> -> vector<16x512xf32>
    %48 = tpu.concatenate %45, %39, %47 in 1 : vector<16x512xf32>, vector<16x512xf32>, vector<16x512xf32> -> vector<16x1536xf32>
    %49 = arith.truncf %48 : vector<16x1536xf32> to vector<16x1536xbf16>
    %cst_23 = arith.constant dense<0.000000e+00> : vector<16x256xf32>
    %50 = tpu.matmul %49, %40, %cst_23 {dimension_numbers = #tpu.dot_dimension_numbers<[1], [0], [0], [1], [0, 0, 1, 1], [], []>} : vector<16x1536xbf16>, vector<1536x256xbf16>, vector<16x256xf32> -> vector<16x256xf32>
    %cst_24 = arith.constant dense<0.000000e+00> : vector<256xf32>
    %51 = vector.multi_reduction <add>, %50, %cst_24 [0] : vector<16x256xf32> to vector<256xf32>
    %52 = vector.shape_cast %51 : vector<256xf32> to vector<1x256xf32>
    %cst_25 = arith.constant 1.600000e+01 : f32
    %53 = vector.broadcast %cst_25 : f32 to vector<1x256xf32>
    %54 = arith.divf %52, %53 : vector<1x256xf32>
    %55 = vector.broadcast %54 : vector<1x256xf32> to vector<16x256xf32>
    %56 = arith.subf %50, %55 : vector<16x256xf32>
    %57 = arith.mulf %56, %56 : vector<16x256xf32>
    %cst_26 = arith.constant dense<0.000000e+00> : vector<256xf32>
    %58 = vector.multi_reduction <add>, %57, %cst_26 [0] : vector<16x256xf32> to vector<256xf32>
    %59 = vector.shape_cast %58 : vector<256xf32> to vector<1x256xf32>
    %cst_27 = arith.constant 1.600000e+01 : f32
    %60 = vector.broadcast %cst_27 : f32 to vector<1x256xf32>
    %61 = arith.divf %59, %60 : vector<1x256xf32>
    %cst_28 = arith.constant 9.99999974E-6 : f32
    %62 = vector.broadcast %cst_28 : f32 to vector<1x256xf32>
    %63 = arith.addf %61, %62 : vector<1x256xf32>
    %64 = math.rsqrt %63 : vector<1x256xf32>
    %65 = arith.mulf %41, %64 : vector<1x256xf32>
    %66 = vector.broadcast %54 : vector<1x256xf32> to vector<16x256xf32>
    %67 = arith.subf %50, %66 : vector<16x256xf32>
    %68 = vector.broadcast %65 : vector<1x256xf32> to vector<16x256xf32>
    %69 = arith.mulf %67, %68 : vector<16x256xf32>
    %70 = vector.broadcast %42 : vector<1x256xf32> to vector<16x256xf32>
    %71 = arith.addf %69, %70 : vector<16x256xf32>
    %cst_29 = arith.constant 0.000000e+00 : f32
    %72 = vector.broadcast %cst_29 : f32 to vector<16x256xf32>
    %73 = arith.maximumf %71, %72 : vector<16x256xf32>
    %c0_30 = arith.constant 0 : index
    %c0_31 = arith.constant 0 : index
    %74 = vector.load %arg8[%c0_30, %c0_31] : memref<768x128xbf16, #tpu.memory_space<vmem>>, vector<768x128xbf16>
    %c0_32 = arith.constant 0 : index
    %c0_33 = arith.constant 0 : index
    %75 = vector.load %arg9[%c0_32, %c0_33] : memref<1x128xf32, #tpu.memory_space<vmem>>, vector<1x128xf32>
    %c0_34 = arith.constant 0 : index
    %c0_35 = arith.constant 0 : index
    %76 = vector.load %arg10[%c0_34, %c0_35] : memref<1x128xf32, #tpu.memory_space<vmem>>, vector<1x128xf32>
    %cst_36 = arith.constant 0.000000e+00 : f32
    %77 = vector.broadcast %cst_36 : f32 to vector<1x256xf32>
    %78 = vector.extract_strided_slice %73 {offsets = [0, 0], sizes = [15, 256], strides = [1, 1]} : vector<16x256xf32> to vector<15x256xf32>
    %79 = tpu.concatenate %77, %78 in 0 : vector<1x256xf32>, vector<15x256xf32> -> vector<16x256xf32>
    %80 = vector.extract_strided_slice %73 {offsets = [1, 0], sizes = [15, 256], strides = [1, 1]} : vector<16x256xf32> to vector<15x256xf32>
    %81 = tpu.concatenate %80, %77 in 0 : vector<15x256xf32>, vector<1x256xf32> -> vector<16x256xf32>
    %82 = tpu.concatenate %79, %73, %81 in 1 : vector<16x256xf32>, vector<16x256xf32>, vector<16x256xf32> -> vector<16x768xf32>
    %83 = arith.truncf %82 : vector<16x768xf32> to vector<16x768xbf16>
    %cst_37 = arith.constant dense<0.000000e+00> : vector<16x128xf32>
    %84 = tpu.matmul %83, %74, %cst_37 {dimension_numbers = #tpu.dot_dimension_numbers<[1], [0], [0], [1], [0, 0, 1, 1], [], []>} : vector<16x768xbf16>, vector<768x128xbf16>, vector<16x128xf32> -> vector<16x128xf32>
    %cst_38 = arith.constant dense<0.000000e+00> : vector<128xf32>
    %85 = vector.multi_reduction <add>, %84, %cst_38 [0] : vector<16x128xf32> to vector<128xf32>
    %86 = vector.shape_cast %85 : vector<128xf32> to vector<1x128xf32>
    %cst_39 = arith.constant 1.600000e+01 : f32
    %87 = vector.broadcast %cst_39 : f32 to vector<1x128xf32>
    %88 = arith.divf %86, %87 : vector<1x128xf32>
    %89 = vector.broadcast %88 : vector<1x128xf32> to vector<16x128xf32>
    %90 = arith.subf %84, %89 : vector<16x128xf32>
    %91 = arith.mulf %90, %90 : vector<16x128xf32>
    %cst_40 = arith.constant dense<0.000000e+00> : vector<128xf32>
    %92 = vector.multi_reduction <add>, %91, %cst_40 [0] : vector<16x128xf32> to vector<128xf32>
    %93 = vector.shape_cast %92 : vector<128xf32> to vector<1x128xf32>
    %cst_41 = arith.constant 1.600000e+01 : f32
    %94 = vector.broadcast %cst_41 : f32 to vector<1x128xf32>
    %95 = arith.divf %93, %94 : vector<1x128xf32>
    %cst_42 = arith.constant 9.99999974E-6 : f32
    %96 = vector.broadcast %cst_42 : f32 to vector<1x128xf32>
    %97 = arith.addf %95, %96 : vector<1x128xf32>
    %98 = math.rsqrt %97 : vector<1x128xf32>
    %99 = arith.mulf %75, %98 : vector<1x128xf32>
    %100 = vector.broadcast %88 : vector<1x128xf32> to vector<16x128xf32>
    %101 = arith.subf %84, %100 : vector<16x128xf32>
    %102 = vector.broadcast %99 : vector<1x128xf32> to vector<16x128xf32>
    %103 = arith.mulf %101, %102 : vector<16x128xf32>
    %104 = vector.broadcast %76 : vector<1x128xf32> to vector<16x128xf32>
    %105 = arith.addf %103, %104 : vector<16x128xf32>
    %cst_43 = arith.constant 0.000000e+00 : f32
    %106 = vector.broadcast %cst_43 : f32 to vector<16x128xf32>
    %107 = arith.maximumf %105, %106 : vector<16x128xf32>
    %c0_44 = arith.constant 0 : index
    %c0_45 = arith.constant 0 : index
    %108 = vector.load %arg11[%c0_44, %c0_45] : memref<384x64xbf16, #tpu.memory_space<vmem>>, vector<384x64xbf16>
    %c0_46 = arith.constant 0 : index
    %c0_47 = arith.constant 0 : index
    %109 = vector.load %arg12[%c0_46, %c0_47] : memref<1x64xf32, #tpu.memory_space<vmem>>, vector<1x64xf32>
    %c0_48 = arith.constant 0 : index
    %c0_49 = arith.constant 0 : index
    %110 = vector.load %arg13[%c0_48, %c0_49] : memref<1x64xf32, #tpu.memory_space<vmem>>, vector<1x64xf32>
    %cst_50 = arith.constant 0.000000e+00 : f32
    %111 = vector.broadcast %cst_50 : f32 to vector<1x128xf32>
    %112 = vector.extract_strided_slice %107 {offsets = [0, 0], sizes = [15, 128], strides = [1, 1]} : vector<16x128xf32> to vector<15x128xf32>
    %113 = tpu.concatenate %111, %112 in 0 : vector<1x128xf32>, vector<15x128xf32> -> vector<16x128xf32>
    %114 = vector.extract_strided_slice %107 {offsets = [1, 0], sizes = [15, 128], strides = [1, 1]} : vector<16x128xf32> to vector<15x128xf32>
    %115 = tpu.concatenate %114, %111 in 0 : vector<15x128xf32>, vector<1x128xf32> -> vector<16x128xf32>
    %116 = tpu.concatenate %113, %107, %115 in 1 : vector<16x128xf32>, vector<16x128xf32>, vector<16x128xf32> -> vector<16x384xf32>
    %117 = arith.truncf %116 : vector<16x384xf32> to vector<16x384xbf16>
    %cst_51 = arith.constant dense<0.000000e+00> : vector<16x64xf32>
    %118 = tpu.matmul %117, %108, %cst_51 {dimension_numbers = #tpu.dot_dimension_numbers<[1], [0], [0], [1], [0, 0, 1, 1], [], []>} : vector<16x384xbf16>, vector<384x64xbf16>, vector<16x64xf32> -> vector<16x64xf32>
    %cst_52 = arith.constant dense<0.000000e+00> : vector<64xf32>
    %119 = vector.multi_reduction <add>, %118, %cst_52 [0] : vector<16x64xf32> to vector<64xf32>
    %120 = vector.shape_cast %119 : vector<64xf32> to vector<1x64xf32>
    %cst_53 = arith.constant 1.600000e+01 : f32
    %121 = vector.broadcast %cst_53 : f32 to vector<1x64xf32>
    %122 = arith.divf %120, %121 : vector<1x64xf32>
    %123 = vector.broadcast %122 : vector<1x64xf32> to vector<16x64xf32>
    %124 = arith.subf %118, %123 : vector<16x64xf32>
    %125 = arith.mulf %124, %124 : vector<16x64xf32>
    %cst_54 = arith.constant dense<0.000000e+00> : vector<64xf32>
    %126 = vector.multi_reduction <add>, %125, %cst_54 [0] : vector<16x64xf32> to vector<64xf32>
    %127 = vector.shape_cast %126 : vector<64xf32> to vector<1x64xf32>
    %cst_55 = arith.constant 1.600000e+01 : f32
    %128 = vector.broadcast %cst_55 : f32 to vector<1x64xf32>
    %129 = arith.divf %127, %128 : vector<1x64xf32>
    %cst_56 = arith.constant 9.99999974E-6 : f32
    %130 = vector.broadcast %cst_56 : f32 to vector<1x64xf32>
    %131 = arith.addf %129, %130 : vector<1x64xf32>
    %132 = math.rsqrt %131 : vector<1x64xf32>
    %133 = arith.mulf %109, %132 : vector<1x64xf32>
    %134 = vector.broadcast %122 : vector<1x64xf32> to vector<16x64xf32>
    %135 = arith.subf %118, %134 : vector<16x64xf32>
    %136 = vector.broadcast %133 : vector<1x64xf32> to vector<16x64xf32>
    %137 = arith.mulf %135, %136 : vector<16x64xf32>
    %138 = vector.broadcast %110 : vector<1x64xf32> to vector<16x64xf32>
    %139 = arith.addf %137, %138 : vector<16x64xf32>
    %cst_57 = arith.constant 0.000000e+00 : f32
    %140 = vector.broadcast %cst_57 : f32 to vector<16x64xf32>
    %141 = arith.maximumf %139, %140 : vector<16x64xf32>
    %c0_58 = arith.constant 0 : index
    %c0_59 = arith.constant 0 : index
    %142 = vector.load %arg14[%c0_58, %c0_59] : memref<64x128xbf16, #tpu.memory_space<vmem>>, vector<64x128xbf16>
    %c0_60 = arith.constant 0 : index
    %c0_61 = arith.constant 0 : index
    %143 = vector.load %arg15[%c0_60, %c0_61] : memref<32x128xbf16, #tpu.memory_space<vmem>>, vector<32x128xbf16>
    %c0_62 = arith.constant 0 : index
    %c0_63 = arith.constant 0 : index
    %144 = vector.load %arg16[%c0_62, %c0_63] : memref<1x128xf32, #tpu.memory_space<vmem>>, vector<1x128xf32>
    %c0_64 = arith.constant 0 : index
    %c0_65 = arith.constant 0 : index
    %145 = vector.load %arg17[%c0_64, %c0_65] : memref<32x128xbf16, #tpu.memory_space<vmem>>, vector<32x128xbf16>
    %c0_66 = arith.constant 0 : index
    %c0_67 = arith.constant 0 : index
    %146 = vector.load %arg18[%c0_66, %c0_67] : memref<32x128xbf16, #tpu.memory_space<vmem>>, vector<32x128xbf16>
    %c0_68 = arith.constant 0 : index
    %c0_69 = arith.constant 0 : index
    %147 = vector.load %arg19[%c0_68, %c0_69] : memref<1x128xf32, #tpu.memory_space<vmem>>, vector<1x128xf32>
    %c0_70 = arith.constant 0 : index
    %c0_71 = arith.constant 0 : index
    %148 = vector.load %arg20[%c0_70, %c0_71] : memref<32x8xbf16, #tpu.memory_space<vmem>>, vector<32x8xbf16>
    %c0_72 = arith.constant 0 : index
    %c0_73 = arith.constant 0 : index
    %149 = vector.load %arg21[%c0_72, %c0_73] : memref<1x8xf32, #tpu.memory_space<vmem>>, vector<1x8xf32>
    %150 = arith.truncf %141 : vector<16x64xf32> to vector<16x64xbf16>
    %cst_74 = arith.constant dense<0.000000e+00> : vector<16x128xf32>
    %151 = tpu.matmul %150, %142, %cst_74 {dimension_numbers = #tpu.dot_dimension_numbers<[1], [0], [0], [1], [0, 0, 1, 1], [], []>} : vector<16x64xbf16>, vector<64x128xbf16>, vector<16x128xf32> -> vector<16x128xf32>
    %152 = vector.broadcast %144 : vector<1x128xf32> to vector<16x128xf32>
    %153 = arith.addf %151, %152 : vector<16x128xf32>
    %cst_75 = arith.constant 0.000000e+00 : f32
    %154 = vector.broadcast %cst_75 : f32 to vector<2x32xf32>
    %cst_76 = arith.constant 0.000000e+00 : f32
    %155 = vector.broadcast %cst_76 : f32 to vector<2x32xf32>
    %156 = vector.extract_strided_slice %153 {offsets = [0, 0], sizes = [1, 128], strides = [1, 1]} : vector<16x128xf32> to vector<1x128xf32>
    %157 = vector.extract_strided_slice %153 {offsets = [8, 0], sizes = [1, 128], strides = [1, 1]} : vector<16x128xf32> to vector<1x128xf32>
    %158 = tpu.concatenate %156, %157 in 0 : vector<1x128xf32>, vector<1x128xf32> -> vector<2x128xf32>
    %159 = arith.truncf %154 : vector<2x32xf32> to vector<2x32xbf16>
    %cst_77 = arith.constant dense<0.000000e+00> : vector<2x128xf32>
    %160 = tpu.matmul %159, %143, %cst_77 {dimension_numbers = #tpu.dot_dimension_numbers<[1], [0], [0], [1], [0, 0, 1, 1], [], []>} : vector<2x32xbf16>, vector<32x128xbf16>, vector<2x128xf32> -> vector<2x128xf32>
    %161 = arith.addf %158, %160 : vector<2x128xf32>
    %162 = vector.extract_strided_slice %161 {offsets = [0, 0], sizes = [2, 32], strides = [1, 1]} : vector<2x128xf32> to vector<2x32xf32>
    %163 = arith.negf %162 : vector<2x32xf32>
    %164 = math.exp %163 : vector<2x32xf32>
    %cst_78 = arith.constant 1.000000e+00 : f32
    %165 = vector.broadcast %cst_78 : f32 to vector<2x32xf32>
    %166 = arith.addf %165, %164 : vector<2x32xf32>
    %167 = arith.divf %165, %166 : vector<2x32xf32>
    %168 = vector.extract_strided_slice %161 {offsets = [0, 32], sizes = [2, 32], strides = [1, 1]} : vector<2x128xf32> to vector<2x32xf32>
    %169 = arith.negf %168 : vector<2x32xf32>
    %170 = math.exp %169 : vector<2x32xf32>
    %cst_79 = arith.constant 1.000000e+00 : f32
    %171 = vector.broadcast %cst_79 : f32 to vector<2x32xf32>
    %172 = arith.addf %171, %170 : vector<2x32xf32>
    %173 = arith.divf %171, %172 : vector<2x32xf32>
    %174 = vector.extract_strided_slice %161 {offsets = [0, 64], sizes = [2, 32], strides = [1, 1]} : vector<2x128xf32> to vector<2x32xf32>
    %175 = math.tanh %174 : vector<2x32xf32>
    %176 = vector.extract_strided_slice %161 {offsets = [0, 96], sizes = [2, 32], strides = [1, 1]} : vector<2x128xf32> to vector<2x32xf32>
    %177 = arith.negf %176 : vector<2x32xf32>
    %178 = math.exp %177 : vector<2x32xf32>
    %cst_80 = arith.constant 1.000000e+00 : f32
    %179 = vector.broadcast %cst_80 : f32 to vector<2x32xf32>
    %180 = arith.addf %179, %178 : vector<2x32xf32>
    %181 = arith.divf %179, %180 : vector<2x32xf32>
    %182 = arith.mulf %173, %155 : vector<2x32xf32>
    %183 = arith.mulf %167, %175 : vector<2x32xf32>
    %184 = arith.addf %182, %183 : vector<2x32xf32>
    %185 = math.tanh %184 : vector<2x32xf32>
    %186 = arith.mulf %181, %185 : vector<2x32xf32>
    %187 = vector.extract_strided_slice %153 {offsets = [1, 0], sizes = [1, 128], strides = [1, 1]} : vector<16x128xf32> to vector<1x128xf32>
    %188 = vector.extract_strided_slice %153 {offsets = [9, 0], sizes = [1, 128], strides = [1, 1]} : vector<16x128xf32> to vector<1x128xf32>
    %189 = tpu.concatenate %187, %188 in 0 : vector<1x128xf32>, vector<1x128xf32> -> vector<2x128xf32>
    %190 = arith.truncf %186 : vector<2x32xf32> to vector<2x32xbf16>
    %cst_81 = arith.constant dense<0.000000e+00> : vector<2x128xf32>
    %191 = tpu.matmul %190, %143, %cst_81 {dimension_numbers = #tpu.dot_dimension_numbers<[1], [0], [0], [1], [0, 0, 1, 1], [], []>} : vector<2x32xbf16>, vector<32x128xbf16>, vector<2x128xf32> -> vector<2x128xf32>
    %192 = arith.addf %189, %191 : vector<2x128xf32>
    %193 = vector.extract_strided_slice %192 {offsets = [0, 0], sizes = [2, 32], strides = [1, 1]} : vector<2x128xf32> to vector<2x32xf32>
    %194 = arith.negf %193 : vector<2x32xf32>
    %195 = math.exp %194 : vector<2x32xf32>
    %cst_82 = arith.constant 1.000000e+00 : f32
    %196 = vector.broadcast %cst_82 : f32 to vector<2x32xf32>
    %197 = arith.addf %196, %195 : vector<2x32xf32>
    %198 = arith.divf %196, %197 : vector<2x32xf32>
    %199 = vector.extract_strided_slice %192 {offsets = [0, 32], sizes = [2, 32], strides = [1, 1]} : vector<2x128xf32> to vector<2x32xf32>
    %200 = arith.negf %199 : vector<2x32xf32>
    %201 = math.exp %200 : vector<2x32xf32>
    %cst_83 = arith.constant 1.000000e+00 : f32
    %202 = vector.broadcast %cst_83 : f32 to vector<2x32xf32>
    %203 = arith.addf %202, %201 : vector<2x32xf32>
    %204 = arith.divf %202, %203 : vector<2x32xf32>
    %205 = vector.extract_strided_slice %192 {offsets = [0, 64], sizes = [2, 32], strides = [1, 1]} : vector<2x128xf32> to vector<2x32xf32>
    %206 = math.tanh %205 : vector<2x32xf32>
    %207 = vector.extract_strided_slice %192 {offsets = [0, 96], sizes = [2, 32], strides = [1, 1]} : vector<2x128xf32> to vector<2x32xf32>
    %208 = arith.negf %207 : vector<2x32xf32>
    %209 = math.exp %208 : vector<2x32xf32>
    %cst_84 = arith.constant 1.000000e+00 : f32
    %210 = vector.broadcast %cst_84 : f32 to vector<2x32xf32>
    %211 = arith.addf %210, %209 : vector<2x32xf32>
    %212 = arith.divf %210, %211 : vector<2x32xf32>
    %213 = arith.mulf %204, %184 : vector<2x32xf32>
    %214 = arith.mulf %198, %206 : vector<2x32xf32>
    %215 = arith.addf %213, %214 : vector<2x32xf32>
    %216 = math.tanh %215 : vector<2x32xf32>
    %217 = arith.mulf %212, %216 : vector<2x32xf32>
    %218 = vector.extract_strided_slice %153 {offsets = [2, 0], sizes = [1, 128], strides = [1, 1]} : vector<16x128xf32> to vector<1x128xf32>
    %219 = vector.extract_strided_slice %153 {offsets = [10, 0], sizes = [1, 128], strides = [1, 1]} : vector<16x128xf32> to vector<1x128xf32>
    %220 = tpu.concatenate %218, %219 in 0 : vector<1x128xf32>, vector<1x128xf32> -> vector<2x128xf32>
    %221 = arith.truncf %217 : vector<2x32xf32> to vector<2x32xbf16>
    %cst_85 = arith.constant dense<0.000000e+00> : vector<2x128xf32>
    %222 = tpu.matmul %221, %143, %cst_85 {dimension_numbers = #tpu.dot_dimension_numbers<[1], [0], [0], [1], [0, 0, 1, 1], [], []>} : vector<2x32xbf16>, vector<32x128xbf16>, vector<2x128xf32> -> vector<2x128xf32>
    %223 = arith.addf %220, %222 : vector<2x128xf32>
    %224 = vector.extract_strided_slice %223 {offsets = [0, 0], sizes = [2, 32], strides = [1, 1]} : vector<2x128xf32> to vector<2x32xf32>
    %225 = arith.negf %224 : vector<2x32xf32>
    %226 = math.exp %225 : vector<2x32xf32>
    %cst_86 = arith.constant 1.000000e+00 : f32
    %227 = vector.broadcast %cst_86 : f32 to vector<2x32xf32>
    %228 = arith.addf %227, %226 : vector<2x32xf32>
    %229 = arith.divf %227, %228 : vector<2x32xf32>
    %230 = vector.extract_strided_slice %223 {offsets = [0, 32], sizes = [2, 32], strides = [1, 1]} : vector<2x128xf32> to vector<2x32xf32>
    %231 = arith.negf %230 : vector<2x32xf32>
    %232 = math.exp %231 : vector<2x32xf32>
    %cst_87 = arith.constant 1.000000e+00 : f32
    %233 = vector.broadcast %cst_87 : f32 to vector<2x32xf32>
    %234 = arith.addf %233, %232 : vector<2x32xf32>
    %235 = arith.divf %233, %234 : vector<2x32xf32>
    %236 = vector.extract_strided_slice %223 {offsets = [0, 64], sizes = [2, 32], strides = [1, 1]} : vector<2x128xf32> to vector<2x32xf32>
    %237 = math.tanh %236 : vector<2x32xf32>
    %238 = vector.extract_strided_slice %223 {offsets = [0, 96], sizes = [2, 32], strides = [1, 1]} : vector<2x128xf32> to vector<2x32xf32>
    %239 = arith.negf %238 : vector<2x32xf32>
    %240 = math.exp %239 : vector<2x32xf32>
    %cst_88 = arith.constant 1.000000e+00 : f32
    %241 = vector.broadcast %cst_88 : f32 to vector<2x32xf32>
    %242 = arith.addf %241, %240 : vector<2x32xf32>
    %243 = arith.divf %241, %242 : vector<2x32xf32>
    %244 = arith.mulf %235, %215 : vector<2x32xf32>
    %245 = arith.mulf %229, %237 : vector<2x32xf32>
    %246 = arith.addf %244, %245 : vector<2x32xf32>
    %247 = math.tanh %246 : vector<2x32xf32>
    %248 = arith.mulf %243, %247 : vector<2x32xf32>
    %249 = vector.extract_strided_slice %153 {offsets = [3, 0], sizes = [1, 128], strides = [1, 1]} : vector<16x128xf32> to vector<1x128xf32>
    %250 = vector.extract_strided_slice %153 {offsets = [11, 0], sizes = [1, 128], strides = [1, 1]} : vector<16x128xf32> to vector<1x128xf32>
    %251 = tpu.concatenate %249, %250 in 0 : vector<1x128xf32>, vector<1x128xf32> -> vector<2x128xf32>
    %252 = arith.truncf %248 : vector<2x32xf32> to vector<2x32xbf16>
    %cst_89 = arith.constant dense<0.000000e+00> : vector<2x128xf32>
    %253 = tpu.matmul %252, %143, %cst_89 {dimension_numbers = #tpu.dot_dimension_numbers<[1], [0], [0], [1], [0, 0, 1, 1], [], []>} : vector<2x32xbf16>, vector<32x128xbf16>, vector<2x128xf32> -> vector<2x128xf32>
    %254 = arith.addf %251, %253 : vector<2x128xf32>
    %255 = vector.extract_strided_slice %254 {offsets = [0, 0], sizes = [2, 32], strides = [1, 1]} : vector<2x128xf32> to vector<2x32xf32>
    %256 = arith.negf %255 : vector<2x32xf32>
    %257 = math.exp %256 : vector<2x32xf32>
    %cst_90 = arith.constant 1.000000e+00 : f32
    %258 = vector.broadcast %cst_90 : f32 to vector<2x32xf32>
    %259 = arith.addf %258, %257 : vector<2x32xf32>
    %260 = arith.divf %258, %259 : vector<2x32xf32>
    %261 = vector.extract_strided_slice %254 {offsets = [0, 32], sizes = [2, 32], strides = [1, 1]} : vector<2x128xf32> to vector<2x32xf32>
    %262 = arith.negf %261 : vector<2x32xf32>
    %263 = math.exp %262 : vector<2x32xf32>
    %cst_91 = arith.constant 1.000000e+00 : f32
    %264 = vector.broadcast %cst_91 : f32 to vector<2x32xf32>
    %265 = arith.addf %264, %263 : vector<2x32xf32>
    %266 = arith.divf %264, %265 : vector<2x32xf32>
    %267 = vector.extract_strided_slice %254 {offsets = [0, 64], sizes = [2, 32], strides = [1, 1]} : vector<2x128xf32> to vector<2x32xf32>
    %268 = math.tanh %267 : vector<2x32xf32>
    %269 = vector.extract_strided_slice %254 {offsets = [0, 96], sizes = [2, 32], strides = [1, 1]} : vector<2x128xf32> to vector<2x32xf32>
    %270 = arith.negf %269 : vector<2x32xf32>
    %271 = math.exp %270 : vector<2x32xf32>
    %cst_92 = arith.constant 1.000000e+00 : f32
    %272 = vector.broadcast %cst_92 : f32 to vector<2x32xf32>
    %273 = arith.addf %272, %271 : vector<2x32xf32>
    %274 = arith.divf %272, %273 : vector<2x32xf32>
    %275 = arith.mulf %266, %246 : vector<2x32xf32>
    %276 = arith.mulf %260, %268 : vector<2x32xf32>
    %277 = arith.addf %275, %276 : vector<2x32xf32>
    %278 = math.tanh %277 : vector<2x32xf32>
    %279 = arith.mulf %274, %278 : vector<2x32xf32>
    %280 = vector.extract_strided_slice %153 {offsets = [4, 0], sizes = [1, 128], strides = [1, 1]} : vector<16x128xf32> to vector<1x128xf32>
    %281 = vector.extract_strided_slice %153 {offsets = [12, 0], sizes = [1, 128], strides = [1, 1]} : vector<16x128xf32> to vector<1x128xf32>
    %282 = tpu.concatenate %280, %281 in 0 : vector<1x128xf32>, vector<1x128xf32> -> vector<2x128xf32>
    %283 = arith.truncf %279 : vector<2x32xf32> to vector<2x32xbf16>
    %cst_93 = arith.constant dense<0.000000e+00> : vector<2x128xf32>
    %284 = tpu.matmul %283, %143, %cst_93 {dimension_numbers = #tpu.dot_dimension_numbers<[1], [0], [0], [1], [0, 0, 1, 1], [], []>} : vector<2x32xbf16>, vector<32x128xbf16>, vector<2x128xf32> -> vector<2x128xf32>
    %285 = arith.addf %282, %284 : vector<2x128xf32>
    %286 = vector.extract_strided_slice %285 {offsets = [0, 0], sizes = [2, 32], strides = [1, 1]} : vector<2x128xf32> to vector<2x32xf32>
    %287 = arith.negf %286 : vector<2x32xf32>
    %288 = math.exp %287 : vector<2x32xf32>
    %cst_94 = arith.constant 1.000000e+00 : f32
    %289 = vector.broadcast %cst_94 : f32 to vector<2x32xf32>
    %290 = arith.addf %289, %288 : vector<2x32xf32>
    %291 = arith.divf %289, %290 : vector<2x32xf32>
    %292 = vector.extract_strided_slice %285 {offsets = [0, 32], sizes = [2, 32], strides = [1, 1]} : vector<2x128xf32> to vector<2x32xf32>
    %293 = arith.negf %292 : vector<2x32xf32>
    %294 = math.exp %293 : vector<2x32xf32>
    %cst_95 = arith.constant 1.000000e+00 : f32
    %295 = vector.broadcast %cst_95 : f32 to vector<2x32xf32>
    %296 = arith.addf %295, %294 : vector<2x32xf32>
    %297 = arith.divf %295, %296 : vector<2x32xf32>
    %298 = vector.extract_strided_slice %285 {offsets = [0, 64], sizes = [2, 32], strides = [1, 1]} : vector<2x128xf32> to vector<2x32xf32>
    %299 = math.tanh %298 : vector<2x32xf32>
    %300 = vector.extract_strided_slice %285 {offsets = [0, 96], sizes = [2, 32], strides = [1, 1]} : vector<2x128xf32> to vector<2x32xf32>
    %301 = arith.negf %300 : vector<2x32xf32>
    %302 = math.exp %301 : vector<2x32xf32>
    %cst_96 = arith.constant 1.000000e+00 : f32
    %303 = vector.broadcast %cst_96 : f32 to vector<2x32xf32>
    %304 = arith.addf %303, %302 : vector<2x32xf32>
    %305 = arith.divf %303, %304 : vector<2x32xf32>
    %306 = arith.mulf %297, %277 : vector<2x32xf32>
    %307 = arith.mulf %291, %299 : vector<2x32xf32>
    %308 = arith.addf %306, %307 : vector<2x32xf32>
    %309 = math.tanh %308 : vector<2x32xf32>
    %310 = arith.mulf %305, %309 : vector<2x32xf32>
    %311 = vector.extract_strided_slice %153 {offsets = [5, 0], sizes = [1, 128], strides = [1, 1]} : vector<16x128xf32> to vector<1x128xf32>
    %312 = vector.extract_strided_slice %153 {offsets = [13, 0], sizes = [1, 128], strides = [1, 1]} : vector<16x128xf32> to vector<1x128xf32>
    %313 = tpu.concatenate %311, %312 in 0 : vector<1x128xf32>, vector<1x128xf32> -> vector<2x128xf32>
    %314 = arith.truncf %310 : vector<2x32xf32> to vector<2x32xbf16>
    %cst_97 = arith.constant dense<0.000000e+00> : vector<2x128xf32>
    %315 = tpu.matmul %314, %143, %cst_97 {dimension_numbers = #tpu.dot_dimension_numbers<[1], [0], [0], [1], [0, 0, 1, 1], [], []>} : vector<2x32xbf16>, vector<32x128xbf16>, vector<2x128xf32> -> vector<2x128xf32>
    %316 = arith.addf %313, %315 : vector<2x128xf32>
    %317 = vector.extract_strided_slice %316 {offsets = [0, 0], sizes = [2, 32], strides = [1, 1]} : vector<2x128xf32> to vector<2x32xf32>
    %318 = arith.negf %317 : vector<2x32xf32>
    %319 = math.exp %318 : vector<2x32xf32>
    %cst_98 = arith.constant 1.000000e+00 : f32
    %320 = vector.broadcast %cst_98 : f32 to vector<2x32xf32>
    %321 = arith.addf %320, %319 : vector<2x32xf32>
    %322 = arith.divf %320, %321 : vector<2x32xf32>
    %323 = vector.extract_strided_slice %316 {offsets = [0, 32], sizes = [2, 32], strides = [1, 1]} : vector<2x128xf32> to vector<2x32xf32>
    %324 = arith.negf %323 : vector<2x32xf32>
    %325 = math.exp %324 : vector<2x32xf32>
    %cst_99 = arith.constant 1.000000e+00 : f32
    %326 = vector.broadcast %cst_99 : f32 to vector<2x32xf32>
    %327 = arith.addf %326, %325 : vector<2x32xf32>
    %328 = arith.divf %326, %327 : vector<2x32xf32>
    %329 = vector.extract_strided_slice %316 {offsets = [0, 64], sizes = [2, 32], strides = [1, 1]} : vector<2x128xf32> to vector<2x32xf32>
    %330 = math.tanh %329 : vector<2x32xf32>
    %331 = vector.extract_strided_slice %316 {offsets = [0, 96], sizes = [2, 32], strides = [1, 1]} : vector<2x128xf32> to vector<2x32xf32>
    %332 = arith.negf %331 : vector<2x32xf32>
    %333 = math.exp %332 : vector<2x32xf32>
    %cst_100 = arith.constant 1.000000e+00 : f32
    %334 = vector.broadcast %cst_100 : f32 to vector<2x32xf32>
    %335 = arith.addf %334, %333 : vector<2x32xf32>
    %336 = arith.divf %334, %335 : vector<2x32xf32>
    %337 = arith.mulf %328, %308 : vector<2x32xf32>
    %338 = arith.mulf %322, %330 : vector<2x32xf32>
    %339 = arith.addf %337, %338 : vector<2x32xf32>
    %340 = math.tanh %339 : vector<2x32xf32>
    %341 = arith.mulf %336, %340 : vector<2x32xf32>
    %342 = vector.extract_strided_slice %153 {offsets = [6, 0], sizes = [1, 128], strides = [1, 1]} : vector<16x128xf32> to vector<1x128xf32>
    %343 = vector.extract_strided_slice %153 {offsets = [14, 0], sizes = [1, 128], strides = [1, 1]} : vector<16x128xf32> to vector<1x128xf32>
    %344 = tpu.concatenate %342, %343 in 0 : vector<1x128xf32>, vector<1x128xf32> -> vector<2x128xf32>
    %345 = arith.truncf %341 : vector<2x32xf32> to vector<2x32xbf16>
    %cst_101 = arith.constant dense<0.000000e+00> : vector<2x128xf32>
    %346 = tpu.matmul %345, %143, %cst_101 {dimension_numbers = #tpu.dot_dimension_numbers<[1], [0], [0], [1], [0, 0, 1, 1], [], []>} : vector<2x32xbf16>, vector<32x128xbf16>, vector<2x128xf32> -> vector<2x128xf32>
    %347 = arith.addf %344, %346 : vector<2x128xf32>
    %348 = vector.extract_strided_slice %347 {offsets = [0, 0], sizes = [2, 32], strides = [1, 1]} : vector<2x128xf32> to vector<2x32xf32>
    %349 = arith.negf %348 : vector<2x32xf32>
    %350 = math.exp %349 : vector<2x32xf32>
    %cst_102 = arith.constant 1.000000e+00 : f32
    %351 = vector.broadcast %cst_102 : f32 to vector<2x32xf32>
    %352 = arith.addf %351, %350 : vector<2x32xf32>
    %353 = arith.divf %351, %352 : vector<2x32xf32>
    %354 = vector.extract_strided_slice %347 {offsets = [0, 32], sizes = [2, 32], strides = [1, 1]} : vector<2x128xf32> to vector<2x32xf32>
    %355 = arith.negf %354 : vector<2x32xf32>
    %356 = math.exp %355 : vector<2x32xf32>
    %cst_103 = arith.constant 1.000000e+00 : f32
    %357 = vector.broadcast %cst_103 : f32 to vector<2x32xf32>
    %358 = arith.addf %357, %356 : vector<2x32xf32>
    %359 = arith.divf %357, %358 : vector<2x32xf32>
    %360 = vector.extract_strided_slice %347 {offsets = [0, 64], sizes = [2, 32], strides = [1, 1]} : vector<2x128xf32> to vector<2x32xf32>
    %361 = math.tanh %360 : vector<2x32xf32>
    %362 = vector.extract_strided_slice %347 {offsets = [0, 96], sizes = [2, 32], strides = [1, 1]} : vector<2x128xf32> to vector<2x32xf32>
    %363 = arith.negf %362 : vector<2x32xf32>
    %364 = math.exp %363 : vector<2x32xf32>
    %cst_104 = arith.constant 1.000000e+00 : f32
    %365 = vector.broadcast %cst_104 : f32 to vector<2x32xf32>
    %366 = arith.addf %365, %364 : vector<2x32xf32>
    %367 = arith.divf %365, %366 : vector<2x32xf32>
    %368 = arith.mulf %359, %339 : vector<2x32xf32>
    %369 = arith.mulf %353, %361 : vector<2x32xf32>
    %370 = arith.addf %368, %369 : vector<2x32xf32>
    %371 = math.tanh %370 : vector<2x32xf32>
    %372 = arith.mulf %367, %371 : vector<2x32xf32>
    %373 = vector.extract_strided_slice %153 {offsets = [7, 0], sizes = [1, 128], strides = [1, 1]} : vector<16x128xf32> to vector<1x128xf32>
    %374 = vector.extract_strided_slice %153 {offsets = [15, 0], sizes = [1, 128], strides = [1, 1]} : vector<16x128xf32> to vector<1x128xf32>
    %375 = tpu.concatenate %373, %374 in 0 : vector<1x128xf32>, vector<1x128xf32> -> vector<2x128xf32>
    %376 = arith.truncf %372 : vector<2x32xf32> to vector<2x32xbf16>
    %cst_105 = arith.constant dense<0.000000e+00> : vector<2x128xf32>
    %377 = tpu.matmul %376, %143, %cst_105 {dimension_numbers = #tpu.dot_dimension_numbers<[1], [0], [0], [1], [0, 0, 1, 1], [], []>} : vector<2x32xbf16>, vector<32x128xbf16>, vector<2x128xf32> -> vector<2x128xf32>
    %378 = arith.addf %375, %377 : vector<2x128xf32>
    %379 = vector.extract_strided_slice %378 {offsets = [0, 0], sizes = [2, 32], strides = [1, 1]} : vector<2x128xf32> to vector<2x32xf32>
    %380 = arith.negf %379 : vector<2x32xf32>
    %381 = math.exp %380 : vector<2x32xf32>
    %cst_106 = arith.constant 1.000000e+00 : f32
    %382 = vector.broadcast %cst_106 : f32 to vector<2x32xf32>
    %383 = arith.addf %382, %381 : vector<2x32xf32>
    %384 = arith.divf %382, %383 : vector<2x32xf32>
    %385 = vector.extract_strided_slice %378 {offsets = [0, 32], sizes = [2, 32], strides = [1, 1]} : vector<2x128xf32> to vector<2x32xf32>
    %386 = arith.negf %385 : vector<2x32xf32>
    %387 = math.exp %386 : vector<2x32xf32>
    %cst_107 = arith.constant 1.000000e+00 : f32
    %388 = vector.broadcast %cst_107 : f32 to vector<2x32xf32>
    %389 = arith.addf %388, %387 : vector<2x32xf32>
    %390 = arith.divf %388, %389 : vector<2x32xf32>
    %391 = vector.extract_strided_slice %378 {offsets = [0, 64], sizes = [2, 32], strides = [1, 1]} : vector<2x128xf32> to vector<2x32xf32>
    %392 = math.tanh %391 : vector<2x32xf32>
    %393 = vector.extract_strided_slice %378 {offsets = [0, 96], sizes = [2, 32], strides = [1, 1]} : vector<2x128xf32> to vector<2x32xf32>
    %394 = arith.negf %393 : vector<2x32xf32>
    %395 = math.exp %394 : vector<2x32xf32>
    %cst_108 = arith.constant 1.000000e+00 : f32
    %396 = vector.broadcast %cst_108 : f32 to vector<2x32xf32>
    %397 = arith.addf %396, %395 : vector<2x32xf32>
    %398 = arith.divf %396, %397 : vector<2x32xf32>
    %399 = arith.mulf %390, %370 : vector<2x32xf32>
    %400 = arith.mulf %384, %392 : vector<2x32xf32>
    %401 = arith.addf %399, %400 : vector<2x32xf32>
    %402 = math.tanh %401 : vector<2x32xf32>
    %403 = arith.mulf %398, %402 : vector<2x32xf32>
    %404 = tpu.concatenate %186, %217, %248, %279, %310, %341, %372, %403 in 0 : vector<2x32xf32>, vector<2x32xf32>, vector<2x32xf32>, vector<2x32xf32>, vector<2x32xf32>, vector<2x32xf32>, vector<2x32xf32>, vector<2x32xf32> -> vector<16x32xf32>
    %405 = arith.truncf %404 : vector<16x32xf32> to vector<16x32xbf16>
    %cst_109 = arith.constant dense<0.000000e+00> : vector<16x128xf32>
    %406 = tpu.matmul %405, %145, %cst_109 {dimension_numbers = #tpu.dot_dimension_numbers<[1], [0], [0], [1], [0, 0, 1, 1], [], []>} : vector<16x32xbf16>, vector<32x128xbf16>, vector<16x128xf32> -> vector<16x128xf32>
    %407 = vector.broadcast %147 : vector<1x128xf32> to vector<16x128xf32>
    %408 = arith.addf %406, %407 : vector<16x128xf32>
    %cst_110 = arith.constant 0.000000e+00 : f32
    %409 = vector.broadcast %cst_110 : f32 to vector<2x32xf32>
    %cst_111 = arith.constant 0.000000e+00 : f32
    %410 = vector.broadcast %cst_111 : f32 to vector<2x32xf32>
    %411 = vector.extract_strided_slice %408 {offsets = [0, 0], sizes = [2, 128], strides = [1, 1]} : vector<16x128xf32> to vector<2x128xf32>
    %412 = arith.truncf %409 : vector<2x32xf32> to vector<2x32xbf16>
    %cst_112 = arith.constant dense<0.000000e+00> : vector<2x128xf32>
    %413 = tpu.matmul %412, %146, %cst_112 {dimension_numbers = #tpu.dot_dimension_numbers<[1], [0], [0], [1], [0, 0, 1, 1], [], []>} : vector<2x32xbf16>, vector<32x128xbf16>, vector<2x128xf32> -> vector<2x128xf32>
    %414 = arith.addf %411, %413 : vector<2x128xf32>
    %415 = vector.extract_strided_slice %414 {offsets = [0, 0], sizes = [2, 32], strides = [1, 1]} : vector<2x128xf32> to vector<2x32xf32>
    %416 = arith.negf %415 : vector<2x32xf32>
    %417 = math.exp %416 : vector<2x32xf32>
    %cst_113 = arith.constant 1.000000e+00 : f32
    %418 = vector.broadcast %cst_113 : f32 to vector<2x32xf32>
    %419 = arith.addf %418, %417 : vector<2x32xf32>
    %420 = arith.divf %418, %419 : vector<2x32xf32>
    %421 = vector.extract_strided_slice %414 {offsets = [0, 32], sizes = [2, 32], strides = [1, 1]} : vector<2x128xf32> to vector<2x32xf32>
    %422 = arith.negf %421 : vector<2x32xf32>
    %423 = math.exp %422 : vector<2x32xf32>
    %cst_114 = arith.constant 1.000000e+00 : f32
    %424 = vector.broadcast %cst_114 : f32 to vector<2x32xf32>
    %425 = arith.addf %424, %423 : vector<2x32xf32>
    %426 = arith.divf %424, %425 : vector<2x32xf32>
    %427 = vector.extract_strided_slice %414 {offsets = [0, 64], sizes = [2, 32], strides = [1, 1]} : vector<2x128xf32> to vector<2x32xf32>
    %428 = math.tanh %427 : vector<2x32xf32>
    %429 = vector.extract_strided_slice %414 {offsets = [0, 96], sizes = [2, 32], strides = [1, 1]} : vector<2x128xf32> to vector<2x32xf32>
    %430 = arith.negf %429 : vector<2x32xf32>
    %431 = math.exp %430 : vector<2x32xf32>
    %cst_115 = arith.constant 1.000000e+00 : f32
    %432 = vector.broadcast %cst_115 : f32 to vector<2x32xf32>
    %433 = arith.addf %432, %431 : vector<2x32xf32>
    %434 = arith.divf %432, %433 : vector<2x32xf32>
    %435 = arith.mulf %426, %410 : vector<2x32xf32>
    %436 = arith.mulf %420, %428 : vector<2x32xf32>
    %437 = arith.addf %435, %436 : vector<2x32xf32>
    %438 = math.tanh %437 : vector<2x32xf32>
    %439 = arith.mulf %434, %438 : vector<2x32xf32>
    %440 = vector.extract_strided_slice %408 {offsets = [2, 0], sizes = [2, 128], strides = [1, 1]} : vector<16x128xf32> to vector<2x128xf32>
    %441 = arith.truncf %439 : vector<2x32xf32> to vector<2x32xbf16>
    %cst_116 = arith.constant dense<0.000000e+00> : vector<2x128xf32>
    %442 = tpu.matmul %441, %146, %cst_116 {dimension_numbers = #tpu.dot_dimension_numbers<[1], [0], [0], [1], [0, 0, 1, 1], [], []>} : vector<2x32xbf16>, vector<32x128xbf16>, vector<2x128xf32> -> vector<2x128xf32>
    %443 = arith.addf %440, %442 : vector<2x128xf32>
    %444 = vector.extract_strided_slice %443 {offsets = [0, 0], sizes = [2, 32], strides = [1, 1]} : vector<2x128xf32> to vector<2x32xf32>
    %445 = arith.negf %444 : vector<2x32xf32>
    %446 = math.exp %445 : vector<2x32xf32>
    %cst_117 = arith.constant 1.000000e+00 : f32
    %447 = vector.broadcast %cst_117 : f32 to vector<2x32xf32>
    %448 = arith.addf %447, %446 : vector<2x32xf32>
    %449 = arith.divf %447, %448 : vector<2x32xf32>
    %450 = vector.extract_strided_slice %443 {offsets = [0, 32], sizes = [2, 32], strides = [1, 1]} : vector<2x128xf32> to vector<2x32xf32>
    %451 = arith.negf %450 : vector<2x32xf32>
    %452 = math.exp %451 : vector<2x32xf32>
    %cst_118 = arith.constant 1.000000e+00 : f32
    %453 = vector.broadcast %cst_118 : f32 to vector<2x32xf32>
    %454 = arith.addf %453, %452 : vector<2x32xf32>
    %455 = arith.divf %453, %454 : vector<2x32xf32>
    %456 = vector.extract_strided_slice %443 {offsets = [0, 64], sizes = [2, 32], strides = [1, 1]} : vector<2x128xf32> to vector<2x32xf32>
    %457 = math.tanh %456 : vector<2x32xf32>
    %458 = vector.extract_strided_slice %443 {offsets = [0, 96], sizes = [2, 32], strides = [1, 1]} : vector<2x128xf32> to vector<2x32xf32>
    %459 = arith.negf %458 : vector<2x32xf32>
    %460 = math.exp %459 : vector<2x32xf32>
    %cst_119 = arith.constant 1.000000e+00 : f32
    %461 = vector.broadcast %cst_119 : f32 to vector<2x32xf32>
    %462 = arith.addf %461, %460 : vector<2x32xf32>
    %463 = arith.divf %461, %462 : vector<2x32xf32>
    %464 = arith.mulf %455, %437 : vector<2x32xf32>
    %465 = arith.mulf %449, %457 : vector<2x32xf32>
    %466 = arith.addf %464, %465 : vector<2x32xf32>
    %467 = math.tanh %466 : vector<2x32xf32>
    %468 = arith.mulf %463, %467 : vector<2x32xf32>
    %469 = vector.extract_strided_slice %408 {offsets = [4, 0], sizes = [2, 128], strides = [1, 1]} : vector<16x128xf32> to vector<2x128xf32>
    %470 = arith.truncf %468 : vector<2x32xf32> to vector<2x32xbf16>
    %cst_120 = arith.constant dense<0.000000e+00> : vector<2x128xf32>
    %471 = tpu.matmul %470, %146, %cst_120 {dimension_numbers = #tpu.dot_dimension_numbers<[1], [0], [0], [1], [0, 0, 1, 1], [], []>} : vector<2x32xbf16>, vector<32x128xbf16>, vector<2x128xf32> -> vector<2x128xf32>
    %472 = arith.addf %469, %471 : vector<2x128xf32>
    %473 = vector.extract_strided_slice %472 {offsets = [0, 0], sizes = [2, 32], strides = [1, 1]} : vector<2x128xf32> to vector<2x32xf32>
    %474 = arith.negf %473 : vector<2x32xf32>
    %475 = math.exp %474 : vector<2x32xf32>
    %cst_121 = arith.constant 1.000000e+00 : f32
    %476 = vector.broadcast %cst_121 : f32 to vector<2x32xf32>
    %477 = arith.addf %476, %475 : vector<2x32xf32>
    %478 = arith.divf %476, %477 : vector<2x32xf32>
    %479 = vector.extract_strided_slice %472 {offsets = [0, 32], sizes = [2, 32], strides = [1, 1]} : vector<2x128xf32> to vector<2x32xf32>
    %480 = arith.negf %479 : vector<2x32xf32>
    %481 = math.exp %480 : vector<2x32xf32>
    %cst_122 = arith.constant 1.000000e+00 : f32
    %482 = vector.broadcast %cst_122 : f32 to vector<2x32xf32>
    %483 = arith.addf %482, %481 : vector<2x32xf32>
    %484 = arith.divf %482, %483 : vector<2x32xf32>
    %485 = vector.extract_strided_slice %472 {offsets = [0, 64], sizes = [2, 32], strides = [1, 1]} : vector<2x128xf32> to vector<2x32xf32>
    %486 = math.tanh %485 : vector<2x32xf32>
    %487 = vector.extract_strided_slice %472 {offsets = [0, 96], sizes = [2, 32], strides = [1, 1]} : vector<2x128xf32> to vector<2x32xf32>
    %488 = arith.negf %487 : vector<2x32xf32>
    %489 = math.exp %488 : vector<2x32xf32>
    %cst_123 = arith.constant 1.000000e+00 : f32
    %490 = vector.broadcast %cst_123 : f32 to vector<2x32xf32>
    %491 = arith.addf %490, %489 : vector<2x32xf32>
    %492 = arith.divf %490, %491 : vector<2x32xf32>
    %493 = arith.mulf %484, %466 : vector<2x32xf32>
    %494 = arith.mulf %478, %486 : vector<2x32xf32>
    %495 = arith.addf %493, %494 : vector<2x32xf32>
    %496 = math.tanh %495 : vector<2x32xf32>
    %497 = arith.mulf %492, %496 : vector<2x32xf32>
    %498 = vector.extract_strided_slice %408 {offsets = [6, 0], sizes = [2, 128], strides = [1, 1]} : vector<16x128xf32> to vector<2x128xf32>
    %499 = arith.truncf %497 : vector<2x32xf32> to vector<2x32xbf16>
    %cst_124 = arith.constant dense<0.000000e+00> : vector<2x128xf32>
    %500 = tpu.matmul %499, %146, %cst_124 {dimension_numbers = #tpu.dot_dimension_numbers<[1], [0], [0], [1], [0, 0, 1, 1], [], []>} : vector<2x32xbf16>, vector<32x128xbf16>, vector<2x128xf32> -> vector<2x128xf32>
    %501 = arith.addf %498, %500 : vector<2x128xf32>
    %502 = vector.extract_strided_slice %501 {offsets = [0, 0], sizes = [2, 32], strides = [1, 1]} : vector<2x128xf32> to vector<2x32xf32>
    %503 = arith.negf %502 : vector<2x32xf32>
    %504 = math.exp %503 : vector<2x32xf32>
    %cst_125 = arith.constant 1.000000e+00 : f32
    %505 = vector.broadcast %cst_125 : f32 to vector<2x32xf32>
    %506 = arith.addf %505, %504 : vector<2x32xf32>
    %507 = arith.divf %505, %506 : vector<2x32xf32>
    %508 = vector.extract_strided_slice %501 {offsets = [0, 32], sizes = [2, 32], strides = [1, 1]} : vector<2x128xf32> to vector<2x32xf32>
    %509 = arith.negf %508 : vector<2x32xf32>
    %510 = math.exp %509 : vector<2x32xf32>
    %cst_126 = arith.constant 1.000000e+00 : f32
    %511 = vector.broadcast %cst_126 : f32 to vector<2x32xf32>
    %512 = arith.addf %511, %510 : vector<2x32xf32>
    %513 = arith.divf %511, %512 : vector<2x32xf32>
    %514 = vector.extract_strided_slice %501 {offsets = [0, 64], sizes = [2, 32], strides = [1, 1]} : vector<2x128xf32> to vector<2x32xf32>
    %515 = math.tanh %514 : vector<2x32xf32>
    %516 = vector.extract_strided_slice %501 {offsets = [0, 96], sizes = [2, 32], strides = [1, 1]} : vector<2x128xf32> to vector<2x32xf32>
    %517 = arith.negf %516 : vector<2x32xf32>
    %518 = math.exp %517 : vector<2x32xf32>
    %cst_127 = arith.constant 1.000000e+00 : f32
    %519 = vector.broadcast %cst_127 : f32 to vector<2x32xf32>
    %520 = arith.addf %519, %518 : vector<2x32xf32>
    %521 = arith.divf %519, %520 : vector<2x32xf32>
    %522 = arith.mulf %513, %495 : vector<2x32xf32>
    %523 = arith.mulf %507, %515 : vector<2x32xf32>
    %524 = arith.addf %522, %523 : vector<2x32xf32>
    %525 = math.tanh %524 : vector<2x32xf32>
    %526 = arith.mulf %521, %525 : vector<2x32xf32>
    %527 = vector.extract_strided_slice %408 {offsets = [8, 0], sizes = [2, 128], strides = [1, 1]} : vector<16x128xf32> to vector<2x128xf32>
    %528 = arith.truncf %526 : vector<2x32xf32> to vector<2x32xbf16>
    %cst_128 = arith.constant dense<0.000000e+00> : vector<2x128xf32>
    %529 = tpu.matmul %528, %146, %cst_128 {dimension_numbers = #tpu.dot_dimension_numbers<[1], [0], [0], [1], [0, 0, 1, 1], [], []>} : vector<2x32xbf16>, vector<32x128xbf16>, vector<2x128xf32> -> vector<2x128xf32>
    %530 = arith.addf %527, %529 : vector<2x128xf32>
    %531 = vector.extract_strided_slice %530 {offsets = [0, 0], sizes = [2, 32], strides = [1, 1]} : vector<2x128xf32> to vector<2x32xf32>
    %532 = arith.negf %531 : vector<2x32xf32>
    %533 = math.exp %532 : vector<2x32xf32>
    %cst_129 = arith.constant 1.000000e+00 : f32
    %534 = vector.broadcast %cst_129 : f32 to vector<2x32xf32>
    %535 = arith.addf %534, %533 : vector<2x32xf32>
    %536 = arith.divf %534, %535 : vector<2x32xf32>
    %537 = vector.extract_strided_slice %530 {offsets = [0, 32], sizes = [2, 32], strides = [1, 1]} : vector<2x128xf32> to vector<2x32xf32>
    %538 = arith.negf %537 : vector<2x32xf32>
    %539 = math.exp %538 : vector<2x32xf32>
    %cst_130 = arith.constant 1.000000e+00 : f32
    %540 = vector.broadcast %cst_130 : f32 to vector<2x32xf32>
    %541 = arith.addf %540, %539 : vector<2x32xf32>
    %542 = arith.divf %540, %541 : vector<2x32xf32>
    %543 = vector.extract_strided_slice %530 {offsets = [0, 64], sizes = [2, 32], strides = [1, 1]} : vector<2x128xf32> to vector<2x32xf32>
    %544 = math.tanh %543 : vector<2x32xf32>
    %545 = vector.extract_strided_slice %530 {offsets = [0, 96], sizes = [2, 32], strides = [1, 1]} : vector<2x128xf32> to vector<2x32xf32>
    %546 = arith.negf %545 : vector<2x32xf32>
    %547 = math.exp %546 : vector<2x32xf32>
    %cst_131 = arith.constant 1.000000e+00 : f32
    %548 = vector.broadcast %cst_131 : f32 to vector<2x32xf32>
    %549 = arith.addf %548, %547 : vector<2x32xf32>
    %550 = arith.divf %548, %549 : vector<2x32xf32>
    %551 = arith.mulf %542, %524 : vector<2x32xf32>
    %552 = arith.mulf %536, %544 : vector<2x32xf32>
    %553 = arith.addf %551, %552 : vector<2x32xf32>
    %554 = math.tanh %553 : vector<2x32xf32>
    %555 = arith.mulf %550, %554 : vector<2x32xf32>
    %556 = vector.extract_strided_slice %408 {offsets = [10, 0], sizes = [2, 128], strides = [1, 1]} : vector<16x128xf32> to vector<2x128xf32>
    %557 = arith.truncf %555 : vector<2x32xf32> to vector<2x32xbf16>
    %cst_132 = arith.constant dense<0.000000e+00> : vector<2x128xf32>
    %558 = tpu.matmul %557, %146, %cst_132 {dimension_numbers = #tpu.dot_dimension_numbers<[1], [0], [0], [1], [0, 0, 1, 1], [], []>} : vector<2x32xbf16>, vector<32x128xbf16>, vector<2x128xf32> -> vector<2x128xf32>
    %559 = arith.addf %556, %558 : vector<2x128xf32>
    %560 = vector.extract_strided_slice %559 {offsets = [0, 0], sizes = [2, 32], strides = [1, 1]} : vector<2x128xf32> to vector<2x32xf32>
    %561 = arith.negf %560 : vector<2x32xf32>
    %562 = math.exp %561 : vector<2x32xf32>
    %cst_133 = arith.constant 1.000000e+00 : f32
    %563 = vector.broadcast %cst_133 : f32 to vector<2x32xf32>
    %564 = arith.addf %563, %562 : vector<2x32xf32>
    %565 = arith.divf %563, %564 : vector<2x32xf32>
    %566 = vector.extract_strided_slice %559 {offsets = [0, 32], sizes = [2, 32], strides = [1, 1]} : vector<2x128xf32> to vector<2x32xf32>
    %567 = arith.negf %566 : vector<2x32xf32>
    %568 = math.exp %567 : vector<2x32xf32>
    %cst_134 = arith.constant 1.000000e+00 : f32
    %569 = vector.broadcast %cst_134 : f32 to vector<2x32xf32>
    %570 = arith.addf %569, %568 : vector<2x32xf32>
    %571 = arith.divf %569, %570 : vector<2x32xf32>
    %572 = vector.extract_strided_slice %559 {offsets = [0, 64], sizes = [2, 32], strides = [1, 1]} : vector<2x128xf32> to vector<2x32xf32>
    %573 = math.tanh %572 : vector<2x32xf32>
    %574 = vector.extract_strided_slice %559 {offsets = [0, 96], sizes = [2, 32], strides = [1, 1]} : vector<2x128xf32> to vector<2x32xf32>
    %575 = arith.negf %574 : vector<2x32xf32>
    %576 = math.exp %575 : vector<2x32xf32>
    %cst_135 = arith.constant 1.000000e+00 : f32
    %577 = vector.broadcast %cst_135 : f32 to vector<2x32xf32>
    %578 = arith.addf %577, %576 : vector<2x32xf32>
    %579 = arith.divf %577, %578 : vector<2x32xf32>
    %580 = arith.mulf %571, %553 : vector<2x32xf32>
    %581 = arith.mulf %565, %573 : vector<2x32xf32>
    %582 = arith.addf %580, %581 : vector<2x32xf32>
    %583 = math.tanh %582 : vector<2x32xf32>
    %584 = arith.mulf %579, %583 : vector<2x32xf32>
    %585 = vector.extract_strided_slice %408 {offsets = [12, 0], sizes = [2, 128], strides = [1, 1]} : vector<16x128xf32> to vector<2x128xf32>
    %586 = arith.truncf %584 : vector<2x32xf32> to vector<2x32xbf16>
    %cst_136 = arith.constant dense<0.000000e+00> : vector<2x128xf32>
    %587 = tpu.matmul %586, %146, %cst_136 {dimension_numbers = #tpu.dot_dimension_numbers<[1], [0], [0], [1], [0, 0, 1, 1], [], []>} : vector<2x32xbf16>, vector<32x128xbf16>, vector<2x128xf32> -> vector<2x128xf32>
    %588 = arith.addf %585, %587 : vector<2x128xf32>
    %589 = vector.extract_strided_slice %588 {offsets = [0, 0], sizes = [2, 32], strides = [1, 1]} : vector<2x128xf32> to vector<2x32xf32>
    %590 = arith.negf %589 : vector<2x32xf32>
    %591 = math.exp %590 : vector<2x32xf32>
    %cst_137 = arith.constant 1.000000e+00 : f32
    %592 = vector.broadcast %cst_137 : f32 to vector<2x32xf32>
    %593 = arith.addf %592, %591 : vector<2x32xf32>
    %594 = arith.divf %592, %593 : vector<2x32xf32>
    %595 = vector.extract_strided_slice %588 {offsets = [0, 32], sizes = [2, 32], strides = [1, 1]} : vector<2x128xf32> to vector<2x32xf32>
    %596 = arith.negf %595 : vector<2x32xf32>
    %597 = math.exp %596 : vector<2x32xf32>
    %cst_138 = arith.constant 1.000000e+00 : f32
    %598 = vector.broadcast %cst_138 : f32 to vector<2x32xf32>
    %599 = arith.addf %598, %597 : vector<2x32xf32>
    %600 = arith.divf %598, %599 : vector<2x32xf32>
    %601 = vector.extract_strided_slice %588 {offsets = [0, 64], sizes = [2, 32], strides = [1, 1]} : vector<2x128xf32> to vector<2x32xf32>
    %602 = math.tanh %601 : vector<2x32xf32>
    %603 = vector.extract_strided_slice %588 {offsets = [0, 96], sizes = [2, 32], strides = [1, 1]} : vector<2x128xf32> to vector<2x32xf32>
    %604 = arith.negf %603 : vector<2x32xf32>
    %605 = math.exp %604 : vector<2x32xf32>
    %cst_139 = arith.constant 1.000000e+00 : f32
    %606 = vector.broadcast %cst_139 : f32 to vector<2x32xf32>
    %607 = arith.addf %606, %605 : vector<2x32xf32>
    %608 = arith.divf %606, %607 : vector<2x32xf32>
    %609 = arith.mulf %600, %582 : vector<2x32xf32>
    %610 = arith.mulf %594, %602 : vector<2x32xf32>
    %611 = arith.addf %609, %610 : vector<2x32xf32>
    %612 = math.tanh %611 : vector<2x32xf32>
    %613 = arith.mulf %608, %612 : vector<2x32xf32>
    %614 = vector.extract_strided_slice %408 {offsets = [14, 0], sizes = [2, 128], strides = [1, 1]} : vector<16x128xf32> to vector<2x128xf32>
    %615 = arith.truncf %613 : vector<2x32xf32> to vector<2x32xbf16>
    %cst_140 = arith.constant dense<0.000000e+00> : vector<2x128xf32>
    %616 = tpu.matmul %615, %146, %cst_140 {dimension_numbers = #tpu.dot_dimension_numbers<[1], [0], [0], [1], [0, 0, 1, 1], [], []>} : vector<2x32xbf16>, vector<32x128xbf16>, vector<2x128xf32> -> vector<2x128xf32>
    %617 = arith.addf %614, %616 : vector<2x128xf32>
    %618 = vector.extract_strided_slice %617 {offsets = [0, 0], sizes = [2, 32], strides = [1, 1]} : vector<2x128xf32> to vector<2x32xf32>
    %619 = arith.negf %618 : vector<2x32xf32>
    %620 = math.exp %619 : vector<2x32xf32>
    %cst_141 = arith.constant 1.000000e+00 : f32
    %621 = vector.broadcast %cst_141 : f32 to vector<2x32xf32>
    %622 = arith.addf %621, %620 : vector<2x32xf32>
    %623 = arith.divf %621, %622 : vector<2x32xf32>
    %624 = vector.extract_strided_slice %617 {offsets = [0, 32], sizes = [2, 32], strides = [1, 1]} : vector<2x128xf32> to vector<2x32xf32>
    %625 = arith.negf %624 : vector<2x32xf32>
    %626 = math.exp %625 : vector<2x32xf32>
    %cst_142 = arith.constant 1.000000e+00 : f32
    %627 = vector.broadcast %cst_142 : f32 to vector<2x32xf32>
    %628 = arith.addf %627, %626 : vector<2x32xf32>
    %629 = arith.divf %627, %628 : vector<2x32xf32>
    %630 = vector.extract_strided_slice %617 {offsets = [0, 64], sizes = [2, 32], strides = [1, 1]} : vector<2x128xf32> to vector<2x32xf32>
    %631 = math.tanh %630 : vector<2x32xf32>
    %632 = vector.extract_strided_slice %617 {offsets = [0, 96], sizes = [2, 32], strides = [1, 1]} : vector<2x128xf32> to vector<2x32xf32>
    %633 = arith.negf %632 : vector<2x32xf32>
    %634 = math.exp %633 : vector<2x32xf32>
    %cst_143 = arith.constant 1.000000e+00 : f32
    %635 = vector.broadcast %cst_143 : f32 to vector<2x32xf32>
    %636 = arith.addf %635, %634 : vector<2x32xf32>
    %637 = arith.divf %635, %636 : vector<2x32xf32>
    %638 = arith.mulf %629, %611 : vector<2x32xf32>
    %639 = arith.mulf %623, %631 : vector<2x32xf32>
    %640 = arith.addf %638, %639 : vector<2x32xf32>
    %641 = math.tanh %640 : vector<2x32xf32>
    %642 = arith.mulf %637, %641 : vector<2x32xf32>
    %643 = tpu.concatenate %439, %468, %497, %526, %555, %584, %613, %642 in 0 : vector<2x32xf32>, vector<2x32xf32>, vector<2x32xf32>, vector<2x32xf32>, vector<2x32xf32>, vector<2x32xf32>, vector<2x32xf32>, vector<2x32xf32> -> vector<16x32xf32>
    %644 = arith.truncf %643 : vector<16x32xf32> to vector<16x32xbf16>
    %cst_144 = arith.constant dense<0.000000e+00> : vector<16x8xf32>
    %645 = tpu.matmul %644, %148, %cst_144 {dimension_numbers = #tpu.dot_dimension_numbers<[1], [0], [0], [1], [0, 0, 1, 1], [], []>} : vector<16x32xbf16>, vector<32x8xbf16>, vector<16x8xf32> -> vector<16x8xf32>
    %646 = vector.broadcast %149 : vector<1x8xf32> to vector<16x8xf32>
    %647 = arith.addf %645, %646 : vector<16x8xf32>
    %c0_145 = arith.constant 0 : index
    %c0_146 = arith.constant 0 : index
    %648 = vector.load %arg22[%c0_145, %c0_146] : memref<16x8xf32, #tpu.memory_space<vmem>>, vector<16x8xf32>
    tpu.vector_store %arg22[%c0_145, %c0_146], %647 {strides = array<i32>} : memref<16x8xf32, #tpu.memory_space<vmem>>, vector<16x8xf32>,
    return
  }
  func.func @transform_0(%arg0: i32) -> (i32, i32) {
    %c0_i32 = arith.constant 0 : i32
    %c0_i32_0 = arith.constant 0 : i32
    %c0_i32_1 = arith.constant 0 : i32
    return %c0_i32, %c0_i32_0 : i32, i32
  }
  func.func @transform_1(%arg0: i32) -> (i32, i32) {
    %c0_i32 = arith.constant 0 : i32
    %c0_i32_0 = arith.constant 0 : i32
    %c0_i32_1 = arith.constant 0 : i32
    return %c0_i32, %c0_i32_0 : i32, i32
  }
  func.func @transform_2(%arg0: i32) -> (i32, i32) {
    %c0_i32 = arith.constant 0 : i32
    %c0_i32_0 = arith.constant 0 : i32
    %c0_i32_1 = arith.constant 0 : i32
    return %c0_i32, %c0_i32_0 : i32, i32
  }
  func.func @transform_3(%arg0: i32) -> (i32, i32) {
    %c0_i32 = arith.constant 0 : i32
    %c0_i32_0 = arith.constant 0 : i32
    %c0_i32_1 = arith.constant 0 : i32
    return %c0_i32, %c0_i32_0 : i32, i32
  }
  func.func @transform_4(%arg0: i32) -> (i32, i32) {
    %c0_i32 = arith.constant 0 : i32
    %c0_i32_0 = arith.constant 0 : i32
    %c0_i32_1 = arith.constant 0 : i32
    return %c0_i32, %c0_i32_0 : i32, i32
  }
  func.func @transform_5(%arg0: i32) -> (i32, i32) {
    %c0_i32 = arith.constant 0 : i32
    %c0_i32_0 = arith.constant 0 : i32
    %c0_i32_1 = arith.constant 0 : i32
    return %c0_i32, %c0_i32_0 : i32, i32
  }
  func.func @transform_6(%arg0: i32) -> (i32, i32) {
    %c0_i32 = arith.constant 0 : i32
    %c0_i32_0 = arith.constant 0 : i32
    %c0_i32_1 = arith.constant 0 : i32
    return %c0_i32, %c0_i32_0 : i32, i32
  }
  func.func @transform_7(%arg0: i32) -> (i32, i32) {
    %c0_i32 = arith.constant 0 : i32
    %c0_i32_0 = arith.constant 0 : i32
    %c0_i32_1 = arith.constant 0 : i32
    return %c0_i32, %c0_i32_0 : i32, i32
  }
  func.func @transform_8(%arg0: i32) -> (i32, i32) {
    %c0_i32 = arith.constant 0 : i32
    %c0_i32_0 = arith.constant 0 : i32
    %c0_i32_1 = arith.constant 0 : i32
    return %c0_i32, %c0_i32_0 : i32, i32
  }
  func.func @transform_9(%arg0: i32) -> (i32, i32) {
    %c0_i32 = arith.constant 0 : i32
    %c0_i32_0 = arith.constant 0 : i32
    %c0_i32_1 = arith.constant 0 : i32
    return %c0_i32, %c0_i32_0 : i32, i32
  }
  func.func @transform_10(%arg0: i32) -> (i32, i32) {
    %c0_i32 = arith.constant 0 : i32
    %c0_i32_0 = arith.constant 0 : i32
    %c0_i32_1 = arith.constant 0 : i32
    return %c0_i32, %c0_i32_0 : i32, i32
  }
  func.func @transform_11(%arg0: i32) -> (i32, i32) {
    %c0_i32 = arith.constant 0 : i32
    %c0_i32_0 = arith.constant 0 : i32
    %c0_i32_1 = arith.constant 0 : i32
    return %c0_i32, %c0_i32_0 : i32, i32
  }
  func.func @transform_12(%arg0: i32) -> (i32, i32) {
    %c0_i32 = arith.constant 0 : i32
    %c0_i32_0 = arith.constant 0 : i32
    %c0_i32_1 = arith.constant 0 : i32
    return %c0_i32, %c0_i32_0 : i32, i32
  }
  func.func @transform_13(%arg0: i32) -> (i32, i32) {
    %c0_i32 = arith.constant 0 : i32
    %c0_i32_0 = arith.constant 0 : i32
    %c0_i32_1 = arith.constant 0 : i32
    return %c0_i32, %c0_i32_0 : i32, i32
  }
  func.func @transform_14(%arg0: i32) -> (i32, i32) {
    %c0_i32 = arith.constant 0 : i32
    %c0_i32_0 = arith.constant 0 : i32
    %c0_i32_1 = arith.constant 0 : i32
    return %c0_i32, %c0_i32_0 : i32, i32
  }
  func.func @transform_15(%arg0: i32) -> (i32, i32) {
    %c0_i32 = arith.constant 0 : i32
    %c0_i32_0 = arith.constant 0 : i32
    %c0_i32_1 = arith.constant 0 : i32
    return %c0_i32, %c0_i32_0 : i32, i32
  }
  func.func @transform_16(%arg0: i32) -> (i32, i32) {
    %c0_i32 = arith.constant 0 : i32
    %c0_i32_0 = arith.constant 0 : i32
    %c0_i32_1 = arith.constant 0 : i32
    return %c0_i32, %c0_i32_0 : i32, i32
  }
  func.func @transform_17(%arg0: i32) -> (i32, i32) {
    %c0_i32 = arith.constant 0 : i32
    %c0_i32_0 = arith.constant 0 : i32
    %c0_i32_1 = arith.constant 0 : i32
    return %c0_i32, %c0_i32_0 : i32, i32
  }
  func.func @transform_18(%arg0: i32) -> (i32, i32) {
    %c0_i32 = arith.constant 0 : i32
    %c0_i32_0 = arith.constant 0 : i32
    %c0_i32_1 = arith.constant 0 : i32
    return %c0_i32, %c0_i32_0 : i32, i32
  }
  func.func @transform_19(%arg0: i32) -> (i32, i32) {
    %c0_i32 = arith.constant 0 : i32
    %c0_i32_0 = arith.constant 0 : i32
    %c0_i32_1 = arith.constant 0 : i32
    return %c0_i32, %c0_i32_0 : i32, i32
  }
  func.func @transform_20(%arg0: i32) -> (i32, i32) {
    %c0_i32 = arith.constant 0 : i32
    %c0_i32_0 = arith.constant 0 : i32
    %c0_i32_1 = arith.constant 0 : i32
    return %c0_i32, %c0_i32_0 : i32, i32
  }
  func.func @transform_21(%arg0: i32) -> (i32, i32) {
    %c0_i32 = arith.constant 0 : i32
    %c0_i32_0 = arith.constant 0 : i32
    %c0_i32_1 = arith.constant 0 : i32
    return %c0_i32, %c0_i32_0 : i32, i32
  }
}

</mosaic_0001>

<bundles_post_ra>
// kernel: convlstm_forward.1
= control target key start
LH: loop header
LB: loop body
LE: loop exit
PB: predicated region body
PF: predicated region fallthrough
CT: control target
= control target key end

     0   :  { %vm108_vm0 = vcmask 1043456   ;;  %v6101_v2 = vmov 0.0   ;;  %vm103_vm1 = vcmask 31744   ;;  %vm83_vm2 = vcmask 1040384   ;;  %s7658_s1 = inlined_call_operand.vmem [shape: f32[12,512], index: 1, kind: input, shape index: {}]   ;;  %s7659_s0 = inlined_call_operand.vmem [shape: f32[16,4], index: 0, kind: input, shape index: {}]   ;;  %s7660_s4 = inlined_call_operand.vmem [shape: bf16[1536,256], index: 4, kind: input, shape index: {}]   ;;  %s7661_s3 = inlined_call_operand.vmem [shape: f32[1,512], index: 3, kind: input, shape index: {}]   ;;  %s7662_s2 = inlined_call_operand.vmem [shape: f32[1,512], index: 2, kind: input, shape index: {}]   ;;  %s7663_s7 = inlined_call_operand.vmem [shape: bf16[768,128], index: 7, kind: input, shape index: {}]   ;;  %s7664_s5 = inlined_call_operand.vmem [shape: f32[1,256], index: 5, kind: input, shape index: {}]   ;;  %s7665_s6 = inlined_call_operand.vmem [shape: f32[1,256], index: 6, kind: input, shape index: {}]   ;;  %s7666_s10 = inlined_call_operand.vmem [shape: bf16[384,64], index: 10, kind: input, shape index: {}]   ;;  %s7667_s8 = inlined_call_operand.vmem [shape: f32[1,128], index: 8, kind: input, shape index: {}]   ;;  %s7668_s9 = inlined_call_operand.vmem [shape: f32[1,128], index: 9, kind: input, shape index: {}]   ;;  %s7669_s13 = inlined_call_operand.vmem [shape: bf16[64,128], index: 13, kind: input, shape index: {}]   ;;  %s7670_s14 = inlined_call_operand.vmem [shape: bf16[32,128], index: 14, kind: input, shape index: {}]   ;;  %s7671_s11 = inlined_call_operand.vmem [shape: f32[1,64], index: 11, kind: input, shape index: {}]   ;;  %s7672_s12 = inlined_call_operand.vmem [shape: f32[1,64], index: 12, kind: input, shape index: {}]   ;;  %s7673_s15 = inlined_call_operand.vmem [shape: f32[1,128], index: 15, kind: input, shape index: {}]   ;;  %s7674_s16 = inlined_call_operand.vmem [shape: bf16[32,128], index: 16, kind: input, shape index: {}]   ;;  %s7675_s17 = inlined_call_operand.vmem [shape: bf16[32,128], index: 17, kind: input, shape index: {}]   ;;  %s7676_s18 = inlined_call_operand.vmem [shape: f32[1,128], index: 18, kind: input, shape index: {}]   ;;  %s7677_s19 = inlined_call_operand.vmem [shape: bf16[32,8], index: 19, kind: input, shape index: {}]   ;;  %s7678_s20 = inlined_call_operand.vmem [shape: f32[1,8], index: 20, kind: input, shape index: {}]   ;;  %s7679_s21 = inlined_call_operand.vmem [shape: f32[16,8], index: 21, kind: output, shape index: {}]  }
   0x1   :  { %7684 = sst [smem:[#allocation2_spill]] %s7658_s1  ;;  %181 = vmatprep.mubr.f32.mxu1 %v6101_v2  ;;  %vm89_vm3 = vcmask 1046528   ;;  %v715_v47 = vlaneseq  ;;  %vm6484_vm4 = vmneg %vm83_vm2  ;;  %vm6103_vm5 = vmmov 1   ;;  %vm6104_vm8 = vmmov 0   ;;  %s6107_s1 = smov 32  }
   0x2   :  { %7685 = sst [smem:[#allocation3_spill]] %s7659_s0  ;;  %s7690_s26 = sld [smem:[#allocation2_spill]]  ;;  %vm6506_vm6 = vmpackc.low %vm6103_vm5, %vm6484_vm4  ;;  %vm3256_vm9 = vcmask 523264   ;;  %vm3420_vm10 = vcmask 261120   ;;  %vm4045_vm11 = vcmask 1041408   ;;  %vm4048_vm12 = vcmask 1045504  }
   0x3   :  { %7686 = sst [smem:[#allocation4_spill]] %s7660_s4  ;;  %s7691_s22 = sld [smem:[#allocation3_spill]]  ;;  %v6371_v51 = vshrl.u32 %v715_v47, 7  ;;  %vm6848_vm7 = vmpackc.low %vm89_vm3, %vm6103_vm5  ;;  %vm4816_vm13 = vcmask 64512  }
   0x4   :  { %7687 = sst [smem:[#allocation5_spill]] %s7661_s3  ;;  %s7692_s30 = sld [smem:[#allocation4_spill]] }
   0x5   :  { %7688 = sst [smem:[#allocation6_spill]] %s7662_s2  ;;  %s7693_s29 = sld [smem:[#allocation5_spill]]  ;;  %v747_v53 = vsub.s32 2, %v6371_v51 }
   0x6   :  { %7689 = sst [smem:[#allocation7_spill]] %s7663_s7 }
   0x7   :  { %s7701_s2 = sld [smem:[#allocation7_spill]] }
   0x8   :  { %v72_v0 = vld [vmem:[%s7690_s26 + $0x8] sm:$0xff]  ;;  %v71_v1 = vld [vmem:[%s7690_s26] sm:$0xff]  ;;  %v74_v5 = vld [vmem:[%s7690_s26 + $0x18] sm:$0xff] }
   0x9   :  { %v100_v3 = vrot.slane %v72_v0, 4  ;;  %v99_v4 = vrot.slane %v71_v1, 4  ;;  %v73_v6 = vld [vmem:[%s7690_s26 + $0x10] sm:$0xff]  ;;  %v69_v7 = vld [vmem:[%s7691_s22] sm:$0xff]  ;;  %v102_v8 = vrot.slane %v74_v5, 4  ;;  %v70_v10 = vld [vmem:[%s7691_s22 + $0x8] sm:$0xff] }
   0xa   :  { %v101_v9 = vrot.slane %v73_v6, 4  ;;  %v84_v11 = vrot.slane %v69_v7, 7  ;;  %v85_v12 = vrot.slane %v70_v10, 7  ;;  %v76_v14 = vld [vmem:[%s7690_s26 + $0x28] sm:$0xf]  ;;  %v90_v18 = vrot.slane %v69_v7, 1 }
   0xb   :  { %4823 = vmatprep.subr.msk.mxu1 %vm108_vm0, %v100_v3  ;;  %v75_v16 = vld [vmem:[%s7690_s26 + $0x20] sm:$0xf]  ;;  %v78_v17 = vld [vmem:[%s7690_s26 + $0x38] sm:$0xf]  ;;  %v91_v19 = vrot.slane %v70_v10, 1 }
   0xc   :  { %4824 = vmatpush1.msk.msra.mxu1 %vm108_vm0, %v99_v4  ;;  %v88_v13 = vsel %vm83_vm2, 0.0, %v84_v11  ;;  %v86_v15 = vsel %vm83_vm2, %v84_v11, %v85_v12  ;;  %v77_v21 = vld [vmem:[%s7690_s26 + $0x30] sm:$0xf]  ;;  %v5585_v23 = vld [vmem:[%s7692_s30 + $0x4] ss:$8 sps:$4 sm:$0xff]   ;;  %s7694_s26 = sld [smem:[#allocation6_spill]] }
   0xd   :  { %4825 = vmatmul.mubr.msk.f32.vlgmr.msra.gmra.mrb[0].mxu1 %vm103_vm1, %v69_v7  ;;  %4827 = vmatprep.subr.msk.mxu1 %vm108_vm0, %v102_v8  ;;  %v92_v20 = vsel %vm89_vm3, %v90_v18, %v91_v19  ;;  %v94_v22 = vsel %vm89_vm3, %v91_v19, 0.0  ;;  %v5587_v24 = vld [vmem:[%s7692_s30] ss:$8 sps:$4 sm:$0xff]   ;;  %v5588_v25 = vld [vmem:[%s7692_s30 + $0x14] ss:$8 sps:$4 sm:$0xff]  }
   0xe   :  { %4828 = vmatpush1.msk.msra.mxu1 %vm108_vm0, %v101_v9  ;;  %187 = vmatprep.mubr.f32.mxu1 %v6101_v2  ;;  %v5590_v26 = vld [vmem:[%s7692_s30 + $0x10] ss:$8 sps:$4 sm:$0xff]   ;;  %v5591_v27 = vld [vmem:[%s7692_s30 + $0x24] ss:$8 sps:$4 sm:$0xff]   ;;  %v5593_v28 = vld [vmem:[%s7692_s30 + $0x20] ss:$8 sps:$4 sm:$0xff]  }
   0xf   :  { %4831 = vmatprep.subr.msk.mxu1 %vm108_vm0, %v72_v0  ;;  %2024 = vmatprep.subr.bf16.mxu0 %v5585_v23  ;;  %v5594_v29 = vld [vmem:[%s7692_s30 + $0x34] ss:$8 sps:$4 sm:$0xff]   ;;  %v5596_v30 = vld [vmem:[%s7692_s30 + $0x30] ss:$8 sps:$4 sm:$0xff]   ;;  %v5597_v31 = vld [vmem:[%s7692_s30 + $0x44] ss:$8 sps:$4 sm:$0xff]  }
  0x10   :  { %2025 = vmatpush1.bf16.msra.mxu0 %v5587_v24  ;;  %v5599_v32 = vld [vmem:[%s7692_s30 + $0x40] ss:$8 sps:$4 sm:$0xff]   ;;  %v5600_v33 = vld [vmem:[%s7692_s30 + $0x54] ss:$8 sps:$4 sm:$0xff]   ;;  %v5602_v34 = vld [vmem:[%s7692_s30 + $0x50] ss:$8 sps:$4 sm:$0xff]  }
  0x11   :  { %4826 = vmatmul.mubr.msk.f32.gmra.mrb[2].mxu1 %vm103_vm1, %v70_v10  ;;  %2026 = vmatprep.subr.bf16.mxu0 %v5588_v25  ;;  %v5603_v35 = vld [vmem:[%s7692_s30 + $0x64] ss:$8 sps:$4 sm:$0xff]   ;;  %v5605_v36 = vld [vmem:[%s7692_s30 + $0x60] ss:$8 sps:$4 sm:$0xff]   ;;  %v5606_v37 = vld [vmem:[%s7692_s30 + $0x74] ss:$8 sps:$4 sm:$0xff]  }
  0x12   :  { %258 = vmatprep.mubr.f32.mxu1 %v6101_v2  ;;  %v5608_v38 = vld [vmem:[%s7692_s30 + $0x70] ss:$8 sps:$4 sm:$0xff]   ;;  %v5609_v39 = vld [vmem:[%s7692_s30 + $0x84] ss:$8 sps:$4 sm:$0xff]   ;;  %v5611_v40 = vld [vmem:[%s7692_s30 + $0x80] ss:$8 sps:$4 sm:$0xff]  }
  0x13   :  { %v5612_v41 = vld [vmem:[%s7692_s30 + $0x94] ss:$8 sps:$4 sm:$0xff]   ;;  %v5614_v42 = vld [vmem:[%s7692_s30 + $0x90] ss:$8 sps:$4 sm:$0xff]   ;;  %v5615_v43 = vld [vmem:[%s7692_s30 + $0xa4] ss:$8 sps:$4 sm:$0xff]  }
  0x14   :  { %2027 = vmatpush1.bf16.msra.mxu0 %v5590_v26  ;;  %v5617_v44 = vld [vmem:[%s7692_s30 + $0xa0] ss:$8 sps:$4 sm:$0xff]   ;;  %v5618_v45 = vld [vmem:[%s7692_s30 + $0xb4] ss:$8 sps:$4 sm:$0xff]   ;;  %v5620_v46 = vld [vmem:[%s7692_s30 + $0xb0] ss:$8 sps:$4 sm:$0xff]  }
  0x15   :  { %4829 = vmatmul.mubr.msk.f32.vlgmr.msra.gmra.mrb[4].mxu1 %vm103_vm1, %v69_v7  ;;  %2028 = vmatprep.subr.bf16.mxu0 %v5591_v27  ;;  %v5621_v48 = vld [vmem:[%s7692_s30 + $0xc4] ss:$8 sps:$4 sm:$0xff]   ;;  %v5623_v49 = vld [vmem:[%s7692_s30 + $0xc0] ss:$8 sps:$4 sm:$0xff]   ;;  %v5624_v52 = vld [vmem:[%s7692_s30 + $0xd4] ss:$8 sps:$4 sm:$0xff]  }
  0x16   :  { %4832 = vmatpush1.msk.msra.mxu1 %vm108_vm0, %v71_v1  ;;  %264 = vmatprep.mubr.f32.mxu1 %v6101_v2  ;;  %v6369_v50 = vld [vmem:[%s7693_s29] sm:$0xf]  ;;  %v5626_v54 = vld [vmem:[%s7692_s30 + $0xd0] ss:$8 sps:$4 sm:$0xff]   ;;  %v5627_v56 = vld [vmem:[%s7692_s30 + $0xe4] ss:$8 sps:$4 sm:$0xff]  }
  0x17   :  { %4835 = vmatprep.subr.msk.mxu1 %vm108_vm0, %v74_v5  ;;  %v6383_v55 = vrot.slane %v6369_v50, %v747_v53  ;;  %v5629_v57 = vld [vmem:[%s7692_s30 + $0xe0] ss:$8 sps:$4 sm:$0xff]   ;;  %v5630_v58 = vld [vmem:[%s7692_s30 + $0xf4] ss:$8 sps:$4 sm:$0xff]   ;;  %v5632_v59 = vld [vmem:[%s7692_s30 + $0xf0] ss:$8 sps:$4 sm:$0xff]  }
  0x18   :  { %2029 = vmatpush1.bf16.msra.mxu0 %v5593_v28  ;;  %v5635_v60 = vld [vmem:[%s7692_s30 + $0x104] ss:$8 sps:$4 sm:$0xff]  }
  0x19   :  { %4830 = vmatmul.mubr.msk.f32.gmra.mrb[6].mxu1 %vm103_vm1, %v70_v10  ;;  %2030 = vmatprep.subr.bf16.mxu0 %v5594_v29 }
  0x1a   :  { %348 = vmatprep.mubr.f32.mxu1 %v6101_v2 }
  0x1c   :  { %2031 = vmatpush1.bf16.msra.mxu0 %v5596_v30 }
  0x1d   :  { %4833 = vmatmul.mubr.msk.f32.vlgmr.msra.gmra.mrb[0].mxu1 %vm103_vm1, %v88_v13  ;;  %2032 = vmatprep.subr.bf16.mxu0 %v5597_v31 }
  0x1e   :  { %4836 = vmatpush1.msk.msra.mxu1 %vm108_vm0, %v73_v6  ;;  %354 = vmatprep.mubr.f32.mxu1 %v6101_v2 }
  0x1f   :  { %4839 = vmatprep.subr.msk.mxu1 %vm108_vm0, %v76_v14 }
  0x20   :  { %2033 = vmatpush1.bf16.msra.mxu0 %v5599_v32 }
  0x21   :  { %4834 = vmatmul.mubr.msk.f32.gmra.mrb[2].mxu1 %vm103_vm1, %v86_v15  ;;  %2034 = vmatprep.subr.bf16.mxu0 %v5600_v33 }
  0x22   :  { %425 = vmatprep.mubr.f32.mxu1 %v6101_v2 }
  0x24   :  { %2035 = vmatpush1.bf16.msra.mxu0 %v5602_v34 }
  0x25   :  { %4837 = vmatmul.mubr.msk.f32.vlgmr.msra.gmra.mrb[4].mxu1 %vm103_vm1, %v88_v13  ;;  %2036 = vmatprep.subr.bf16.mxu0 %v5603_v35 }
  0x26   :  { %4840 = vmatpush1.msk.msra.mxu1 %vm108_vm0, %v75_v16  ;;  %431 = vmatprep.mubr.f32.mxu1 %v6101_v2 }
  0x27   :  { %4843 = vmatprep.subr.msk.mxu1 %vm108_vm0, %v78_v17 }
  0x28   :  { %2037 = vmatpush1.bf16.msra.mxu0 %v5605_v36 }
  0x29   :  { %4838 = vmatmul.mubr.msk.f32.gmra.mrb[6].mxu1 %vm103_vm1, %v86_v15  ;;  %2038 = vmatprep.subr.bf16.mxu0 %v5606_v37 }
  0x2a   :  { %519 = vmatprep.mubr.f32.mxu1 %v6101_v2 }
  0x2c   :  { %2039 = vmatpush1.bf16.msra.mxu0 %v5608_v38 }
  0x2d   :  { %4841 = vmatmul.mubr.msk.f32.vlgmr.msra.gmra.mrb[0].mxu1 %vm103_vm1, %v92_v20  ;;  %2040 = vmatprep.subr.bf16.mxu0 %v5609_v39 }
  0x2e   :  { %4844 = vmatpush1.msk.msra.mxu1 %vm108_vm0, %v77_v21  ;;  %525 = vmatprep.mubr.f32.mxu1 %v6101_v2 }
  0x30   :  { %2041 = vmatpush1.bf16.msra.mxu0 %v5611_v40 }
  0x31   :  { %4842 = vmatmul.mubr.msk.f32.gmra.mrb[2].mxu1 %vm103_vm1, %v94_v22  ;;  %2042 = vmatprep.subr.bf16.mxu0 %v5612_v41 }
  0x32   :  { %596 = vmatprep.mubr.f32.mxu1 %v6101_v2 }
  0x34   :  { %2043 = vmatpush1.bf16.msra.mxu0 %v5614_v42 }
  0x35   :  { %4845 = vmatmul.mubr.msk.f32.vlgmr.msra.gmra.mrb[4].mxu1 %vm103_vm1, %v92_v20  ;;  %2044 = vmatprep.subr.bf16.mxu0 %v5615_v43 }
  0x36   :  { %602 = vmatprep.mubr.f32.mxu1 %v6101_v2 }
  0x38   :  { %2045 = vmatpush1.bf16.msra.mxu0 %v5617_v44 }
  0x39   :  { %4846 = vmatmul.mubr.msk.f32.gmra.mrb[6].mxu1 %vm103_vm1, %v94_v22  ;;  %2046 = vmatprep.subr.bf16.mxu0 %v5618_v45 }
  0x3c   :  { %2047 = vmatpush1.bf16.msra.mxu0 %v5620_v46 }
  0x3d   :  { %2048 = vmatprep.subr.bf16.mxu0 %v5621_v48 }
  0x40   :  { %2049 = vmatpush1.bf16.msra.mxu0 %v5623_v49 }
  0x41   :  { %2050 = vmatprep.subr.bf16.mxu0 %v5624_v52 }
  0x44   :  { %2051 = vmatpush1.bf16.msra.mxu0 %v5626_v54 }
  0x45   :  { %2052 = vmatprep.subr.bf16.mxu0 %v5627_v56 }
  0x48   :  { %2053 = vmatpush1.bf16.msra.mxu0 %v5629_v57 }
  0x49   :  { %2054 = vmatprep.subr.bf16.mxu0 %v5630_v58 }
  0x4c   :  { %2055 = vmatpush1.bf16.msra.mxu0 %v5632_v59 }
  0x4d   :  { %2067 = vmatprep.subr.bf16.mxu0 %v5635_v60 }
 0x100   :  { %v521_v61 = vpop.f32.mrb[0].mxu1 }
 0x101   :  { %v523_v62 = vpop.f32.mrb[1].mxu1 }
 0x104   :  { %v527_v63 = vpop.f32.mrb[2].mxu1 }
 0x105   :  { %v617_v0 = vadd.f32 %v527_v63, %v521_v61  ;;  %v529_v1 = vpop.f32.mrb[3].mxu1 }
 0x106   :  { %v624_v3 = vadd.f32 %v529_v1, %v523_v62 }
 0x107   :  { %v618_v4 = vrot.slane %v617_v0, 4 }
 0x108   :  { %v625_v5 = vrot.slane %v624_v3, 4  ;;  %v598_v6 = vpop.f32.mrb[4].mxu1 }
 0x109   :  { %v619_v7 = vadd.f32 %v618_v4, %v617_v0  ;;  %v600_v8 = vpop.f32.mrb[5].mxu1 }
 0x10a   :  { %v626_v9 = vadd.f32 %v625_v5, %v624_v3 }
 0x10b   :  { %v620_v10 = vrot.slane %v619_v7, 2 }
 0x10c   :  { %v627_v11 = vrot.slane %v626_v9, 2  ;;  %v604_v12 = vpop.f32.mrb[6].mxu1 }
 0x10d   :  { %v621_v13 = vadd.f32 %v620_v10, %v619_v7  ;;  %v631_v14 = vadd.f32 %v604_v12, %v598_v6  ;;  %v606_v15 = vpop.f32.mrb[7].mxu1 }
 0x10e   :  { %v628_v16 = vadd.f32 %v627_v11, %v626_v9  ;;  %v638_v17 = vadd.f32 %v606_v15, %v600_v8 }
 0x10f   :  { %v622_v18 = vrot.slane %v621_v13, 1  ;;  %v632_v19 = vrot.slane %v631_v14, 4 }
 0x110   :  { %v629_v20 = vrot.slane %v628_v16, 1  ;;  %v639_v21 = vrot.slane %v638_v17, 4 }
 0x111   :  { %v623_v22 = vadd.f32 %v622_v18, %v621_v13  ;;  %v633_v23 = vadd.f32 %v632_v19, %v631_v14 }
 0x112   :  { %v630_v24 = vadd.f32 %v629_v20, %v628_v16  ;;  %v640_v25 = vadd.f32 %v639_v21, %v638_v17 }
 0x113   :  { %v646_v26 = vmul.f32 0.0625, %v623_v22  ;;  %v634_v27 = vrot.slane %v633_v23, 2 }
 0x114   :  { %v647_v28 = vmul.f32 0.0625, %v630_v24  ;;  %v641_v29 = vrot.slane %v640_v25, 2 }
 0x115   :  { %v6400_v30 = vsub.f32 %v521_v61, %v646_v26  ;;  %v6402_v31 = vsub.f32 %v527_v63, %v646_v26  ;;  %v635_v32 = vadd.f32 %v634_v27, %v633_v23 }
 0x116   :  { %v6404_v33 = vsub.f32 %v523_v62, %v647_v28  ;;  %v6406_v34 = vsub.f32 %v529_v1, %v647_v28  ;;  %v642_v35 = vadd.f32 %v641_v29, %v640_v25 }
 0x117   :  { %v658_v36 = vmul.f32 %v6400_v30, %v6400_v30  ;;  %v662_v37 = vmul.f32 %v6402_v31, %v6402_v31  ;;  %v636_v38 = vrot.slane %v635_v32, 1 }
 0x118   :  { %v659_v39 = vmul.f32 %v6404_v33, %v6404_v33  ;;  %v663_v40 = vmul.f32 %v6406_v34, %v6406_v34  ;;  %v643_v41 = vrot.slane %v642_v35, 1 }
 0x119   :  { %v666_v42 = vadd.f32 %v662_v37, %v658_v36  ;;  %v637_v43 = vadd.f32 %v636_v38, %v635_v32  ;;  %v6102_v36 = vmov 1966171168  }
 0x11a   :  { %v673_v44 = vadd.f32 %v663_v40, %v659_v39  ;;  %v644_v45 = vadd.f32 %v643_v41, %v642_v35  ;;  %v713_v37 = vunpack.c.l.s4 %v6102_v36  ;;  %v5940_v36 = vld [vmem:[%s7666_s10 + $0x98] sm:$0xff]  }
 0x11b   :  { %v667_v46 = vrot.slane %v666_v42, 4  ;;  %v648_v47 = vmul.f32 0.0625, %v637_v43 }
 0x11c   :  { %v674_v48 = vrot.slane %v673_v44, 4  ;;  %v649_v49 = vmul.f32 0.0625, %v644_v45  ;;  %v714_v40 = vunpack.c.0.s8 %v713_v37 }
 0x11d   :  { %v668_v52 = vadd.f32 %v667_v46, %v666_v42  ;;  %v6416_v54 = vsub.f32 %v598_v6, %v648_v47  ;;  %v6418_v56 = vsub.f32 %v604_v12, %v648_v47 }
 0x11e   :  { %v675_v57 = vadd.f32 %v674_v48, %v673_v44  ;;  %v6420_v58 = vsub.f32 %v600_v8, %v649_v49  ;;  %v6422_v59 = vsub.f32 %v606_v15, %v649_v49  ;;  %v6433_v42 = vsub.s32 %v714_v40, %v6371_v51  ;;  %v79_v48 = vld [vmem:[%s7694_s26] sm:$0xf] }
 0x11f   :  { %v669_v60 = vrot.slane %v668_v52, 2  ;;  %v660_v61 = vmul.f32 %v6416_v54, %v6416_v54  ;;  %v664_v62 = vmul.f32 %v6418_v56, %v6418_v56 }
 0x120   :  { %v676_v63 = vrot.slane %v675_v57, 2  ;;  %v661_v0 = vmul.f32 %v6420_v58, %v6420_v58  ;;  %v665_v1 = vmul.f32 %v6422_v59, %v6422_v59 }
 0x121   :  { %v670_v3 = vadd.f32 %v669_v60, %v668_v52  ;;  %v680_v4 = vadd.f32 %v664_v62, %v660_v61  ;;  %v6442_v52 = vsub.s32 0, %v6371_v51  ;;  %v6446_v60 = vsub.s32 1, %v6371_v51 }
 0x122   :  { %v677_v5 = vadd.f32 %v676_v63, %v675_v57  ;;  %v687_v6 = vadd.f32 %v665_v1, %v661_v0  ;;  %v751_v57 = vsub.s32 3, %v6371_v51 }
 0x123   :  { %v671_v7 = vrot.slane %v670_v3, 1  ;;  %v681_v8 = vrot.slane %v680_v4, 4  ;;  %v769_v62 = vrot.slane %v6369_v50, %v6442_v52 }
 0x124   :  { %v678_v9 = vrot.slane %v677_v5, 1  ;;  %v688_v10 = vrot.slane %v687_v6, 4  ;;  %v781_v63 = vrot.slane %v6369_v50, %v751_v57 }
 0x125   :  { %v672_v11 = vadd.f32 %v671_v7, %v670_v3  ;;  %v682_v12 = vadd.f32 %v681_v8, %v680_v4 }
 0x126   :  { %v679_v13 = vadd.f32 %v678_v9, %v677_v5  ;;  %v689_v14 = vadd.f32 %v688_v10, %v687_v6  ;;  %v773_v5 = vrot.slane %v6369_v50, %v6446_v60 }
 0x127   :  { %v694_v15 = vmul.f32 0.0625, %v672_v11  ;;  %v683_v16 = vrot.slane %v682_v12, 2 }
 0x128   :  { %v695_v17 = vmul.f32 0.0625, %v679_v13  ;;  %v690_v18 = vrot.slane %v689_v14, 2 }
 0x129   :  { %v698_v19 = vadd.f32 1e-05, %v694_v15  ;;  %v684_v20 = vadd.f32 %v683_v16, %v682_v12 }
 0x12a   :  { %v699_v21 = vadd.f32 1e-05, %v695_v17  ;;  %v691_v22 = vadd.f32 %v690_v18, %v689_v14 }
 0x12b   :  { %5957 = vrsqrt.f32 %v698_v19  ;;  %v685_v23 = vrot.slane %v684_v20, 1 }
 0x12c   :  { %5959 = vrsqrt.f32 %v699_v21  ;;  %v692_v24 = vrot.slane %v691_v22, 1 }
 0x12d   :  { %v686_v25 = vadd.f32 %v685_v23, %v684_v20 }
 0x12e   :  { %v693_v26 = vadd.f32 %v692_v24, %v691_v22 }
 0x12f   :  { %v696_v27 = vmul.f32 0.0625, %v686_v25 }
 0x130   :  { %v697_v28 = vmul.f32 0.0625, %v693_v26 }
 0x131   :  { %v700_v29 = vadd.f32 1e-05, %v696_v27 }
 0x132   :  { %v701_v32 = vadd.f32 1e-05, %v697_v28 }
 0x133   :  { %5961 = vrsqrt.f32 %v700_v29 }
 0x134   :  { %5963 = vrsqrt.f32 %v701_v32 }
 0x135   :  { %v5958_v35 = vpop.eup %5957 }
 0x136   :  { %v5960_v38 = vpop.eup %5959 }
 0x137   :  { %v710_v39 = vcombine.low %v5958_v35, %v5960_v38 }
 0x139   :  { %v718_v45 = vrot.slane %v710_v39, %v6433_v42 }
 0x13d   :  { %v5962_v41 = vpop.eup %5961 }
 0x13e   :  { %v5964_v43 = vpop.eup %5963 }
 0x13f   :  { %v711_v44 = vcombine.low %v5962_v41, %v5964_v43  ;;  %v5633_v41 = vld [vmem:[%s7692_s30 + $0x100] ss:$8 sps:$4 sm:$0xff]  }
 0x141   :  { %v725_v46 = vrot.slane %v711_v44, %v6433_v42 }
 0x143   :  { %v726_v47 = vcombine.low %v718_v45, %v725_v46 }
 0x145   :  { %v733_v49 = vrot.slane %v726_v47, %v6433_v42  ;;  %v5638_v47 = vld [vmem:[%s7692_s30 + $0x114] ss:$8 sps:$4 sm:$0xff]  }
 0x147   :  { %v735_v61 = vmul.f32 %v733_v49, %v79_v48 }
 0x149   :  { %v740_v0 = vrot.slane %v735_v61, %v6442_v52  ;;  %v748_v1 = vrot.slane %v735_v61, %v747_v53  ;;  %v752_v3 = vrot.slane %v735_v61, %v751_v57  ;;  %v744_v4 = vrot.slane %v735_v61, %v6446_v60 }
 0x14b   :  { %v759_v6 = vmul.f32 %v748_v1, %v6416_v54  ;;  %v760_v7 = vmul.f32 %v752_v3, %v6420_v58  ;;  %v761_v8 = vmul.f32 %v740_v0, %v6402_v31  ;;  %v763_v9 = vmul.f32 %v748_v1, %v6418_v56 }
 0x14c   :  { %v764_v10 = vmul.f32 %v752_v3, %v6422_v59  ;;  %v758_v11 = vmul.f32 %v744_v4, %v6404_v33  ;;  %v762_v51 = vmul.f32 %v744_v4, %v6406_v34  ;;  %v757_v53 = vmul.f32 %v740_v0, %v6400_v30  ;;  %v5636_v4 = vld [vmem:[%s7692_s30 + $0x110] ss:$8 sps:$4 sm:$0xff]  }
 0x14d   :  { %v788_v12 = vadd.f32 %v6383_v55, %v759_v6  ;;  %v789_v13 = vadd.f32 %v781_v63, %v760_v7  ;;  %v790_v50 = vadd.f32 %v769_v62, %v761_v8  ;;  %v792_v54 = vadd.f32 %v6383_v55, %v763_v9  ;;  %v5641_v8 = vld [vmem:[%s7692_s30 + $0x124] ss:$8 sps:$4 sm:$0xff]   ;;  %v5654_v55 = vld [vmem:[%s7692_s30 + $0x170] ss:$8 sps:$4 sm:$0xff]  }
 0x14e   :  { %v793_v14 = vadd.f32 %v781_v63, %v764_v10  ;;  %v787_v58 = vadd.f32 %v773_v5, %v758_v11  ;;  %v791_v15 = vadd.f32 %v773_v5, %v762_v51  ;;  %v786_v31 = vadd.f32 %v769_v62, %v757_v53  ;;  %v5639_v51 = vld [vmem:[%s7692_s30 + $0x120] ss:$8 sps:$4 sm:$0xff]   ;;  %v5644_v53 = vld [vmem:[%s7692_s30 + $0x134] ss:$8 sps:$4 sm:$0xff]  }
 0x14f   :  { %v6467_v16 = vmax.f32 %v788_v12, 0.0  ;;  %v6469_v56 = vmax.f32 %v789_v13, 0.0  ;;  %v6471_v59 = vmax.f32 %v792_v54, 0.0  ;;  %v6473_v33 = vmax.f32 %v790_v50, 0.0  ;;  %v5642_v12 = vld [vmem:[%s7692_s30 + $0x130] ss:$8 sps:$4 sm:$0xff]  }
 0x150   :  { %v6475_v34 = vmax.f32 %v793_v14, 0.0  ;;  %v6477_v30 = vmax.f32 %v787_v58, 0.0  ;;  %v6479_v17 = vmax.f32 %v791_v15, 0.0  ;;  %v6481_v18 = vmax.f32 %v786_v31, 0.0  ;;  %v5647_v13 = vld [vmem:[%s7692_s30 + $0x144] ss:$8 sps:$4 sm:$0xff]  }
 0x151   :  { %v1008_v19 = vrot.slane %v6473_v33, 7  ;;  %v1007_v20 = vrot.slane %v6469_v56, 7  ;;  %v1006_v21 = vrot.slane %v6467_v16, 7  ;;  %v1012_v22 = vrot.slane %v6471_v59, 7  ;;  %v5645_v50 = vld [vmem:[%s7692_s30 + $0x140] ss:$8 sps:$4 sm:$0xff]  }
 0x152   :  { %v1014_v23 = vrot.slane %v6475_v34, 7  ;;  %v1005_v24 = vrot.slane %v6477_v30, 7  ;;  %v1010_v25 = vrot.slane %v6479_v17, 7  ;;  %v1031_v26 = vrot.slane %v6477_v30, 1  ;;  %v5650_v54 = vld [vmem:[%s7692_s30 + $0x154] ss:$8 sps:$4 sm:$0xff]  }
 0x153   :  { %v1004_v27 = vrot.slane %v6481_v18, 7  ;;  %v1013_v28 = vsel %vm83_vm2, %v1006_v21, %v1012_v22  ;;  %v1057_v29 = vpack.c.bf16 %v6479_v17, %v6477_v30  ;;  %v1056_v32 = vpack.c.bf16 %v6473_v33, %v6481_v18  ;;  %v5648_v14 = vld [vmem:[%s7692_s30 + $0x150] ss:$8 sps:$4 sm:$0xff]   ;;  %v5653_v58 = vld [vmem:[%s7692_s30 + $0x164] ss:$8 sps:$4 sm:$0xff]  }
 0x154   :  { %v1011_v35 = vsel %vm83_vm2, %v1005_v24, %v1010_v25  ;;  %v1015_v37 = vsel %vm83_vm2, %v1007_v20, %v1014_v23  ;;  %v6511_v38 = vpack.c.bf16 %v1013_v28, %v1006_v21  ;;  %v1059_v39 = vpack.c.bf16 %v6475_v34, %v6469_v56  ;;  %v5651_v15 = vld [vmem:[%s7692_s30 + $0x160] ss:$8 sps:$4 sm:$0xff]   ;;  %v5656_v31 = vld [vmem:[%s7692_s30 + $0x174] ss:$8 sps:$4 sm:$0xff]   ;;  %v5660_v22 = vld [vmem:[%s7692_s30 + $0x190] ss:$8 sps:$4 sm:$0xff]  }
 0x155   :  { %v5041_v40 = vpack.c.bf16 %v1011_v35, %v1005_v24  ;;  %v1009_v43 = vsel %vm83_vm2, %v1004_v27, %v1008_v19  ;;  %v5049_v44 = vpack.c.bf16 %v1015_v37, %v1007_v20  ;;  %v1058_v45 = vpack.c.bf16 %v6471_v59, %v6467_v16  ;;  %v5659_v19 = vld [vmem:[%s7692_s30 + $0x184] ss:$8 sps:$4 sm:$0xff]   ;;  %v5657_v20 = vld [vmem:[%s7692_s30 + $0x180] ss:$8 sps:$4 sm:$0xff]   ;;  %v5662_v21 = vld [vmem:[%s7692_s30 + $0x194] ss:$8 sps:$4 sm:$0xff]  }
 0x156   :  { %v5045_v46 = vpack.c.bf16 %v1009_v43, %v1004_v27  ;;  %v1032_v48 = vrot.slane %v6479_v17, 1  ;;  %v1028_v49 = vrot.slane %v6481_v18, 1  ;;  %v1029_v57 = vrot.slane %v6473_v33, 1  ;;  %v5665_v23 = vld [vmem:[%s7692_s30 + $0x1a4] ss:$8 sps:$4 sm:$0xff]  }
 0x157   :  { %5042 = vmatprep.mubr.msk.bf16.mxu0 %vm6506_vm6, %v5041_v40  ;;  %v1037_v61 = vrot.slane %v6469_v56, 1  ;;  %v1038_v62 = vrot.slane %v6475_v34, 1  ;;  %v1034_v63 = vrot.slane %v6467_v16, 1  ;;  %v1035_v0 = vrot.slane %v6471_v59, 1  ;;  %v5663_v24 = vld [vmem:[%s7692_s30 + $0x1a0] ss:$8 sps:$4 sm:$0xff]  }
 0x158   :  { %5046 = vmatmul.mubr.msk.bf16.vlgmr.msra.gmra.mrb[0].mxu0 %vm6506_vm6, %v5045_v46  ;;  %v1033_v1 = vsel %vm89_vm3, %v1031_v26, %v1032_v48  ;;  %v1030_v3 = vsel %vm89_vm3, %v1028_v49, %v1029_v57  ;;  %v5668_v25 = vld [vmem:[%s7692_s30 + $0x1b4] ss:$8 sps:$4 sm:$0xff]   ;;  %v5666_v26 = vld [vmem:[%s7692_s30 + $0x1b0] ss:$8 sps:$4 sm:$0xff]   ;;  %v5671_v27 = vld [vmem:[%s7692_s30 + $0x1c4] ss:$8 sps:$4 sm:$0xff]  }
 0x159   :  { %2068 = vmatpush1.bf16.msra.mxu0 %v5633_v41  ;;  %5050 = vmatprep.mubr.msk.bf16.mxu0 %vm6506_vm6, %v5049_v44  ;;  %v6542_v5 = vpack.c.bf16 %v1032_v48, %v1033_v1  ;;  %v6544_v6 = vpack.c.bf16 %v1029_v57, %v1030_v3  ;;  %v1039_v7 = vsel %vm89_vm3, %v1037_v61, %v1038_v62  ;;  %v5669_v28 = vld [vmem:[%s7692_s30 + $0x1c0] ss:$8 sps:$4 sm:$0xff]   ;;  %v5674_v35 = vld [vmem:[%s7692_s30 + $0x1d4] ss:$8 sps:$4 sm:$0xff]   ;;  %v5672_v37 = vld [vmem:[%s7692_s30 + $0x1d0] ss:$8 sps:$4 sm:$0xff]  }
 0x15a   :  { %2069 = vmatprep.subr.bf16.mxu0 %v5638_v47  ;;  %v6550_v9 = vpack.c.bf16 %v1038_v62, %v1039_v7  ;;  %v1036_v10 = vsel %vm89_vm3, %v1034_v63, %v1035_v0  ;;  %v5677_v40 = vld [vmem:[%s7692_s30 + $0x1e4] ss:$8 sps:$4 sm:$0xff]   ;;  %v5675_v41 = vld [vmem:[%s7692_s30 + $0x1e0] ss:$8 sps:$4 sm:$0xff]   ;;  %v5680_v43 = vld [vmem:[%s7692_s30 + $0x1f4] ss:$8 sps:$4 sm:$0xff]  }
 0x15b   :  { %v6553_v11 = vpack.c.bf16 %v1035_v0, %v1036_v10  ;;  %v5678_v44 = vld [vmem:[%s7692_s30 + $0x1f0] ss:$8 sps:$4 sm:$0xff]   ;;  %v5683_v46 = vld [vmem:[%s7692_s30 + $0x204] ss:$8 sps:$4 sm:$0xff]   ;;  %v5681_v47 = vld [vmem:[%s7692_s30 + $0x200] ss:$8 sps:$4 sm:$0xff]  }
 0x15c   :  { %v5686_v48 = vld [vmem:[%s7692_s30 + $0x214] ss:$8 sps:$4 sm:$0xff]   ;;  %v5684_v49 = vld [vmem:[%s7692_s30 + $0x210] ss:$8 sps:$4 sm:$0xff]   ;;  %v5689_v57 = vld [vmem:[%s7692_s30 + $0x224] ss:$8 sps:$4 sm:$0xff]  }
 0x15d   :  { %2070 = vmatpush1.bf16.msra.mxu0 %v5636_v4  ;;  %v5687_v61 = vld [vmem:[%s7692_s30 + $0x220] ss:$8 sps:$4 sm:$0xff]   ;;  %v5692_v30 = vld [vmem:[%s7692_s30 + $0x234] ss:$8 sps:$4 sm:$0xff]   ;;  %v5690_v17 = vld [vmem:[%s7692_s30 + $0x230] ss:$8 sps:$4 sm:$0xff]  }
 0x15e   :  { %2071 = vmatprep.subr.bf16.mxu0 %v5641_v8  ;;  %v5698_v62 = vld [vmem:[%s7692_s30 + $0x254] ss:$8 sps:$4 sm:$0xff]   ;;  %v5696_v63 = vld [vmem:[%s7692_s30 + $0x250] ss:$8 sps:$4 sm:$0xff]   ;;  %v5701_v0 = vld [vmem:[%s7692_s30 + $0x264] ss:$8 sps:$4 sm:$0xff]  }
 0x15f   :  { %v5699_v1 = vld [vmem:[%s7692_s30 + $0x260] ss:$8 sps:$4 sm:$0xff]   ;;  %v5704_v3 = vld [vmem:[%s7692_s30 + $0x274] ss:$8 sps:$4 sm:$0xff]   ;;  %v5702_v4 = vld [vmem:[%s7692_s30 + $0x270] ss:$8 sps:$4 sm:$0xff]  }
 0x160   :  { %v5707_v7 = vld [vmem:[%s7692_s30 + $0x284] ss:$8 sps:$4 sm:$0xff]   ;;  %v5705_v8 = vld [vmem:[%s7692_s30 + $0x280] ss:$8 sps:$4 sm:$0xff]   ;;  %v5710_v10 = vld [vmem:[%s7692_s30 + $0x294] ss:$8 sps:$4 sm:$0xff]  }
 0x161   :  { %2072 = vmatpush1.bf16.msra.mxu0 %v5639_v51  ;;  %v5708_v51 = vld [vmem:[%s7692_s30 + $0x290] ss:$8 sps:$4 sm:$0xff]   ;;  %v5735_v33 = vld [vmem:[%s7692_s30 + $0x320] ss:$8 sps:$4 sm:$0xff]   ;;  %v5740_v56 = vld [vmem:[%s7692_s30 + $0x334] ss:$8 sps:$4 sm:$0xff]  }
 0x162   :  { %2073 = vmatprep.subr.bf16.mxu0 %v5644_v53  ;;  %v5713_v53 = vld [vmem:[%s7692_s30 + $0x2a4] ss:$8 sps:$4 sm:$0xff]   ;;  %v5738_v34 = vld [vmem:[%s7692_s30 + $0x330] ss:$8 sps:$4 sm:$0xff]   ;;  %v5783_v16 = vld [vmem:[%s7692_s30 + $0x420] ss:$8 sps:$4 sm:$0xff]  }
 0x163   :  { %v5743_v18 = vld [vmem:[%s7692_s30 + $0x344] ss:$8 sps:$4 sm:$0xff]   ;;  %v5788_v59 = vld [vmem:[%s7692_s30 + $0x434] ss:$8 sps:$4 sm:$0xff]  }
 0x165   :  { %2074 = vmatpush1.bf16.msra.mxu0 %v5642_v12  ;;  %v5711_v12 = vld [vmem:[%s7692_s30 + $0x2a0] ss:$8 sps:$4 sm:$0xff]  }
 0x166   :  { %2075 = vmatprep.subr.bf16.mxu0 %v5647_v13  ;;  %v5716_v13 = vld [vmem:[%s7692_s30 + $0x2b4] ss:$8 sps:$4 sm:$0xff]  }
 0x169   :  { %2076 = vmatpush1.bf16.msra.mxu0 %v5645_v50  ;;  %v5714_v50 = vld [vmem:[%s7692_s30 + $0x2b0] ss:$8 sps:$4 sm:$0xff]  }
 0x16a   :  { %2077 = vmatprep.subr.bf16.mxu0 %v5650_v54  ;;  %v5719_v54 = vld [vmem:[%s7692_s30 + $0x2c4] ss:$8 sps:$4 sm:$0xff]  }
 0x16d   :  { %2078 = vmatpush1.bf16.msra.mxu0 %v5648_v14  ;;  %v5717_v14 = vld [vmem:[%s7692_s30 + $0x2c0] ss:$8 sps:$4 sm:$0xff]  }
 0x16e   :  { %2079 = vmatprep.subr.bf16.mxu0 %v5653_v58  ;;  %v5722_v58 = vld [vmem:[%s7692_s30 + $0x2d4] ss:$8 sps:$4 sm:$0xff]  }
 0x171   :  { %2080 = vmatpush1.bf16.msra.mxu0 %v5651_v15  ;;  %v5720_v15 = vld [vmem:[%s7692_s30 + $0x2d0] ss:$8 sps:$4 sm:$0xff]  }
 0x172   :  { %2081 = vmatprep.subr.bf16.mxu0 %v5656_v31  ;;  %v5725_v31 = vld [vmem:[%s7692_s30 + $0x2e4] ss:$8 sps:$4 sm:$0xff]  }
 0x175   :  { %2082 = vmatpush1.bf16.msra.mxu0 %v5654_v55  ;;  %v5723_v55 = vld [vmem:[%s7692_s30 + $0x2e0] ss:$8 sps:$4 sm:$0xff]  }
 0x176   :  { %2083 = vmatprep.subr.bf16.mxu0 %v5659_v19  ;;  %v5728_v19 = vld [vmem:[%s7692_s30 + $0x2f4] ss:$8 sps:$4 sm:$0xff]  }
 0x179   :  { %2084 = vmatpush1.bf16.msra.mxu0 %v5657_v20  ;;  %v5726_v20 = vld [vmem:[%s7692_s30 + $0x2f0] ss:$8 sps:$4 sm:$0xff]  }
 0x17a   :  { %2085 = vmatprep.subr.bf16.mxu0 %v5662_v21  ;;  %v5731_v21 = vld [vmem:[%s7692_s30 + $0x304] ss:$8 sps:$4 sm:$0xff]  }
 0x17d   :  { %2086 = vmatpush1.bf16.msra.mxu0 %v5660_v22  ;;  %v5729_v22 = vld [vmem:[%s7692_s30 + $0x300] ss:$8 sps:$4 sm:$0xff]  }
 0x17e   :  { %2087 = vmatprep.subr.bf16.mxu0 %v5665_v23  ;;  %v5734_v23 = vld [vmem:[%s7692_s30 + $0x314] ss:$8 sps:$4 sm:$0xff]  }
 0x181   :  { %2088 = vmatpush1.bf16.msra.mxu0 %v5663_v24  ;;  %v5732_v24 = vld [vmem:[%s7692_s30 + $0x310] ss:$8 sps:$4 sm:$0xff]  }
 0x182   :  { %2089 = vmatprep.subr.bf16.mxu0 %v5668_v25  ;;  %v5737_v25 = vld [vmem:[%s7692_s30 + $0x324] ss:$8 sps:$4 sm:$0xff]  }
 0x185   :  { %2090 = vmatpush1.bf16.msra.mxu0 %v5666_v26  ;;  %v5744_v26 = vld [vmem:[%s7692_s30 + $0x350] ss:$8 sps:$4 sm:$0xff]  }
 0x186   :  { %2091 = vmatprep.subr.bf16.mxu0 %v5671_v27  ;;  %v5749_v27 = vld [vmem:[%s7692_s30 + $0x364] ss:$8 sps:$4 sm:$0xff]  }
 0x189   :  { %2092 = vmatpush1.bf16.msra.mxu0 %v5669_v28  ;;  %v5747_v28 = vld [vmem:[%s7692_s30 + $0x360] ss:$8 sps:$4 sm:$0xff]  }
 0x18a   :  { %2093 = vmatprep.subr.bf16.mxu0 %v5674_v35  ;;  %v5752_v35 = vld [vmem:[%s7692_s30 + $0x374] ss:$8 sps:$4 sm:$0xff]  }
 0x18d   :  { %2094 = vmatpush1.bf16.msra.mxu0 %v5672_v37  ;;  %v5750_v37 = vld [vmem:[%s7692_s30 + $0x370] ss:$8 sps:$4 sm:$0xff]  }
 0x18e   :  { %2095 = vmatprep.subr.bf16.mxu0 %v5677_v40  ;;  %v5755_v40 = vld [vmem:[%s7692_s30 + $0x384] ss:$8 sps:$4 sm:$0xff]  }
 0x191   :  { %2096 = vmatpush1.bf16.msra.mxu0 %v5675_v41  ;;  %v5753_v41 = vld [vmem:[%s7692_s30 + $0x380] ss:$8 sps:$4 sm:$0xff]  }
 0x192   :  { %2097 = vmatprep.subr.bf16.mxu0 %v5680_v43  ;;  %v5758_v43 = vld [vmem:[%s7692_s30 + $0x394] ss:$8 sps:$4 sm:$0xff]  }
 0x195   :  { %2098 = vmatpush1.bf16.msra.mxu0 %v5678_v44  ;;  %v5756_v44 = vld [vmem:[%s7692_s30 + $0x390] ss:$8 sps:$4 sm:$0xff]  }
 0x196   :  { %2110 = vmatprep.subr.bf16.mxu0 %v5683_v46  ;;  %v5761_v46 = vld [vmem:[%s7692_s30 + $0x3a4] ss:$8 sps:$4 sm:$0xff]  }
 0x198   :  { %5054 = vmatmul.mubr.msk.bf16.vlgmr.msra.gmra.mrb[0].mxu0 %vm6506_vm6, %v6511_v38  ;;  %v5693_v38 = vld [vmem:[%s7692_s30 + $0x240] ss:$8 sps:$4 sm:$0xff]  }
 0x199   :  { %2111 = vmatpush1.bf16.msra.mxu0 %v5681_v47  ;;  %2142 = vmatprep.mubr.bf16.mxu0 %v1057_v29  ;;  %v5695_v29 = vld [vmem:[%s7692_s30 + $0x244] ss:$8 sps:$4 sm:$0xff]   ;;  %v5759_v47 = vld [vmem:[%s7692_s30 + $0x3a0] ss:$8 sps:$4 sm:$0xff]  }
 0x19a   :  { %2112 = vmatprep.subr.bf16.mxu0 %v5686_v48  ;;  %v5764_v48 = vld [vmem:[%s7692_s30 + $0x3b4] ss:$8 sps:$4 sm:$0xff]  }
 0x19d   :  { %2113 = vmatpush1.bf16.msra.mxu0 %v5684_v49  ;;  %v5762_v49 = vld [vmem:[%s7692_s30 + $0x3b0] ss:$8 sps:$4 sm:$0xff]  }
 0x19e   :  { %2114 = vmatprep.subr.bf16.mxu0 %v5689_v57  ;;  %v5767_v57 = vld [vmem:[%s7692_s30 + $0x3c4] ss:$8 sps:$4 sm:$0xff]  }
 0x1a1   :  { %2115 = vmatpush1.bf16.msra.mxu0 %v5687_v61  ;;  %v5765_v61 = vld [vmem:[%s7692_s30 + $0x3c0] ss:$8 sps:$4 sm:$0xff]  }
 0x1a2   :  { %2116 = vmatprep.subr.bf16.mxu0 %v5692_v30  ;;  %v5770_v30 = vld [vmem:[%s7692_s30 + $0x3d4] ss:$8 sps:$4 sm:$0xff]  }
 0x1a5   :  { %2117 = vmatpush1.bf16.msra.mxu0 %v5690_v17  ;;  %v5768_v17 = vld [vmem:[%s7692_s30 + $0x3d0] ss:$8 sps:$4 sm:$0xff]  }
 0x1a6   :  { %2118 = vmatprep.subr.bf16.mxu0 %v5695_v29  ;;  %v5773_v29 = vld [vmem:[%s7692_s30 + $0x3e4] ss:$8 sps:$4 sm:$0xff]  }
 0x1a9   :  { %2119 = vmatpush1.bf16.msra.mxu0 %v5693_v38  ;;  %v5771_v38 = vld [vmem:[%s7692_s30 + $0x3e0] ss:$8 sps:$4 sm:$0xff]  }
 0x1aa   :  { %2120 = vmatprep.subr.bf16.mxu0 %v5698_v62  ;;  %v5776_v62 = vld [vmem:[%s7692_s30 + $0x3f4] ss:$8 sps:$4 sm:$0xff]  }
 0x1ad   :  { %2121 = vmatpush1.bf16.msra.mxu0 %v5696_v63  ;;  %v5774_v63 = vld [vmem:[%s7692_s30 + $0x3f0] ss:$8 sps:$4 sm:$0xff]  }
 0x1ae   :  { %2122 = vmatprep.subr.bf16.mxu0 %v5701_v0  ;;  %v5779_v0 = vld [vmem:[%s7692_s30 + $0x404] ss:$8 sps:$4 sm:$0xff]  }
 0x1b1   :  { %2123 = vmatpush1.bf16.msra.mxu0 %v5699_v1  ;;  %v5777_v1 = vld [vmem:[%s7692_s30 + $0x400] ss:$8 sps:$4 sm:$0xff]  }
 0x1b2   :  { %2124 = vmatprep.subr.bf16.mxu0 %v5704_v3  ;;  %v5947_v3 = vld [vmem:[%s7669_s13 + $0x10] sm:$0xff]  }
 0x1b5   :  { %2125 = vmatpush1.bf16.msra.mxu0 %v5702_v4  ;;  %v5782_v4 = vld [vmem:[%s7692_s30 + $0x414] ss:$8 sps:$4 sm:$0xff]  }
 0x1b6   :  { %2126 = vmatprep.subr.bf16.mxu0 %v5707_v7  ;;  %v5780_v7 = vld [vmem:[%s7692_s30 + $0x410] ss:$8 sps:$4 sm:$0xff]  }
 0x1b9   :  { %2127 = vmatpush1.bf16.msra.mxu0 %v5705_v8  ;;  %v5785_v8 = vld [vmem:[%s7692_s30 + $0x424] ss:$8 sps:$4 sm:$0xff]  }
 0x1ba   :  { %2128 = vmatprep.subr.bf16.mxu0 %v5710_v10  ;;  %v5789_v10 = vld [vmem:[%s7692_s30 + $0x440] ss:$8 sps:$4 sm:$0xff]  }
 0x1bd   :  { %2129 = vmatpush1.bf16.msra.mxu0 %v5708_v51  ;;  %v5794_v51 = vld [vmem:[%s7692_s30 + $0x454] ss:$8 sps:$4 sm:$0xff]  }
 0x1be   :  { %2130 = vmatprep.subr.bf16.mxu0 %v5713_v53  ;;  %v5792_v53 = vld [vmem:[%s7692_s30 + $0x450] ss:$8 sps:$4 sm:$0xff]  }
 0x1c1   :  { %2131 = vmatpush1.bf16.msra.mxu0 %v5711_v12  ;;  %v5797_v12 = vld [vmem:[%s7692_s30 + $0x464] ss:$8 sps:$4 sm:$0xff]  }
 0x1c2   :  { %2132 = vmatprep.subr.bf16.mxu0 %v5716_v13  ;;  %v5795_v13 = vld [vmem:[%s7692_s30 + $0x460] ss:$8 sps:$4 sm:$0xff]  }
 0x1c5   :  { %2133 = vmatpush1.bf16.msra.mxu0 %v5714_v50  ;;  %v5800_v50 = vld [vmem:[%s7692_s30 + $0x474] ss:$8 sps:$4 sm:$0xff]  }
 0x1c6   :  { %2134 = vmatprep.subr.bf16.mxu0 %v5719_v54  ;;  %v5798_v54 = vld [vmem:[%s7692_s30 + $0x470] ss:$8 sps:$4 sm:$0xff]  }
 0x1c9   :  { %2135 = vmatpush1.bf16.msra.mxu0 %v5717_v14  ;;  %v5803_v14 = vld [vmem:[%s7692_s30 + $0x484] ss:$8 sps:$4 sm:$0xff]  }
 0x1ca   :  { %2136 = vmatprep.subr.bf16.mxu0 %v5722_v58  ;;  %v5801_v58 = vld [vmem:[%s7692_s30 + $0x480] ss:$8 sps:$4 sm:$0xff]  }
 0x1cd   :  { %2137 = vmatpush1.bf16.msra.mxu0 %v5720_v15  ;;  %v5806_v15 = vld [vmem:[%s7692_s30 + $0x494] ss:$8 sps:$4 sm:$0xff]  }
 0x1ce   :  { %2138 = vmatprep.subr.bf16.mxu0 %v5725_v31  ;;  %v5804_v31 = vld [vmem:[%s7692_s30 + $0x490] ss:$8 sps:$4 sm:$0xff]  }
 0x1d1   :  { %2139 = vmatpush1.bf16.msra.mxu0 %v5723_v55  ;;  %v5809_v55 = vld [vmem:[%s7692_s30 + $0x4a4] ss:$8 sps:$4 sm:$0xff]  }
 0x1d2   :  { %2140 = vmatprep.subr.bf16.mxu0 %v5728_v19  ;;  %v5807_v19 = vld [vmem:[%s7692_s30 + $0x4a0] ss:$8 sps:$4 sm:$0xff]  }
 0x1d5   :  { %2141 = vmatpush1.bf16.msra.mxu0 %v5726_v20  ;;  %v5812_v20 = vld [vmem:[%s7692_s30 + $0x4b4] ss:$8 sps:$4 sm:$0xff]  }
 0x1d6   :  { %2153 = vmatprep.subr.bf16.mxu0 %v5731_v21  ;;  %v5810_v21 = vld [vmem:[%s7692_s30 + $0x4b0] ss:$8 sps:$4 sm:$0xff]  }
 0x1d8   :  { %2143 = vmatmul.mubr.bf16.vlgmr.msra.gmra.mrb[0].mxu0 %v1056_v32  ;;  %v5741_v32 = vld [vmem:[%s7692_s30 + $0x340] ss:$8 sps:$4 sm:$0xff]  }
 0x1d9   :  { %2154 = vmatpush1.bf16.msra.mxu0 %v5729_v22  ;;  %2185 = vmatprep.mubr.bf16.mxu0 %v1059_v39  ;;  %v5746_v39 = vld [vmem:[%s7692_s30 + $0x354] ss:$8 sps:$4 sm:$0xff]   ;;  %v5815_v22 = vld [vmem:[%s7692_s30 + $0x4c4] ss:$8 sps:$4 sm:$0xff]  }
 0x1da   :  { %2155 = vmatprep.subr.bf16.mxu0 %v5734_v23  ;;  %v5813_v23 = vld [vmem:[%s7692_s30 + $0x4c0] ss:$8 sps:$4 sm:$0xff]  }
 0x1dd   :  { %2156 = vmatpush1.bf16.msra.mxu0 %v5732_v24  ;;  %v5818_v24 = vld [vmem:[%s7692_s30 + $0x4d4] ss:$8 sps:$4 sm:$0xff]  }
 0x1de   :  { %2157 = vmatprep.subr.bf16.mxu0 %v5737_v25  ;;  %v5816_v25 = vld [vmem:[%s7692_s30 + $0x4d0] ss:$8 sps:$4 sm:$0xff]  }
 0x1e1   :  { %2158 = vmatpush1.bf16.msra.mxu0 %v5735_v33  ;;  %v5821_v33 = vld [vmem:[%s7692_s30 + $0x4e4] ss:$8 sps:$4 sm:$0xff]  }
 0x1e2   :  { %2159 = vmatprep.subr.bf16.mxu0 %v5740_v56  ;;  %v5819_v56 = vld [vmem:[%s7692_s30 + $0x4e0] ss:$8 sps:$4 sm:$0xff]  }
 0x1e5   :  { %2160 = vmatpush1.bf16.msra.mxu0 %v5738_v34  ;;  %v5824_v34 = vld [vmem:[%s7692_s30 + $0x4f4] ss:$8 sps:$4 sm:$0xff]  }
 0x1e6   :  { %2161 = vmatprep.subr.bf16.mxu0 %v5743_v18  ;;  %v5822_v18 = vld [vmem:[%s7692_s30 + $0x4f0] ss:$8 sps:$4 sm:$0xff]  }
 0x1e9   :  { %2162 = vmatpush1.bf16.msra.mxu0 %v5741_v32  ;;  %v5827_v32 = vld [vmem:[%s7692_s30 + $0x504] ss:$8 sps:$4 sm:$0xff]  }
 0x1ea   :  { %2163 = vmatprep.subr.bf16.mxu0 %v5746_v39  ;;  %v5825_v39 = vld [vmem:[%s7692_s30 + $0x500] ss:$8 sps:$4 sm:$0xff]  }
 0x1ed   :  { %2164 = vmatpush1.bf16.msra.mxu0 %v5744_v26  ;;  %v5830_v26 = vld [vmem:[%s7692_s30 + $0x514] ss:$8 sps:$4 sm:$0xff]  }
 0x1ee   :  { %2165 = vmatprep.subr.bf16.mxu0 %v5749_v27  ;;  %v5828_v27 = vld [vmem:[%s7692_s30 + $0x510] ss:$8 sps:$4 sm:$0xff]  }
 0x1f1   :  { %2166 = vmatpush1.bf16.msra.mxu0 %v5747_v28  ;;  %v5833_v28 = vld [vmem:[%s7692_s30 + $0x524] ss:$8 sps:$4 sm:$0xff]  }
 0x1f2   :  { %2167 = vmatprep.subr.bf16.mxu0 %v5752_v35  ;;  %v5831_v35 = vld [vmem:[%s7692_s30 + $0x520] ss:$8 sps:$4 sm:$0xff]  }
 0x1f5   :  { %2168 = vmatpush1.bf16.msra.mxu0 %v5750_v37  ;;  %v5839_v37 = vld [vmem:[%s7692_s30 + $0x544] ss:$8 sps:$4 sm:$0xff]  }
 0x1f6   :  { %2169 = vmatprep.subr.bf16.mxu0 %v5755_v40  ;;  %v5837_v40 = vld [vmem:[%s7692_s30 + $0x540] ss:$8 sps:$4 sm:$0xff]  }
 0x1f9   :  { %2170 = vmatpush1.bf16.msra.mxu0 %v5753_v41  ;;  %v5842_v41 = vld [vmem:[%s7692_s30 + $0x554] ss:$8 sps:$4 sm:$0xff]  }
 0x1fa   :  { %2171 = vmatprep.subr.bf16.mxu0 %v5758_v43  ;;  %v5840_v43 = vld [vmem:[%s7692_s30 + $0x550] ss:$8 sps:$4 sm:$0xff]  }
 0x1fd   :  { %2172 = vmatpush1.bf16.msra.mxu0 %v5756_v44  ;;  %v5845_v44 = vld [vmem:[%s7692_s30 + $0x564] ss:$8 sps:$4 sm:$0xff]  }
 0x1fe   :  { %2173 = vmatprep.subr.bf16.mxu0 %v5761_v46  ;;  %v5843_v46 = vld [vmem:[%s7692_s30 + $0x560] ss:$8 sps:$4 sm:$0xff]  }
 0x201   :  { %2174 = vmatpush1.bf16.msra.mxu0 %v5759_v47  ;;  %v5848_v47 = vld [vmem:[%s7692_s30 + $0x574] ss:$8 sps:$4 sm:$0xff]  }
 0x202   :  { %2175 = vmatprep.subr.bf16.mxu0 %v5764_v48  ;;  %v5846_v48 = vld [vmem:[%s7692_s30 + $0x570] ss:$8 sps:$4 sm:$0xff]  }
 0x205   :  { %2176 = vmatpush1.bf16.msra.mxu0 %v5762_v49  ;;  %v5851_v49 = vld [vmem:[%s7692_s30 + $0x584] ss:$8 sps:$4 sm:$0xff]  }
 0x206   :  { %2177 = vmatprep.subr.bf16.mxu0 %v5767_v57  ;;  %v5849_v57 = vld [vmem:[%s7692_s30 + $0x580] ss:$8 sps:$4 sm:$0xff]  }
 0x209   :  { %2178 = vmatpush1.bf16.msra.mxu0 %v5765_v61  ;;  %v5854_v61 = vld [vmem:[%s7692_s30 + $0x594] ss:$8 sps:$4 sm:$0xff]  }
 0x20a   :  { %2179 = vmatprep.subr.bf16.mxu0 %v5770_v30  ;;  %v5852_v30 = vld [vmem:[%s7692_s30 + $0x590] ss:$8 sps:$4 sm:$0xff]  }
 0x20d   :  { %2180 = vmatpush1.bf16.msra.mxu0 %v5768_v17  ;;  %v5857_v17 = vld [vmem:[%s7692_s30 + $0x5a4] ss:$8 sps:$4 sm:$0xff]  }
 0x20e   :  { %2181 = vmatprep.subr.bf16.mxu0 %v5773_v29  ;;  %v5855_v29 = vld [vmem:[%s7692_s30 + $0x5a0] ss:$8 sps:$4 sm:$0xff]  }
 0x211   :  { %2182 = vmatpush1.bf16.msra.mxu0 %v5771_v38  ;;  %v5860_v38 = vld [vmem:[%s7692_s30 + $0x5b4] ss:$8 sps:$4 sm:$0xff]  }
 0x212   :  { %2183 = vmatprep.subr.bf16.mxu0 %v5776_v62  ;;  %v5858_v62 = vld [vmem:[%s7692_s30 + $0x5b0] ss:$8 sps:$4 sm:$0xff]  }
 0x215   :  { %2184 = vmatpush1.bf16.msra.mxu0 %v5774_v63  ;;  %v5863_v63 = vld [vmem:[%s7692_s30 + $0x5c4] ss:$8 sps:$4 sm:$0xff]  }
 0x216   :  { %2196 = vmatprep.subr.bf16.mxu0 %v5779_v0  ;;  %v5861_v0 = vld [vmem:[%s7692_s30 + $0x5c0] ss:$8 sps:$4 sm:$0xff]  }
 0x218   :  { %2186 = vmatmul.mubr.bf16.vlgmr.msra.gmra.mrb[0].mxu0 %v1058_v45  ;;  %v5786_v45 = vld [vmem:[%s7692_s30 + $0x430] ss:$8 sps:$4 sm:$0xff]  }
 0x219   :  { %2197 = vmatpush1.bf16.msra.mxu0 %v5777_v1  ;;  %5057 = vmatprep.mubr.msk.bf16.mxu0 %vm6848_vm7, %v6542_v5  ;;  %v5791_v5 = vld [vmem:[%s7692_s30 + $0x444] ss:$8 sps:$4 sm:$0xff]   ;;  %v5866_v1 = vld [vmem:[%s7692_s30 + $0x5d4] ss:$8 sps:$4 sm:$0xff]  }
 0x21a   :  { %2198 = vmatprep.subr.bf16.mxu0 %v5782_v4  ;;  %v5864_v4 = vld [vmem:[%s7692_s30 + $0x5d0] ss:$8 sps:$4 sm:$0xff]  }
 0x21d   :  { %2199 = vmatpush1.bf16.msra.mxu0 %v5780_v7  ;;  %v5869_v7 = vld [vmem:[%s7692_s30 + $0x5e4] ss:$8 sps:$4 sm:$0xff]  }
 0x21e   :  { %2200 = vmatprep.subr.bf16.mxu0 %v5785_v8  ;;  %v5867_v8 = vld [vmem:[%s7692_s30 + $0x5e0] ss:$8 sps:$4 sm:$0xff]  }
 0x221   :  { %2201 = vmatpush1.bf16.msra.mxu0 %v5783_v16  ;;  %v5872_v16 = vld [vmem:[%s7692_s30 + $0x5f4] ss:$8 sps:$4 sm:$0xff]  }
 0x222   :  { %2202 = vmatprep.subr.bf16.mxu0 %v5788_v59  ;;  %v5870_v59 = vld [vmem:[%s7692_s30 + $0x5f0] ss:$8 sps:$4 sm:$0xff]  }
 0x225   :  { %2203 = vmatpush1.bf16.msra.mxu0 %v5786_v45  ;;  %v5873_v45 = vld [vmem:[%s7701_s2 + $0x40] sm:$0xff]  }
 0x226   :  { %2204 = vmatprep.subr.bf16.mxu0 %v5791_v5  ;;  %v5874_v5 = vld [vmem:[%s7701_s2] sm:$0xff]   ;;  %5210 = vmatprep.subr.bf16.mxu1 %v5873_v45 }
 0x227   :  { %5211 = vmatpush3.bf16.msra.mxu1 %v5874_v5 }
 0x229   :  { %2205 = vmatpush1.bf16.msra.mxu0 %v5789_v10  ;;  %v5875_v10 = vld [vmem:[%s7701_s2 + $0x48] sm:$0xff]  }
 0x22a   :  { %2206 = vmatprep.subr.bf16.mxu0 %v5794_v51  ;;  %v5876_v51 = vld [vmem:[%s7701_s2 + $0x8] sm:$0xff]   ;;  %5212 = vmatprep.subr.bf16.mxu1 %v5875_v10 }
 0x22b   :  { %5213 = vmatpush3.bf16.msra.mxu1 %v5876_v51 }
 0x22d   :  { %2207 = vmatpush1.bf16.msra.mxu0 %v5792_v53  ;;  %v5878_v53 = vld [vmem:[%s7701_s2 + $0x10] sm:$0xff]  }
 0x22e   :  { %2208 = vmatprep.subr.bf16.mxu0 %v5797_v12  ;;  %v5879_v12 = vld [vmem:[%s7701_s2 + $0x58] sm:$0xff]  }
 0x231   :  { %2209 = vmatpush1.bf16.msra.mxu0 %v5795_v13  ;;  %v5880_v13 = vld [vmem:[%s7701_s2 + $0x18] sm:$0xff]  }
 0x232   :  { %2210 = vmatprep.subr.bf16.mxu0 %v5800_v50  ;;  %v5881_v50 = vld [vmem:[%s7701_s2 + $0x60] sm:$0xff]  }
 0x235   :  { %2211 = vmatpush1.bf16.msra.mxu0 %v5798_v54  ;;  %v5882_v54 = vld [vmem:[%s7701_s2 + $0x20] sm:$0xff]  }
 0x236   :  { %2212 = vmatprep.subr.bf16.mxu0 %v5803_v14  ;;  %v5883_v14 = vld [vmem:[%s7701_s2 + $0x68] sm:$0xff]  }
 0x239   :  { %2213 = vmatpush1.bf16.msra.mxu0 %v5801_v58  ;;  %v5884_v58 = vld [vmem:[%s7701_s2 + $0x28] sm:$0xff]  }
 0x23a   :  { %2214 = vmatprep.subr.bf16.mxu0 %v5806_v15  ;;  %v5885_v15 = vld [vmem:[%s7701_s2 + $0x70] sm:$0xff]  }
 0x23d   :  { %2215 = vmatpush1.bf16.msra.mxu0 %v5804_v31  ;;  %v5886_v31 = vld [vmem:[%s7701_s2 + $0x30] sm:$0xff]  }
 0x23e   :  { %2216 = vmatprep.subr.bf16.mxu0 %v5809_v55  ;;  %v5887_v55 = vld [vmem:[%s7701_s2 + $0x78] sm:$0xff]  }
 0x241   :  { %2217 = vmatpush1.bf16.msra.mxu0 %v5807_v19  ;;  %v5888_v19 = vld [vmem:[%s7701_s2 + $0x38] sm:$0xff]  }
 0x242   :  { %2218 = vmatprep.subr.bf16.mxu0 %v5812_v20  ;;  %v5889_v20 = vld [vmem:[%s7701_s2 + $0xc0] sm:$0xff]  }
 0x245   :  { %2219 = vmatpush1.bf16.msra.mxu0 %v5810_v21 }
 0x246   :  { %2220 = vmatprep.subr.bf16.mxu0 %v5815_v22 }
 0x249   :  { %2221 = vmatpush1.bf16.msra.mxu0 %v5813_v23 }
 0x24a   :  { %2222 = vmatprep.subr.bf16.mxu0 %v5818_v24 }
 0x24d   :  { %2223 = vmatpush1.bf16.msra.mxu0 %v5816_v25 }
 0x24e   :  { %2224 = vmatprep.subr.bf16.mxu0 %v5821_v33 }
 0x251   :  { %2225 = vmatpush1.bf16.msra.mxu0 %v5819_v56 }
 0x252   :  { %2226 = vmatprep.subr.bf16.mxu0 %v5824_v34 }
 0x255   :  { %2227 = vmatpush1.bf16.msra.mxu0 %v5822_v18 }
 0x256   :  { %2239 = vmatprep.subr.bf16.mxu0 %v5827_v32 }
 0x258   :  { %5060 = vmatmul.mubr.msk.bf16.vlgmr.msra.gmra.mrb[0].mxu0 %vm6848_vm7, %v6544_v6  ;;  %v5836_v6 = vld [vmem:[%s7692_s30 + $0x534] ss:$8 sps:$4 sm:$0xff]  }
 0x259   :  { %2240 = vmatpush1.bf16.msra.mxu0 %v5825_v39  ;;  %5063 = vmatprep.mubr.msk.bf16.mxu0 %vm6848_vm7, %v6550_v9  ;;  %v5834_v9 = vld [vmem:[%s7692_s30 + $0x530] ss:$8 sps:$4 sm:$0xff]  }
 0x25a   :  { %2241 = vmatprep.subr.bf16.mxu0 %v5830_v26 }
 0x25d   :  { %2242 = vmatpush1.bf16.msra.mxu0 %v5828_v27 }
 0x25e   :  { %2243 = vmatprep.subr.bf16.mxu0 %v5833_v28 }
 0x261   :  { %2244 = vmatpush1.bf16.msra.mxu0 %v5831_v35 }
 0x262   :  { %2245 = vmatprep.subr.bf16.mxu0 %v5836_v6 }
 0x265   :  { %2246 = vmatpush1.bf16.msra.mxu0 %v5834_v9 }
 0x266   :  { %2247 = vmatprep.subr.bf16.mxu0 %v5839_v37 }
 0x269   :  { %2248 = vmatpush1.bf16.msra.mxu0 %v5837_v40 }
 0x26a   :  { %2249 = vmatprep.subr.bf16.mxu0 %v5842_v41 }
 0x26d   :  { %2250 = vmatpush1.bf16.msra.mxu0 %v5840_v43 }
 0x26e   :  { %2251 = vmatprep.subr.bf16.mxu0 %v5845_v44 }
 0x271   :  { %2252 = vmatpush1.bf16.msra.mxu0 %v5843_v46 }
 0x272   :  { %2253 = vmatprep.subr.bf16.mxu0 %v5848_v47 }
 0x275   :  { %2254 = vmatpush1.bf16.msra.mxu0 %v5846_v48 }
 0x276   :  { %2255 = vmatprep.subr.bf16.mxu0 %v5851_v49 }
 0x279   :  { %2256 = vmatpush1.bf16.msra.mxu0 %v5849_v57 }
 0x27a   :  { %2257 = vmatprep.subr.bf16.mxu0 %v5854_v61 }
 0x27d   :  { %2258 = vmatpush1.bf16.msra.mxu0 %v5852_v30 }
 0x27e   :  { %2259 = vmatprep.subr.bf16.mxu0 %v5857_v17 }
 0x281   :  { %2260 = vmatpush1.bf16.msra.mxu0 %v5855_v29 }
 0x282   :  { %2261 = vmatprep.subr.bf16.mxu0 %v5860_v38 }
 0x285   :  { %2262 = vmatpush1.bf16.msra.mxu0 %v5858_v62 }
 0x286   :  { %2263 = vmatprep.subr.bf16.mxu0 %v5863_v63 }
 0x289   :  { %2264 = vmatpush1.bf16.msra.mxu0 %v5861_v0 }
 0x28a   :  { %2265 = vmatprep.subr.bf16.mxu0 %v5866_v1 }
 0x28d   :  { %2266 = vmatpush1.bf16.msra.mxu0 %v5864_v4 }
 0x28e   :  { %2267 = vmatprep.subr.bf16.mxu0 %v5869_v7 }
 0x291   :  { %2268 = vmatpush1.bf16.msra.mxu0 %v5867_v8 }
 0x292   :  { %2269 = vmatprep.subr.bf16.mxu0 %v5872_v16 }
 0x295   :  { %2270 = vmatpush1.bf16.msra.mxu0 %v5870_v59 }
 0x298   :  { %5066 = vmatmul.mubr.msk.bf16.vlgmr.msra.gmra.mrb[0].mxu0 %vm6848_vm7, %v6553_v11  ;;  %v5877_v11 = vld [vmem:[%s7701_s2 + $0x50] sm:$0xff]  }
 0x299   :  { %5214 = vmatprep.subr.bf16.mxu1 %v5877_v11 }
 0x29a   :  { %5215 = vmatpush3.bf16.msra.mxu1 %v5878_v53 }
 0x29b   :  { %5216 = vmatprep.subr.bf16.mxu1 %v5879_v12 }
 0x29e   :  { %5217 = vmatpush3.bf16.msra.mxu1 %v5880_v13 }
 0x29f   :  { %5218 = vmatprep.subr.bf16.mxu1 %v5881_v50 }
 0x2a2   :  { %5219 = vmatpush3.bf16.msra.mxu1 %v5882_v54  ;;  %v994_v54 = vld [vmem:[%s7664_s5] sm:$0x3] }
 0x2a3   :  { %5220 = vmatprep.subr.bf16.mxu1 %v5883_v14 }
 0x2a6   :  { %5221 = vmatpush3.bf16.msra.mxu1 %v5884_v58  ;;  %v995_v58 = vld [vmem:[%s7665_s6] sm:$0x3] }
 0x2a7   :  { %5222 = vmatprep.subr.bf16.mxu1 %v5885_v15 }
 0x2aa   :  { %5223 = vmatpush3.bf16.msra.mxu1 %v5886_v31 }
 0x2ab   :  { %5224 = vmatprep.subr.bf16.mxu1 %v5887_v55 }
 0x2ae   :  { %5225 = vmatpush3.bf16.msra.mxu1 %v5888_v19  ;;  %v2364_v19 = vrot.slane %v995_v58, %v6442_v52 }
 0x2af   :  { %5232 = vmatprep.subr.bf16.mxu1 %v5889_v20  ;;  %v2368_v20 = vrot.slane %v995_v58, %v6446_v60  ;;  %v5914_v58 = vld [vmem:[%s7701_s2 + $0x120] sm:$0xff]  }
 0x36b   :  { %v2273_v21 = vpop.f32.mrb[0].mxu0 }
 0x36c   :  { %v2275_v22 = vpop.f32.mrb[1].mxu0 }
 0x36d   :  { %v2277_v23 = vpop.f32.mrb[2].mxu0 }
 0x36e   :  { %v2282_v24 = vadd.f32 %v2277_v23, %v2273_v21  ;;  %v2279_v25 = vpop.f32.mrb[3].mxu0 }
 0x36f   :  { %v2289_v33 = vadd.f32 %v2279_v25, %v2275_v22 }
 0x370   :  { %v2283_v56 = vrot.slane %v2282_v24, 4 }
 0x371   :  { %v2290_v34 = vrot.slane %v2289_v33, 4 }
 0x372   :  { %v2284_v18 = vadd.f32 %v2283_v56, %v2282_v24 }
 0x373   :  { %v2291_v32 = vadd.f32 %v2290_v34, %v2289_v33 }
 0x374   :  { %v2285_v39 = vrot.slane %v2284_v18, 2 }
 0x375   :  { %v2292_v26 = vrot.slane %v2291_v32, 2 }
 0x376   :  { %v2286_v27 = vadd.f32 %v2285_v39, %v2284_v18 }
 0x377   :  { %v2293_v28 = vadd.f32 %v2292_v26, %v2291_v32 }
 0x378   :  { %v2287_v35 = vrot.slane %v2286_v27, 1 }
 0x379   :  { %v2294_v6 = vrot.slane %v2293_v28, 1 }
 0x37a   :  { %v2288_v9 = vadd.f32 %v2287_v35, %v2286_v27 }
 0x37b   :  { %v2295_v37 = vadd.f32 %v2294_v6, %v2293_v28 }
 0x37c   :  { %v2296_v40 = vmul.f32 0.0625, %v2288_v9 }
 0x37d   :  { %v2297_v41 = vmul.f32 0.0625, %v2295_v37 }
 0x37e   :  { %v2298_v43 = vsub.f32 %v2273_v21, %v2296_v40  ;;  %v2300_v44 = vsub.f32 %v2277_v23, %v2296_v40 }
 0x37f   :  { %v2299_v46 = vsub.f32 %v2275_v22, %v2297_v41  ;;  %v2301_v47 = vsub.f32 %v2279_v25, %v2297_v41 }
 0x380   :  { %v2302_v48 = vmul.f32 %v2298_v43, %v2298_v43  ;;  %v2304_v49 = vmul.f32 %v2300_v44, %v2300_v44 }
 0x381   :  { %v2303_v57 = vmul.f32 %v2299_v46, %v2299_v46  ;;  %v2305_v61 = vmul.f32 %v2301_v47, %v2301_v47 }
 0x382   :  { %v2306_v30 = vadd.f32 %v2304_v49, %v2302_v48  ;;  %v5890_v48 = vld [vmem:[%s7701_s2 + $0x80] sm:$0xff]  }
 0x383   :  { %v2313_v17 = vadd.f32 %v2305_v61, %v2303_v57  ;;  %v5891_v61 = vld [vmem:[%s7701_s2 + $0xc8] sm:$0xff]  }
 0x384   :  { %v2307_v29 = vrot.slane %v2306_v30, 4 }
 0x385   :  { %v2314_v38 = vrot.slane %v2313_v17, 4 }
 0x386   :  { %v2308_v62 = vadd.f32 %v2307_v29, %v2306_v30  ;;  %v5892_v29 = vld [vmem:[%s7701_s2 + $0x88] sm:$0xff]  }
 0x387   :  { %v2315_v63 = vadd.f32 %v2314_v38, %v2313_v17  ;;  %v5893_v38 = vld [vmem:[%s7701_s2 + $0xd0] sm:$0xff]  }
 0x388   :  { %v2309_v0 = vrot.slane %v2308_v62, 2 }
 0x389   :  { %v2316_v1 = vrot.slane %v2315_v63, 2 }
 0x38a   :  { %v2310_v4 = vadd.f32 %v2309_v0, %v2308_v62  ;;  %v5894_v62 = vld [vmem:[%s7701_s2 + $0x90] sm:$0xff]   ;;  %v5896_v0 = vld [vmem:[%s7701_s2 + $0x98] sm:$0xff]  }
 0x38b   :  { %v2317_v7 = vadd.f32 %v2316_v1, %v2315_v63  ;;  %v5895_v63 = vld [vmem:[%s7701_s2 + $0xd8] sm:$0xff]   ;;  %v5897_v1 = vld [vmem:[%s7701_s2 + $0xe0] sm:$0xff]  }
 0x38c   :  { %v2311_v8 = vrot.slane %v2310_v4, 1 }
 0x38d   :  { %v2318_v16 = vrot.slane %v2317_v7, 1 }
 0x38e   :  { %v2312_v59 = vadd.f32 %v2311_v8, %v2310_v4  ;;  %v5898_v4 = vld [vmem:[%s7701_s2 + $0xa0] sm:$0xff]   ;;  %v5900_v8 = vld [vmem:[%s7701_s2 + $0xa8] sm:$0xff]  }
 0x38f   :  { %v2319_v45 = vadd.f32 %v2318_v16, %v2317_v7  ;;  %v5899_v7 = vld [vmem:[%s7701_s2 + $0xe8] sm:$0xff]   ;;  %v5901_v16 = vld [vmem:[%s7701_s2 + $0xf0] sm:$0xff]  }
 0x390   :  { %v2320_v5 = vmul.f32 0.0625, %v2312_v59  ;;  %v5902_v59 = vld [vmem:[%s7701_s2 + $0xb0] sm:$0xff]  }
 0x391   :  { %v2321_v10 = vmul.f32 0.0625, %v2319_v45  ;;  %v5903_v45 = vld [vmem:[%s7701_s2 + $0xf8] sm:$0xff]  }
 0x392   :  { %v2322_v51 = vadd.f32 1e-05, %v2320_v5  ;;  %v5904_v5 = vld [vmem:[%s7701_s2 + $0xb8] sm:$0xff]  }
 0x393   :  { %v2323_v11 = vadd.f32 1e-05, %v2321_v10  ;;  %v5905_v10 = vld [vmem:[%s7701_s2 + $0x140] sm:$0xff]  }
 0x394   :  { %5965 = vrsqrt.f32 %v2322_v51  ;;  %v5906_v51 = vld [vmem:[%s7701_s2 + $0x100] sm:$0xff]  }
 0x395   :  { %5967 = vrsqrt.f32 %v2323_v11  ;;  %v5907_v11 = vld [vmem:[%s7701_s2 + $0x148] sm:$0xff]  }
 0x39e   :  { %v5966_v53 = vpop.eup %5965 }
 0x39f   :  { %v5968_v12 = vpop.eup %5967 }
 0x3a0   :  { %v2328_v13 = vcombine.low %v5966_v53, %v5968_v12  ;;  %v5908_v53 = vld [vmem:[%s7701_s2 + $0x108] sm:$0xff]   ;;  %v5909_v12 = vld [vmem:[%s7701_s2 + $0x150] sm:$0xff]  }
 0x3a2   :  { %v2335_v50 = vrot.slane %v2328_v13, %v6433_v42  ;;  %v5910_v13 = vld [vmem:[%s7701_s2 + $0x110] sm:$0xff]  }
 0x3a4   :  { %v2342_v14 = vrot.slane %v2335_v50, %v6433_v42  ;;  %v5911_v50 = vld [vmem:[%s7701_s2 + $0x158] sm:$0xff]  }
 0x3a6   :  { %v2344_v15 = vmul.f32 %v2342_v14, %v994_v54  ;;  %v5912_v54 = vld [vmem:[%s7701_s2 + $0x118] sm:$0xff]   ;;  %v5913_v14 = vld [vmem:[%s7701_s2 + $0x160] sm:$0xff]  }
 0x3a8   :  { %v2349_v31 = vrot.slane %v2344_v15, %v6442_v52  ;;  %v2353_v55 = vrot.slane %v2344_v15, %v6446_v60  ;;  %v5915_v15 = vld [vmem:[%s7701_s2 + $0x168] sm:$0xff]  }
 0x3aa   :  { %v2356_v21 = vmul.f32 %v2349_v31, %v2298_v43  ;;  %v2357_v22 = vmul.f32 %v2353_v55, %v2299_v46  ;;  %v2358_v23 = vmul.f32 %v2349_v31, %v2300_v44  ;;  %v2359_v24 = vmul.f32 %v2353_v55, %v2301_v47  ;;  %v5916_v31 = vld [vmem:[%s7701_s2 + $0x128] sm:$0xff]   ;;  %v5917_v55 = vld [vmem:[%s7701_s2 + $0x170] sm:$0xff]  }
 0x3ac   :  { %v2371_v25 = vadd.f32 %v2364_v19, %v2356_v21  ;;  %v2372_v33 = vadd.f32 %v2368_v20, %v2357_v22  ;;  %v2373_v42 = vadd.f32 %v2364_v19, %v2358_v23  ;;  %v2374_v56 = vadd.f32 %v2368_v20, %v2359_v24  ;;  %v5918_v19 = vld [vmem:[%s7701_s2 + $0x130] sm:$0xff]   ;;  %v5919_v20 = vld [vmem:[%s7701_s2 + $0x178] sm:$0xff]   ;;  %v5921_v22 = vld [vmem:[%s7666_s10 + $0x40] sm:$0xff]  }
 0x3ad   :  { %v5920_v21 = vld [vmem:[%s7701_s2 + $0x138] sm:$0xff]   ;;  %v5922_v23 = vld [vmem:[%s7666_s10] sm:$0xff]   ;;  %v5923_v24 = vld [vmem:[%s7666_s10 + $0x48] sm:$0xff]  }
 0x3ae   :  { %v2375_v34 = vmax.f32 %v2371_v25, 0.0  ;;  %v2376_v18 = vmax.f32 %v2372_v33, 0.0  ;;  %v2377_v32 = vmax.f32 %v2373_v42, 0.0  ;;  %v2378_v39 = vmax.f32 %v2374_v56, 0.0  ;;  %v5924_v25 = vld [vmem:[%s7666_s10 + $0x8] sm:$0xff]   ;;  %v5925_v33 = vld [vmem:[%s7666_s10 + $0x50] sm:$0xff]  }
 0x3af   :  { %v5926_v42 = vld [vmem:[%s7666_s10 + $0x10] sm:$0xff]   ;;  %v5927_v56 = vld [vmem:[%s7666_s10 + $0x58] sm:$0xff]  }
 0x3b0   :  { %v2481_v26 = vrot.slane %v2375_v34, 7  ;;  %v2483_v27 = vrot.slane %v2377_v32, 7  ;;  %v2485_v28 = vrot.slane %v2378_v39, 7  ;;  %v2493_v35 = vrot.slane %v2375_v34, 1 }
 0x3b1   :  { %v2482_v6 = vrot.slane %v2376_v18, 7  ;;  %v2508_v9 = vpack.c.bf16 %v2378_v39, %v2376_v18  ;;  %v2507_v37 = vpack.c.bf16 %v2377_v32, %v2375_v34  ;;  %v2496_v60 = vrot.slane %v2376_v18, 1  ;;  %v5928_v34 = vld [vmem:[%s7666_s10 + $0x18] sm:$0xff]   ;;  %v5929_v18 = vld [vmem:[%s7666_s10 + $0x60] sm:$0xff]  }
 0x3b2   :  { %v2484_v40 = vsel %vm83_vm2, %v2481_v26, %v2483_v27  ;;  %v2497_v41 = vrot.slane %v2378_v39, 1  ;;  %v2494_v43 = vrot.slane %v2377_v32, 1  ;;  %v5930_v32 = vld [vmem:[%s7666_s10 + $0x20] sm:$0xff]   ;;  %v5931_v39 = vld [vmem:[%s7666_s10 + $0x68] sm:$0xff]   ;;  %v5933_v27 = vld [vmem:[%s7666_s10 + $0x70] sm:$0xff]  }
 0x3b3   :  { %v2486_v44 = vsel %vm83_vm2, %v2482_v6, %v2485_v28  ;;  %v5121_v46 = vpack.c.bf16 %v2484_v40, %v2481_v26  ;;  %v5932_v26 = vld [vmem:[%s7666_s10 + $0x28] sm:$0xff]   ;;  %v5934_v28 = vld [vmem:[%s7666_s10 + $0x30] sm:$0xff]  }
 0x3b4   :  { %v5117_v47 = vpack.c.bf16 %v2486_v44, %v2482_v6  ;;  %v2498_v49 = vsel %vm89_vm3, %v2496_v60, %v2497_v41  ;;  %v2495_v57 = vsel %vm89_vm3, %v2493_v35, %v2494_v43  ;;  %v5935_v6 = vld [vmem:[%s7666_s10 + $0x78] sm:$0xff]  }
 0x3b5   :  { %v5124_v30 = vpack.c.bf16 %v2497_v41, %v2498_v49  ;;  %v7126_v17 = vpack.c.bf16 %v2494_v43, %v2495_v57  ;;  %v5936_v41 = vld [vmem:[%s7666_s10 + $0x38] sm:$0xff]  }
 0x3b6   :  { %5118 = vmatprep.mubr.msk.bf16.mxu1 %vm6506_vm6, %v5117_v47 }
 0x3b7   :  { %5122 = vmatmul.mubr.msk.bf16.vlgmr.msra.gmra.mrb[8].mxu1 %vm6506_vm6, %v5121_v46 }
 0x3b8   :  { %5233 = vmatpush3.bf16.msra.mxu1 %v5890_v48  ;;  %2872 = vmatprep.mubr.bf16.mxu1 %v2508_v9 }
 0x3b9   :  { %5234 = vmatprep.subr.bf16.mxu1 %v5891_v61 }
 0x3bc   :  { %5235 = vmatpush3.bf16.msra.mxu1 %v5892_v29 }
 0x3bd   :  { %5236 = vmatprep.subr.bf16.mxu1 %v5893_v38 }
 0x3c0   :  { %5237 = vmatpush3.bf16.msra.mxu1 %v5894_v62 }
 0x3c1   :  { %5238 = vmatprep.subr.bf16.mxu1 %v5895_v63 }
 0x3c4   :  { %5239 = vmatpush3.bf16.msra.mxu1 %v5896_v0 }
 0x3c5   :  { %5240 = vmatprep.subr.bf16.mxu1 %v5897_v1 }
 0x3c8   :  { %5241 = vmatpush3.bf16.msra.mxu1 %v5898_v4 }
 0x3c9   :  { %5242 = vmatprep.subr.bf16.mxu1 %v5899_v7 }
 0x3cc   :  { %5243 = vmatpush3.bf16.msra.mxu1 %v5900_v8 }
 0x3cd   :  { %5244 = vmatprep.subr.bf16.mxu1 %v5901_v16 }
 0x3d0   :  { %5245 = vmatpush3.bf16.msra.mxu1 %v5902_v59 }
 0x3d1   :  { %5246 = vmatprep.subr.bf16.mxu1 %v5903_v45 }
 0x3d4   :  { %5247 = vmatpush3.bf16.msra.mxu1 %v5904_v5 }
 0x3d5   :  { %5254 = vmatprep.subr.bf16.mxu1 %v5905_v10 }
 0x3d7   :  { %2873 = vmatmul.mubr.bf16.vlgmr.msra.gmra.mrb[12].mxu1 %v2507_v37 }
 0x3d8   :  { %5255 = vmatpush3.bf16.msra.mxu1 %v5906_v51  ;;  %5125 = vmatprep.mubr.msk.bf16.mxu1 %vm6848_vm7, %v5124_v30 }
 0x3d9   :  { %5256 = vmatprep.subr.bf16.mxu1 %v5907_v11 }
 0x3dc   :  { %5257 = vmatpush3.bf16.msra.mxu1 %v5908_v53 }
 0x3dd   :  { %5258 = vmatprep.subr.bf16.mxu1 %v5909_v12 }
 0x3e0   :  { %5259 = vmatpush3.bf16.msra.mxu1 %v5910_v13 }
 0x3e1   :  { %5260 = vmatprep.subr.bf16.mxu1 %v5911_v50 }
 0x3e4   :  { %5261 = vmatpush3.bf16.msra.mxu1 %v5912_v54 }
 0x3e5   :  { %5262 = vmatprep.subr.bf16.mxu1 %v5913_v14 }
 0x3e8   :  { %5263 = vmatpush3.bf16.msra.mxu1 %v5914_v58 }
 0x3e9   :  { %5264 = vmatprep.subr.bf16.mxu1 %v5915_v15 }
 0x3ec   :  { %5265 = vmatpush3.bf16.msra.mxu1 %v5916_v31 }
 0x3ed   :  { %5266 = vmatprep.subr.bf16.mxu1 %v5917_v55 }
 0x3f0   :  { %5267 = vmatpush3.bf16.msra.mxu1 %v5918_v19 }
 0x3f1   :  { %5268 = vmatprep.subr.bf16.mxu1 %v5919_v20 }
 0x3f4   :  { %5269 = vmatpush3.bf16.msra.mxu1 %v5920_v21  ;;  %v2475_v21 = vld [vmem:[%s7667_s8] sm:$0x1] }
 0x3f5   :  { %5276 = vmatprep.subr.bf16.mxu1 %v5921_v22 }
 0x3f7   :  { %5128 = vmatmul.mubr.msk.bf16.vlgmr.msra.gmra.mrb[16].mxu1 %vm6848_vm7, %v7126_v17 }
 0x3f8   :  { %5277 = vmatpush3.bf16.msra.mxu1 %v5922_v23 }
 0x3f9   :  { %5278 = vmatprep.subr.bf16.mxu1 %v5923_v24 }
 0x3fc   :  { %5279 = vmatpush3.bf16.msra.mxu1 %v5924_v25  ;;  %v5129_v25 = vld [vmem:[%s7668_s9] ss:$0 sm:$0xff] }
 0x3fd   :  { %5280 = vmatprep.subr.bf16.mxu1 %v5925_v33 }
 0x400   :  { %5281 = vmatpush3.bf16.msra.mxu1 %v5926_v42 }
 0x401   :  { %5282 = vmatprep.subr.bf16.mxu1 %v5927_v56 }
 0x404   :  { %5283 = vmatpush3.bf16.msra.mxu1 %v5928_v34 }
 0x405   :  { %5284 = vmatprep.subr.bf16.mxu1 %v5929_v18 }
 0x408   :  { %5285 = vmatpush3.bf16.msra.mxu1 %v5930_v32 }
 0x409   :  { %5286 = vmatprep.subr.bf16.mxu1 %v5931_v39 }
 0x40c   :  { %5287 = vmatpush3.bf16.msra.mxu1 %v5932_v26 }
 0x40d   :  { %5288 = vmatprep.subr.bf16.mxu1 %v5933_v27 }
 0x410   :  { %5289 = vmatpush3.bf16.msra.mxu1 %v5934_v28 }
 0x411   :  { %5290 = vmatprep.subr.bf16.mxu1 %v5935_v6 }
 0x414   :  { %5291 = vmatpush3.bf16.msra.mxu1 %v5936_v41  ;;  %v5938_v41 = vld [vmem:[%s7666_s10 + $0x88] sm:$0xff]  }
 0x415   :  { %5366 = vmatprep.subr.bf16.mxu1 %v6101_v2 }
 0x48a   :  { %v5226_v35 = vpop.f32.mrb[8].mxu1 }
 0x48b   :  { %v5227_v9 = vpop.f32.mrb[9].mxu1 }
 0x48c   :  { %v5228_v37 = vadd.f32 %v5227_v9, %v5226_v35  ;;  %v5229_v60 = vpop.f32.mrb[10].mxu1  ;;  %v5937_v9 = vld [vmem:[%s7666_s10 + $0x80] sm:$0xff]  }
 0x48d   :  { %v5230_v40 = vpop.f32.mrb[11].mxu1 }
 0x48e   :  { %v5231_v43 = vadd.f32 %v5230_v40, %v5229_v60 }
 0x4aa   :  { %v5248_v44 = vpop.f32.mrb[12].mxu1 }
 0x4ab   :  { %v5249_v46 = vpop.f32.mrb[13].mxu1 }
 0x4ac   :  { %v5250_v47 = vadd.f32 %v5249_v46, %v5248_v44  ;;  %v5251_v48 = vpop.f32.mrb[14].mxu1  ;;  %v5941_v44 = vld [vmem:[%s7666_s10 + $0xa0] sm:$0xff]   ;;  %v5942_v46 = vld [vmem:[%s7666_s10 + $0xa8] sm:$0xff]  }
 0x4ad   :  { %v5252_v49 = vpop.f32.mrb[15].mxu1 }
 0x4ae   :  { %v2875_v57 = vadd.f32 %v5250_v47, %v5228_v37  ;;  %v5253_v61 = vadd.f32 %v5252_v49, %v5251_v48  ;;  %v5943_v47 = vld [vmem:[%s7666_s10 + $0xb0] sm:$0xff]   ;;  %v5944_v48 = vld [vmem:[%s7666_s10 + $0xb8] sm:$0xff]   ;;  %v5945_v49 = vld [vmem:[%s7669_s13] sm:$0xff]  }
 0x4b0   :  { %v2878_v30 = vadd.f32 %v5253_v61, %v5231_v43  ;;  %v5939_v43 = vld [vmem:[%s7666_s10 + $0x90] sm:$0xff]   ;;  %v5948_v61 = vld [vmem:[%s7669_s13 + $0x18] sm:$0xff]  }
 0x4ca   :  { %v5270_v17 = vpop.f32.mrb[16].mxu1 }
 0x4cb   :  { %v5271_v29 = vpop.f32.mrb[17].mxu1 }
 0x4cc   :  { %v5272_v38 = vadd.f32 %v5271_v29, %v5270_v17  ;;  %v5273_v62 = vpop.f32.mrb[18].mxu1 }
 0x4cd   :  { %v5274_v63 = vpop.f32.mrb[19].mxu1 }
 0x4ce   :  { %v2916_v0 = vadd.f32 %v5272_v38, %v2875_v57  ;;  %v5275_v1 = vadd.f32 %v5274_v63, %v5273_v62  ;;  %v5946_v57 = vld [vmem:[%s7669_s13 + $0x8] sm:$0xff]  }
 0x4d0   :  { %v2919_v4 = vadd.f32 %v5275_v1, %v2878_v30 }
 0x4d2   :  { %v2922_v7 = vadd.f32 %v2919_v4, %v2916_v0 }
 0x4d4   :  { %v2923_v8 = vrot.slane %v2922_v7, 4 }
 0x4d6   :  { %v2924_v16 = vadd.f32 %v2923_v8, %v2922_v7 }
 0x4d8   :  { %v2925_v59 = vrot.slane %v2924_v16, 2 }
 0x4da   :  { %v2926_v45 = vadd.f32 %v2925_v59, %v2924_v16 }
 0x4dc   :  { %v2927_v5 = vrot.slane %v2926_v45, 1 }
 0x4de   :  { %v2928_v10 = vadd.f32 %v2927_v5, %v2926_v45 }
 0x4e0   :  { %v2929_v51 = vmul.f32 0.0625, %v2928_v10 }
 0x4e2   :  { %v2930_v11 = vsub.f32 %v2916_v0, %v2929_v51  ;;  %v2931_v53 = vsub.f32 %v2919_v4, %v2929_v51 }
 0x4e4   :  { %v2932_v12 = vmul.f32 %v2930_v11, %v2930_v11  ;;  %v2933_v13 = vmul.f32 %v2931_v53, %v2931_v53 }
 0x4e6   :  { %v2934_v50 = vadd.f32 %v2933_v13, %v2932_v12 }
 0x4e8   :  { %v2935_v54 = vrot.slane %v2934_v50, 4 }
 0x4ea   :  { %v2936_v14 = vadd.f32 %v2935_v54, %v2934_v50 }
 0x4ec   :  { %v2937_v58 = vrot.slane %v2936_v14, 2 }
 0x4ee   :  { %v2938_v15 = vadd.f32 %v2937_v58, %v2936_v14 }
 0x4f0   :  { %v2939_v31 = vrot.slane %v2938_v15, 1 }
 0x4f2   :  { %v2940_v55 = vadd.f32 %v2939_v31, %v2938_v15 }
 0x4f4   :  { %v2941_v19 = vmul.f32 0.0625, %v2940_v55 }
 0x4f6   :  { %v2942_v20 = vadd.f32 1e-05, %v2941_v19 }
 0x4f8   :  { %5969 = vrsqrt.f32 %v2942_v20 }
 0x502   :  { %v5970_v22 = vpop.eup %5969 }
 0x503   :  { %v2944_v23 = vmul.f32 %v5970_v22, %v2475_v21 }
 0x505   :  { %v2949_v24 = vrot.slane %v2944_v23, %v6442_v52 }
 0x507   :  { %v2951_v33 = vmul.f32 %v2949_v24, %v2930_v11  ;;  %v2952_v42 = vmul.f32 %v2949_v24, %v2931_v53 }
 0x509   :  { %v2960_v56 = vadd.f32 %v5129_v25, %v2952_v42  ;;  %v2959_v34 = vadd.f32 %v5129_v25, %v2951_v33 }
 0x50b   :  { %v2961_v18 = vmax.f32 %v2959_v34, 0.0  ;;  %v2962_v32 = vmax.f32 %v2960_v56, 0.0  ;;  %v3011_v56 = vld [vmem:[%s7671_s11] sm:$0x1] }
 0x50d   :  { %v3015_v39 = vrot.slane %v2961_v18, 7  ;;  %v3016_v26 = vrot.slane %v2962_v32, 7  ;;  %v3021_v27 = vrot.slane %v2961_v18, 1  ;;  %v3022_v28 = vrot.slane %v2962_v32, 1 }
 0x50e   :  { %v3028_v35 = vpack.c.bf16 %v2962_v32, %v2961_v18 }
 0x50f   :  { %v3017_v6 = vsel %vm83_vm2, %v3015_v39, %v3016_v26  ;;  %v3023_v37 = vsel %vm89_vm3, %v3021_v27, %v3022_v28 }
 0x510   :  { %3206 = vmatprep.mubr.bf16.mxu1 %v3028_v35  ;;  %v5156_v60 = vpack.c.bf16 %v3017_v6, %v3015_v39  ;;  %v5159_v40 = vpack.c.bf16 %v3022_v28, %v3023_v37  ;;  %v5161_v39 = vld [vmem:[%s7672_s12] ss:$0 sm:$0xff] }
 0x511   :  { %v7352_v37 = vld [vmem:[%s7670_s14] sm:$0xff]  }
 0x512   :  { %5157 = vmatmul.mubr.msk.bf16.vlgmr.msra.gmra.mrb[20].mxu1 %vm6506_vm6, %v5156_v60 }
 0x513   :  { %5367 = vmatpush3.bf16.msra.mxu1 %v5937_v9  ;;  %5382 = vmatprep.mubr.msk.bf16.mxu1 %vm6104_vm8, %v6101_v2 }
 0x514   :  { %5368 = vmatprep.subr.bf16.mxu1 %v6101_v2 }
 0x517   :  { %5369 = vmatpush3.bf16.msra.mxu1 %v5938_v41  ;;  %v5162_v41 = vld [vmem:[%s7673_s15] ss:$0 sm:$0xff]  ;;  %s6106_s15 = smov 64  }
 0x518   :  { %5370 = vmatprep.subr.bf16.mxu1 %v6101_v2 }
 0x51b   :  { %5371 = vmatpush3.bf16.msra.mxu1 %v5939_v43 }
 0x51c   :  { %5372 = vmatprep.subr.bf16.mxu1 %v6101_v2 }
 0x51f   :  { %5373 = vmatpush3.bf16.msra.mxu1 %v5940_v36 }
 0x520   :  { %5374 = vmatprep.subr.bf16.mxu1 %v6101_v2 }
 0x523   :  { %5375 = vmatpush3.bf16.msra.mxu1 %v5941_v44 }
 0x524   :  { %5376 = vmatprep.subr.bf16.mxu1 %v6101_v2 }
 0x527   :  { %5377 = vmatpush3.bf16.msra.mxu1 %v5942_v46 }
 0x528   :  { %5378 = vmatprep.subr.bf16.mxu1 %v6101_v2 }
 0x52b   :  { %5379 = vmatpush3.bf16.msra.mxu1 %v5943_v47 }
 0x52c   :  { %5380 = vmatprep.subr.bf16.mxu1 %v6101_v2 }
 0x52f   :  { %5381 = vmatpush3.bf16.msra.mxu1 %v5944_v48 }
 0x530   :  { %5386 = vmatprep.subr.bf16.mxu1 %v6101_v2 }
 0x532   :  { %5383 = vmatmul.mubr.msk.bf16.vlgmr.msra.gmra.mrb[24].mxu1 %vm6848_vm7, %v5159_v40  ;;  %v6105_v40 = vmov 0  }
 0x533   :  { %5394 = vmatprep.mubr.msk.bf16.mxu1 %vm6104_vm8, %v6101_v2  ;;  %5387 = vmatpush3.bf16.msra.mxu1 %v5945_v49 }
 0x534   :  { %5388 = vmatprep.subr.bf16.mxu1 %v6101_v2 }
 0x537   :  { %5389 = vmatpush3.bf16.msra.mxu1 %v5946_v57 }
 0x538   :  { %5390 = vmatprep.subr.bf16.mxu1 %v6101_v2 }
 0x53b   :  { %5391 = vmatpush3.bf16.msra.mxu1 %v5947_v3 }
 0x53c   :  { %5392 = vmatprep.subr.bf16.mxu1 %v6101_v2 }
 0x53f   :  { %5393 = vmatpush3.bf16.msra.mxu1 %v5948_v61 }
 0x540   :  { %5398 = vmatprep.subr.bf16.mxu1 %v6101_v2 }
 0x5e5   :  { %v5292_v30 = vpop.f32.mrb[20].mxu1 }
 0x5e6   :  { %v5293_v17 = vpop.f32.mrb[21].mxu1 }
 0x5e7   :  { %v5294_v29 = vadd.f32 %v5293_v17, %v5292_v30  ;;  %v5295_v38 = vpop.f32.mrb[22].mxu1 }
 0x5e8   :  { %v5296_v62 = vpop.f32.mrb[23].mxu1 }
 0x5e9   :  { %v5297_v63 = vadd.f32 %v5296_v62, %v5295_v38 }
 0x605   :  { %v3249_v0 = vpop.f32.mrb[24].mxu1 }
 0x606   :  { %v3250_v1 = vadd.f32 %v5294_v29, %v3249_v0  ;;  %v5384_v4 = vpop.f32.mrb[25].mxu1 }
 0x607   :  { %v3252_v7 = vpop.f32.mrb[26].mxu1 }
 0x608   :  { %v3253_v8 = vadd.f32 %v5297_v63, %v3252_v7  ;;  %v5385_v16 = vpop.f32.mrb[27].mxu1  ;;  %v3257_v59 = vsel %vm3256_vm9, %v3250_v1, 0.0 }
 0x60a   :  { %v3258_v45 = vsel %vm3256_vm9, %v3253_v8, 0.0 }
 0x60b   :  { %v3259_v5 = vadd.f32 %v3258_v45, %v3257_v59 }
 0x60d   :  { %v3260_v10 = vrot.slane %v3259_v5, 4 }
 0x60f   :  { %v3261_v51 = vadd.f32 %v3260_v10, %v3259_v5 }
 0x611   :  { %v3262_v11 = vrot.slane %v3261_v51, 2 }
 0x613   :  { %v3263_v53 = vadd.f32 %v3262_v11, %v3261_v51 }
 0x615   :  { %v3264_v12 = vrot.slane %v3263_v53, 1 }
 0x617   :  { %v3265_v13 = vadd.f32 %v3264_v12, %v3263_v53 }
 0x619   :  { %v3266_v50 = vmul.f32 0.0625, %v3265_v13 }
 0x61b   :  { %v3267_v54 = vsub.f32 %v3250_v1, %v3266_v50  ;;  %v3268_v14 = vsub.f32 %v3253_v8, %v3266_v50 }
 0x61d   :  { %v3269_v58 = vmul.f32 %v3267_v54, %v3267_v54  ;;  %v3270_v15 = vmul.f32 %v3268_v14, %v3268_v14 }
 0x61f   :  { %v3271_v31 = vsel %vm3256_vm9, %v3269_v58, 0.0  ;;  %v3272_v55 = vsel %vm3256_vm9, %v3270_v15, 0.0 }
 0x620   :  { %v3273_v19 = vadd.f32 %v3272_v55, %v3271_v31 }
 0x622   :  { %v3274_v20 = vrot.slane %v3273_v19, 4 }
 0x624   :  { %v3275_v21 = vadd.f32 %v3274_v20, %v3273_v19 }
 0x626   :  { %v3276_v22 = vrot.slane %v3275_v21, 2 }
 0x628   :  { %v3277_v23 = vadd.f32 %v3276_v22, %v3275_v21 }
 0x62a   :  { %v3278_v24 = vrot.slane %v3277_v23, 1 }
 0x62c   :  { %v3279_v25 = vadd.f32 %v3278_v24, %v3277_v23 }
 0x62e   :  { %v3280_v33 = vmul.f32 0.0625, %v3279_v25 }
 0x630   :  { %v3281_v42 = vadd.f32 1e-05, %v3280_v33 }
 0x632   :  { %5971 = vrsqrt.f32 %v3281_v42 }
 0x63c   :  { %v5972_v34 = vpop.eup %5971 }
 0x63d   :  { %v3283_v18 = vmul.f32 %v5972_v34, %v3011_v56 }
 0x63f   :  { %v3288_v32 = vrot.slane %v3283_v18, %v6442_v52  ;;  %v7359_v52 = vld [vmem:[%s7670_s14 + $0x8] sm:$0xff]  }
 0x641   :  { %v3290_v26 = vmul.f32 %v3288_v32, %v3267_v54  ;;  %v3291_v27 = vmul.f32 %v3288_v32, %v3268_v14 }
 0x643   :  { %v3298_v28 = vadd.f32 %v5161_v39, %v3290_v26  ;;  %v3299_v35 = vadd.f32 %v5161_v39, %v3291_v27 }
 0x645   :  { %v3300_v6 = vmax.f32 %v3298_v28, 0.0  ;;  %v3301_v9 = vmax.f32 %v3299_v35, 0.0 }
 0x647   :  { %v3329_v60 = vpack.c.bf16 %v3301_v9, %v3300_v6 }
 0x649   :  { %5395 = vmatmul.mubr.msk.bf16.vlgmr.msra.gmra.mrb[28].mxu1 %vm3256_vm9, %v3329_v60 }
 0x64a   :  { %5399 = vmatpush3.bf16.msra.mxu1 %v7352_v37  ;;  %5402 = vmatprep.mubr.msk.bf16.mxu1 %vm6104_vm8, %v6101_v2 }
 0x64b   :  { %5400 = vmatprep.subr.bf16.mxu1 %v6101_v2 }
 0x64e   :  { %5401 = vmatpush3.bf16.msra.mxu1 %v7359_v52 }
 0x64f   :  { %5406 = vmatprep.subr.bf16.mxu1 %v6101_v2 }
 0x651   :  { %5403 = vmatmul.mubr.bf16.vlgmr.msra.gmra.mrb[32].mxu1 %v6105_v40 }
 0x652   :  { %5407 = vmatpush3.bf16.msra.mxu1 %v7352_v37  ;;  %5410 = vmatprep.mubr.msk.bf16.mxu1 %vm6104_vm8, %v6101_v2 }
 0x653   :  { %5408 = vmatprep.subr.bf16.mxu1 %v6101_v2 }
 0x656   :  { %5409 = vmatpush3.bf16.msra.mxu1 %v7359_v52 }
 0x657   :  { %5414 = vmatprep.subr.bf16.mxu1 %v6101_v2 }
 0x71c   :  { %v3397_v43 = vpop.f32.mrb[28].mxu1 }
 0x71d   :  { %v3398_v36 = vadd.f32 %v5162_v41, %v3397_v43  ;;  %v5396_v44 = vpop.f32.mrb[29].mxu1 }
 0x71e   :  { %v3400_v46 = vpop.f32.mrb[30].mxu1 }
 0x71f   :  { %v3401_v47 = vadd.f32 %v5162_v41, %v3400_v46  ;;  %v5397_v48 = vpop.f32.mrb[31].mxu1  ;;  %v3490_v49 = vrot.slane %v3398_v36, 1  ;;  %v3565_v57 = vrot.slane %v3398_v36, 2  ;;  %v3642_v3 = vrot.slane %v3398_v36, 3 }
 0x720   :  { %v3719_v61 = vrot.slane %v3398_v36, 4  ;;  %v3796_v30 = vrot.slane %v3398_v36, 5  ;;  %v3873_v17 = vrot.slane %v3398_v36, 6  ;;  %v3950_v29 = vrot.slane %v3398_v36, 7 }
 0x721   :  { %v3405_v38 = vrot.slane %v3401_v47, 7  ;;  %v3492_v62 = vsel %vm83_vm2, %v3490_v49, %v3401_v47  ;;  %v3567_v63 = vrot.slane %v3401_v47, 1  ;;  %v3644_v0 = vrot.slane %v3401_v47, 2 }
 0x722   :  { %v3721_v1 = vrot.slane %v3401_v47, 3  ;;  %v3798_v4 = vrot.slane %v3401_v47, 4  ;;  %v3875_v7 = vrot.slane %v3401_v47, 5  ;;  %v3952_v8 = vrot.slane %v3401_v47, 6 }
 0x723   :  { %v3407_v16 = vsel %vm83_vm2, %v3398_v36, %v3405_v38  ;;  %v7379_v59 = vsel %vm83_vm2, %v3565_v57, %v3567_v63  ;;  %v7382_v45 = vsel %vm83_vm2, %v3642_v3, %v3644_v0 }
 0x724   :  { %v3458_v5 = vpop.f32.mrb[32].mxu1  ;;  %v7385_v10 = vsel %vm83_vm2, %v3719_v61, %v3721_v1  ;;  %v7388_v51 = vsel %vm83_vm2, %v3796_v30, %v3798_v4  ;;  %v7391_v11 = vsel %vm83_vm2, %v3873_v17, %v3875_v7  ;;  %v7394_v53 = vsel %vm83_vm2, %v3950_v29, %v3952_v8 }
 0x725   :  { %v3464_v12 = vadd.f32 %v3458_v5, %v3407_v16  ;;  %v5404_v13 = vpop.f32.mrb[33].mxu1 }
 0x726   :  { %v3461_v50 = vpop.f32.mrb[34].mxu1 }
 0x727   :  { %5973 = vtanh.f32 %v3464_v12  ;;  %v5405_v54 = vpop.f32.mrb[35].mxu1  ;;  %v5170_v58 = vmul.f32 -1.442695, %v3464_v12 }
 0x729   :  { %5975 = vpow2.f32 %v5170_v58 }
 0x731   :  { %v5974_v14 = vpop.eup %5973 }
 0x732   :  { %3474 = vrot.lane.b32.xlu0 %v5974_v14, %s6106_s15 }
 0x733   :  { %v5976_v15 = vpop.eup %5975 }
 0x734   :  { %v3468_v31 = vadd.f32 1.0, %v5976_v15 }
 0x736   :  { %5977 = vrcp.f32 %v3468_v31 }
 0x740   :  { %v5978_v55 = vpop.eup %5977 }
 0x741   :  { %v3472_v21 = vmul.f32 0.0, %v5978_v55 }
 0x7a4   :  { %v3475_v19 = vpop.permute.xlu0 %3474 }
 0x7a5   :  { %v3477_v20 = vmul.f32 %v5978_v55, %v3475_v19 }
 0x7a7   :  { %3479 = vrot.lane.b32.xlu0 %v3477_v20, %s6107_s1 }
 0x819   :  { %v3480_v22 = vpop.permute.xlu0 %3479 }
 0x81a   :  { %v3482_v23 = vadd.f32 %v3480_v22, %v3472_v21 }
 0x81c   :  { %5979 = vtanh.f32 %v3482_v23 }
 0x826   :  { %v5980_v24 = vpop.eup %5979 }
 0x827   :  { %3485 = vrot.lane.b32.xlu1 %v5980_v24, %s6106_s15 }
 0x899   :  { %v3486_v25 = vpop.permute.xlu1 %3485 }
 0x89a   :  { %v7399_v33 = vmul.f32 %v5978_v55, %v3486_v25 }
 0x89c   :  { %v3493_v42 = vpack.c.bf16 %v7399_v33, %v7399_v33 }
 0x89e   :  { %3495 = vrot.lane.b32.xlu1 %v3493_v42, %s6107_s1 }
 0x910   :  { %v3496_v56 = vpop.permute.xlu1 %3495 }
 0x911   :  { %5411 = vmatmul.mubr.msk.bf16.vlgmr.msra.gmra.mrb[36].mxu1 %vm3420_vm10, %v3496_v56 }
 0x912   :  { %5415 = vmatpush3.bf16.msra.mxu1 %v7352_v37  ;;  %5418 = vmatprep.mubr.msk.bf16.mxu1 %vm6104_vm8, %v6101_v2 }
 0x913   :  { %5416 = vmatprep.subr.bf16.mxu1 %v6101_v2 }
 0x916   :  { %5417 = vmatpush3.bf16.msra.mxu1 %v7359_v52 }
 0x917   :  { %5422 = vmatprep.subr.bf16.mxu1 %v6101_v2 }
 0x9e4   :  { %v3534_v34 = vpop.f32.mrb[36].mxu1 }
 0x9e5   :  { %v3540_v18 = vadd.f32 %v3534_v34, %v3492_v62  ;;  %v5412_v32 = vpop.f32.mrb[37].mxu1 }
 0x9e6   :  { %v3537_v39 = vpop.f32.mrb[38].mxu1 }
 0x9e7   :  { %5981 = vtanh.f32 %v3540_v18  ;;  %v5413_v26 = vpop.f32.mrb[39].mxu1  ;;  %v5172_v28 = vmul.f32 -1.442695, %v3540_v18 }
 0x9e9   :  { %5983 = vpow2.f32 %v5172_v28 }
 0x9f1   :  { %v5982_v27 = vpop.eup %5981 }
 0x9f2   :  { %3550 = vrot.lane.b32.xlu0 %v5982_v27, %s6106_s15 }
 0x9f3   :  { %v5984_v35 = vpop.eup %5983 }
 0x9f4   :  { %v3544_v6 = vadd.f32 1.0, %v5984_v35 }
 0x9f6   :  { %5985 = vrcp.f32 %v3544_v6 }
 0xa00   :  { %v5986_v9 = vpop.eup %5985 }
 0xa01   :  { %v3548_v43 = vmul.f32 %v5986_v9, %v3482_v23 }
 0xa64   :  { %v3551_v60 = vpop.permute.xlu0 %3550 }
 0xa65   :  { %v3553_v41 = vmul.f32 %v5986_v9, %v3551_v60 }
 0xa67   :  { %3555 = vrot.lane.b32.xlu1 %v3553_v41, %s6107_s1 }
 0xad9   :  { %v3556_v36 = vpop.permute.xlu1 %3555 }
 0xada   :  { %v3558_v44 = vadd.f32 %v3556_v36, %v3548_v43 }
 0xadc   :  { %5987 = vtanh.f32 %v3558_v44 }
 0xae6   :  { %v5988_v46 = vpop.eup %5987 }
 0xae7   :  { %3561 = vrot.lane.b32.xlu0 %v5988_v46, %s6106_s15 }
 0xb59   :  { %v3562_v47 = vpop.permute.xlu0 %3561 }
 0xb5a   :  { %v3564_v48 = vmul.f32 %v5986_v9, %v3562_v47 }
 0xb5c   :  { %v3570_v49 = vpack.c.bf16 %v3564_v48, %v3564_v48  ;;  %v4028_v12 = vrot.slane %v3564_v48, 6 }
 0xb5e   :  { %3572 = vrot.lane.b32.xlu1 %v3570_v49, %s6107_s1  ;;  %v4046_v58 = vsel %vm4045_vm11, %v7399_v33, %v4028_v12 }
 0xbd0   :  { %v3573_v57 = vpop.permute.xlu1 %3572 }
 0xbd1   :  { %5419 = vmatmul.mubr.msk.bf16.vlgmr.msra.gmra.mrb[40].mxu1 %vm3420_vm10, %v3573_v57 }
 0xbd2   :  { %5423 = vmatpush3.bf16.msra.mxu1 %v7352_v37  ;;  %5426 = vmatprep.mubr.msk.bf16.mxu1 %vm6104_vm8, %v6101_v2 }
 0xbd3   :  { %5424 = vmatprep.subr.bf16.mxu1 %v6101_v2 }
 0xbd6   :  { %5425 = vmatpush3.bf16.msra.mxu1 %v7359_v52 }
 0xbd7   :  { %5430 = vmatprep.subr.bf16.mxu1 %v6101_v2 }
 0xca4   :  { %v3611_v3 = vpop.f32.mrb[40].mxu1 }
 0xca5   :  { %v3617_v61 = vadd.f32 %v3611_v3, %v7379_v59  ;;  %v5420_v30 = vpop.f32.mrb[41].mxu1 }
 0xca6   :  { %v3614_v17 = vpop.f32.mrb[42].mxu1 }
 0xca7   :  { %5989 = vtanh.f32 %v3617_v61  ;;  %v5421_v29 = vpop.f32.mrb[43].mxu1  ;;  %v5174_v62 = vmul.f32 -1.442695, %v3617_v61 }
 0xca9   :  { %5991 = vpow2.f32 %v5174_v62 }
 0xcb1   :  { %v5990_v38 = vpop.eup %5989 }
 0xcb2   :  { %3627 = vrot.lane.b32.xlu0 %v5990_v38, %s6106_s15 }
 0xcb3   :  { %v5992_v63 = vpop.eup %5991 }
 0xcb4   :  { %v3621_v0 = vadd.f32 1.0, %v5992_v63 }
 0xcb6   :  { %5993 = vrcp.f32 %v3621_v0 }
 0xcc0   :  { %v5994_v1 = vpop.eup %5993 }
 0xcc1   :  { %v3625_v8 = vmul.f32 %v5994_v1, %v3558_v44 }
 0xd24   :  { %v3628_v4 = vpop.permute.xlu0 %3627 }
 0xd25   :  { %v3630_v7 = vmul.f32 %v5994_v1, %v3628_v4 }
 0xd27   :  { %3632 = vrot.lane.b32.xlu1 %v3630_v7, %s6107_s1 }
 0xd99   :  { %v3633_v16 = vpop.permute.xlu1 %3632 }
 0xd9a   :  { %v3635_v59 = vadd.f32 %v3633_v16, %v3625_v8 }
 0xd9c   :  { %5995 = vtanh.f32 %v3635_v59 }
 0xda6   :  { %v5996_v5 = vpop.eup %5995 }
 0xda7   :  { %3638 = vrot.lane.b32.xlu0 %v5996_v5, %s6106_s15 }
 0xe19   :  { %v3639_v13 = vpop.permute.xlu0 %3638 }
 0xe1a   :  { %v3641_v50 = vmul.f32 %v5994_v1, %v3639_v13 }
 0xe1c   :  { %v3647_v54 = vpack.c.bf16 %v3641_v50, %v3641_v50  ;;  %v4031_v14 = vrot.slane %v3641_v50, 4 }
 0xe1e   :  { %v4047_v15 = vsel %vm108_vm0, %v4046_v58, %v4031_v14  ;;  %3649 = vrot.lane.b32.xlu1 %v3647_v54, %s6107_s1 }
 0xe90   :  { %v3650_v31 = vpop.permute.xlu1 %3649 }
 0xe91   :  { %5427 = vmatmul.mubr.msk.bf16.vlgmr.msra.gmra.mrb[44].mxu1 %vm3420_vm10, %v3650_v31 }
 0xe92   :  { %5431 = vmatpush3.bf16.msra.mxu1 %v7352_v37  ;;  %5434 = vmatprep.mubr.msk.bf16.mxu1 %vm6104_vm8, %v6101_v2 }
 0xe93   :  { %5432 = vmatprep.subr.bf16.mxu1 %v6101_v2 }
 0xe96   :  { %5433 = vmatpush3.bf16.msra.mxu1 %v7359_v52 }
 0xe97   :  { %5438 = vmatprep.subr.bf16.mxu1 %v6101_v2 }
 0xf64   :  { %v3688_v55 = vpop.f32.mrb[44].mxu1 }
 0xf65   :  { %v3694_v19 = vadd.f32 %v3688_v55, %v7382_v45  ;;  %v5428_v20 = vpop.f32.mrb[45].mxu1 }
 0xf66   :  { %v3691_v21 = vpop.f32.mrb[46].mxu1 }
 0xf67   :  { %5997 = vtanh.f32 %v3694_v19  ;;  %v5429_v22 = vpop.f32.mrb[47].mxu1  ;;  %v5176_v24 = vmul.f32 -1.442695, %v3694_v19 }
 0xf69   :  { %5999 = vpow2.f32 %v5176_v24 }
 0xf71   :  { %v5998_v23 = vpop.eup %5997 }
 0xf72   :  { %3704 = vrot.lane.b32.xlu0 %v5998_v23, %s6106_s15 }
 0xf73   :  { %v6000_v25 = vpop.eup %5999 }
 0xf74   :  { %v3698_v33 = vadd.f32 1.0, %v6000_v25 }
 0xf76   :  { %6001 = vrcp.f32 %v3698_v33 }
 0xf80   :  { %v6002_v42 = vpop.eup %6001 }
 0xf81   :  { %v3702_v18 = vmul.f32 %v6002_v42, %v3635_v59 }
 0xfe4   :  { %v3705_v56 = vpop.permute.xlu0 %3704 }
 0xfe5   :  { %v3707_v34 = vmul.f32 %v6002_v42, %v3705_v56 }
 0xfe7   :  { %3709 = vrot.lane.b32.xlu1 %v3707_v34, %s6107_s1 }
0x1059   :  { %v3710_v32 = vpop.permute.xlu1 %3709 }
0x105a   :  { %v3712_v45 = vadd.f32 %v3710_v32, %v3702_v18 }
0x105c   :  { %6003 = vtanh.f32 %v3712_v45 }
0x1066   :  { %v6004_v39 = vpop.eup %6003 }
0x1067   :  { %3715 = vrot.lane.b32.xlu0 %v6004_v39, %s6106_s15 }
0x10d9   :  { %v3716_v26 = vpop.permute.xlu0 %3715 }
0x10da   :  { %v3718_v27 = vmul.f32 %v6002_v42, %v3716_v26 }
0x10dc   :  { %v3724_v28 = vpack.c.bf16 %v3718_v27, %v3718_v27  ;;  %v4034_v35 = vrot.slane %v3718_v27, 2 }
0x10de   :  { %3726 = vrot.lane.b32.xlu1 %v3724_v28, %s6107_s1  ;;  %v7443_v6 = vsel %vm4048_vm12, %v4047_v15, %v4034_v35 }
0x1150   :  { %v3727_v9 = vpop.permute.xlu1 %3726 }
0x1151   :  { %5435 = vmatmul.mubr.msk.bf16.vlgmr.msra.gmra.mrb[48].mxu1 %vm3420_vm10, %v3727_v9 }
0x1152   :  { %5439 = vmatpush3.bf16.msra.mxu1 %v7352_v37  ;;  %5442 = vmatprep.mubr.msk.bf16.mxu1 %vm6104_vm8, %v6101_v2 }
0x1153   :  { %5440 = vmatprep.subr.bf16.mxu1 %v6101_v2 }
0x1156   :  { %5441 = vmatpush3.bf16.msra.mxu1 %v7359_v52 }
0x1157   :  { %5446 = vmatprep.subr.bf16.mxu1 %v6101_v2 }
0x1224   :  { %v3765_v60 = vpop.f32.mrb[48].mxu1 }
0x1225   :  { %v3771_v41 = vadd.f32 %v3765_v60, %v7385_v10  ;;  %v5436_v43 = vpop.f32.mrb[49].mxu1 }
0x1226   :  { %v3768_v36 = vpop.f32.mrb[50].mxu1 }
0x1227   :  { %6005 = vtanh.f32 %v3771_v41  ;;  %v5437_v44 = vpop.f32.mrb[51].mxu1  ;;  %v5178_v47 = vmul.f32 -1.442695, %v3771_v41 }
0x1229   :  { %6007 = vpow2.f32 %v5178_v47 }
0x1231   :  { %v6006_v46 = vpop.eup %6005 }
0x1232   :  { %3781 = vrot.lane.b32.xlu0 %v6006_v46, %s6106_s15 }
0x1233   :  { %v6008_v48 = vpop.eup %6007 }
0x1234   :  { %v3775_v49 = vadd.f32 1.0, %v6008_v48 }
0x1236   :  { %6009 = vrcp.f32 %v3775_v49 }
0x1240   :  { %v6010_v57 = vpop.eup %6009 }
0x1241   :  { %v3779_v30 = vmul.f32 %v6010_v57, %v3712_v45 }
0x12a4   :  { %v3782_v3 = vpop.permute.xlu0 %3781 }
0x12a5   :  { %v3784_v61 = vmul.f32 %v6010_v57, %v3782_v3 }
0x12a7   :  { %3786 = vrot.lane.b32.xlu1 %v3784_v61, %s6107_s1 }
0x1319   :  { %v3787_v17 = vpop.permute.xlu1 %3786 }
0x131a   :  { %v3789_v10 = vadd.f32 %v3787_v17, %v3779_v30 }
0x131c   :  { %6011 = vtanh.f32 %v3789_v10 }
0x1326   :  { %v6012_v29 = vpop.eup %6011 }
0x1327   :  { %3792 = vrot.lane.b32.xlu0 %v6012_v29, %s6106_s15 }
0x1399   :  { %v3793_v38 = vpop.permute.xlu0 %3792 }
0x139a   :  { %v7456_v62 = vmul.f32 %v6010_v57, %v3793_v38 }
0x139c   :  { %v3801_v63 = vpack.c.bf16 %v7456_v62, %v7456_v62 }
0x139e   :  { %3803 = vrot.lane.b32.xlu1 %v3801_v63, %s6107_s1  ;;  %v5951_v63 = vld [vmem:[%s7674_s16] sm:$0xff]  }
0x1410   :  { %v3804_v0 = vpop.permute.xlu1 %3803 }
0x1411   :  { %5443 = vmatmul.mubr.msk.bf16.vlgmr.msra.gmra.mrb[52].mxu1 %vm3420_vm10, %v3804_v0  ;;  %v5952_v0 = vld [vmem:[%s7674_s16 + $0x8] sm:$0xff]  }
0x1412   :  { %5447 = vmatpush3.bf16.msra.mxu1 %v7352_v37  ;;  %5450 = vmatprep.mubr.msk.bf16.mxu1 %vm6104_vm8, %v6101_v2 }
0x1413   :  { %5448 = vmatprep.subr.bf16.mxu1 %v6101_v2 }
0x1416   :  { %5449 = vmatpush3.bf16.msra.mxu1 %v7359_v52 }
0x1417   :  { %5454 = vmatprep.subr.bf16.mxu1 %v6101_v2 }
0x14e4   :  { %v3842_v1 = vpop.f32.mrb[52].mxu1 }
0x14e5   :  { %v3848_v4 = vadd.f32 %v3842_v1, %v7388_v51  ;;  %v5444_v7 = vpop.f32.mrb[53].mxu1 }
0x14e6   :  { %v3845_v8 = vpop.f32.mrb[54].mxu1 }
0x14e7   :  { %6013 = vtanh.f32 %v3848_v4  ;;  %v5445_v16 = vpop.f32.mrb[55].mxu1  ;;  %v5180_v5 = vmul.f32 -1.442695, %v3848_v4 }
0x14e9   :  { %6015 = vpow2.f32 %v5180_v5  ;;  %v7509_v5 = vld [vmem:[%s7675_s17] sm:$0xff]  }
0x14f1   :  { %v6014_v59 = vpop.eup %6013 }
0x14f2   :  { %3858 = vrot.lane.b32.xlu0 %v6014_v59, %s6106_s15 }
0x14f3   :  { %v6016_v12 = vpop.eup %6015 }
0x14f4   :  { %v3852_v13 = vadd.f32 1.0, %v6016_v12 }
0x14f6   :  { %6017 = vrcp.f32 %v3852_v13  ;;  %v7516_v13 = vld [vmem:[%s7675_s17 + $0x8] sm:$0xff]  }
0x1500   :  { %v6018_v50 = vpop.eup %6017 }
0x1501   :  { %v3856_v58 = vmul.f32 %v6018_v50, %v3789_v10 }
0x1564   :  { %v3859_v54 = vpop.permute.xlu0 %3858 }
0x1565   :  { %v3861_v14 = vmul.f32 %v6018_v50, %v3859_v54  ;;  %v5185_v54 = vld [vmem:[%s7676_s18] ss:$0 sm:$0xff] }
0x1567   :  { %3863 = vrot.lane.b32.xlu1 %v3861_v14, %s6107_s1 }
0x15d9   :  { %v3864_v15 = vpop.permute.xlu1 %3863 }
0x15da   :  { %v3866_v51 = vadd.f32 %v3864_v15, %v3856_v58 }
0x15dc   :  { %6019 = vtanh.f32 %v3866_v51 }
0x15e6   :  { %v6020_v31 = vpop.eup %6019 }
0x15e7   :  { %3869 = vrot.lane.b32.xlu0 %v6020_v31, %s6106_s15 }
0x1659   :  { %v3870_v55 = vpop.permute.xlu0 %3869 }
0x165a   :  { %v3872_v19 = vmul.f32 %v6018_v50, %v3870_v55 }
0x165c   :  { %v3878_v20 = vpack.c.bf16 %v3872_v19, %v3872_v19  ;;  %v4037_v27 = vrot.slane %v3872_v19, 6 }
0x165e   :  { %3880 = vrot.lane.b32.xlu1 %v3878_v20, %s6107_s1  ;;  %v4050_v41 = vsel %vm4045_vm11, %v7456_v62, %v4037_v27 }
0x16d0   :  { %v3881_v21 = vpop.permute.xlu1 %3880 }
0x16d1   :  { %5451 = vmatmul.mubr.msk.bf16.vlgmr.msra.gmra.mrb[56].mxu1 %vm3420_vm10, %v3881_v21 }
0x16d2   :  { %5455 = vmatpush3.bf16.msra.mxu1 %v7352_v37  ;;  %5458 = vmatprep.mubr.msk.bf16.mxu1 %vm6104_vm8, %v6101_v2 }
0x16d3   :  { %5456 = vmatprep.subr.bf16.mxu1 %v6101_v2 }
0x16d6   :  { %5457 = vmatpush3.bf16.msra.mxu1 %v7359_v52 }
0x16d7   :  { %5462 = vmatprep.subr.bf16.mxu1 %v6101_v2 }
0x17a4   :  { %v3919_v22 = vpop.f32.mrb[56].mxu1 }
0x17a5   :  { %v3925_v23 = vadd.f32 %v3919_v22, %v7391_v11  ;;  %v5452_v24 = vpop.f32.mrb[57].mxu1 }
0x17a6   :  { %v3922_v25 = vpop.f32.mrb[58].mxu1 }
0x17a7   :  { %6021 = vtanh.f32 %v3925_v23  ;;  %v5453_v33 = vpop.f32.mrb[59].mxu1  ;;  %v5182_v37 = vmul.f32 -1.442695, %v3925_v23 }
0x17a9   :  { %6023 = vpow2.f32 %v5182_v37 }
0x17b1   :  { %v6022_v42 = vpop.eup %6021 }
0x17b2   :  { %3935 = vrot.lane.b32.xlu0 %v6022_v42, %s6106_s15 }
0x17b3   :  { %v6024_v56 = vpop.eup %6023 }
0x17b4   :  { %v3929_v34 = vadd.f32 1.0, %v6024_v56 }
0x17b6   :  { %6025 = vrcp.f32 %v3929_v34 }
0x17c0   :  { %v6026_v18 = vpop.eup %6025 }
0x17c1   :  { %v3933_v45 = vmul.f32 %v6026_v18, %v3866_v51 }
0x1824   :  { %v3936_v32 = vpop.permute.xlu0 %3935 }
0x1825   :  { %v3938_v52 = vmul.f32 %v6026_v18, %v3936_v32 }
0x1827   :  { %3940 = vrot.lane.b32.xlu1 %v3938_v52, %s6107_s1 }
0x1899   :  { %v3941_v39 = vpop.permute.xlu1 %3940 }
0x189a   :  { %v3943_v11 = vadd.f32 %v3941_v39, %v3933_v45 }
0x189c   :  { %6027 = vtanh.f32 %v3943_v11 }
0x18a6   :  { %v6028_v26 = vpop.eup %6027 }
0x18a7   :  { %3946 = vrot.lane.b32.xlu0 %v6028_v26, %s6106_s15 }
0x1919   :  { %v3947_v28 = vpop.permute.xlu0 %3946 }
0x191a   :  { %v3949_v35 = vmul.f32 %v6026_v18, %v3947_v28 }
0x191c   :  { %v3955_v9 = vpack.c.bf16 %v3949_v35, %v3949_v35  ;;  %v4040_v60 = vrot.slane %v3949_v35, 4 }
0x191e   :  { %v4051_v43 = vsel %vm108_vm0, %v4050_v41, %v4040_v60  ;;  %3957 = vrot.lane.b32.xlu1 %v3955_v9, %s6107_s1 }
0x1990   :  { %v3958_v36 = vpop.permute.xlu1 %3957 }
0x1991   :  { %5459 = vmatmul.mubr.msk.bf16.vlgmr.msra.gmra.mrb[60].mxu1 %vm3420_vm10, %v3958_v36 }
0x1992   :  { %5466 = vmatprep.mubr.msk.bf16.mxu1 %vm6104_vm8, %v6101_v2  ;;  %5463 = vmatpush3.bf16.msra.mxu1 %v5951_v63 }
0x1993   :  { %5464 = vmatprep.subr.bf16.mxu1 %v6101_v2 }
0x1996   :  { %5465 = vmatpush3.bf16.msra.mxu1 %v5952_v0 }
0x1997   :  { %5470 = vmatprep.subr.bf16.mxu1 %v6101_v2 }
0x1a64   :  { %v3996_v44 = vpop.f32.mrb[60].mxu1 }
0x1a65   :  { %v4002_v46 = vadd.f32 %v3996_v44, %v7394_v53  ;;  %v5460_v47 = vpop.f32.mrb[61].mxu1 }
0x1a66   :  { %v3999_v48 = vpop.f32.mrb[62].mxu1 }
0x1a67   :  { %6029 = vtanh.f32 %v4002_v46  ;;  %v5461_v49 = vpop.f32.mrb[63].mxu1  ;;  %v5184_v3 = vmul.f32 -1.442695, %v4002_v46 }
0x1a69   :  { %6031 = vpow2.f32 %v5184_v3 }
0x1a71   :  { %v6030_v57 = vpop.eup %6029 }
0x1a72   :  { %4012 = vrot.lane.b32.xlu0 %v6030_v57, %s6106_s15 }
0x1a73   :  { %v6032_v61 = vpop.eup %6031 }
0x1a74   :  { %v4006_v30 = vadd.f32 1.0, %v6032_v61 }
0x1a76   :  { %6033 = vrcp.f32 %v4006_v30 }
0x1a80   :  { %v6034_v17 = vpop.eup %6033 }
0x1a81   :  { %v4010_v38 = vmul.f32 %v6034_v17, %v3943_v11 }
0x1ae4   :  { %v4013_v10 = vpop.permute.xlu0 %4012 }
0x1ae5   :  { %v4015_v29 = vmul.f32 %v6034_v17, %v4013_v10 }
0x1ae7   :  { %4017 = vrot.lane.b32.xlu1 %v4015_v29, %s6107_s1 }
0x1b59   :  { %v4018_v62 = vpop.permute.xlu1 %4017 }
0x1b5a   :  { %v4020_v53 = vadd.f32 %v4018_v62, %v4010_v38 }
0x1b5c   :  { %6035 = vtanh.f32 %v4020_v53 }
0x1b66   :  { %v6036_v1 = vpop.eup %6035 }
0x1b67   :  { %4023 = vrot.lane.b32.xlu0 %v6036_v1, %s6106_s15 }
0x1bd9   :  { %v4024_v4 = vpop.permute.xlu0 %4023 }
0x1bda   :  { %v4026_v7 = vmul.f32 %v6034_v17, %v4024_v4 }
0x1bdc   :  { %v4043_v8 = vrot.slane %v4026_v7, 2 }
0x1bde   :  { %v4052_v16 = vsel %vm4048_vm12, %v4051_v43, %v4043_v8 }
0x1bdf   :  { %v4053_v59 = vpack.c.bf16 %v4052_v16, %v7443_v6 }
0x1be1   :  { %4061 = vrot.lane.b32.xlu1 %v4053_v59, %s6107_s1 }
0x1c53   :  { %v4062_v12 = vpop.permute.xlu1 %4061 }
0x1c54   :  { %5467 = vmatmul.mubr.msk.bf16.vlgmr.msra.gmra.mrb[64].mxu1 %vm3420_vm10, %v4062_v12 }
0x1c55   :  { %5471 = vmatpush3.bf16.msra.mxu1 %v7509_v5  ;;  %5474 = vmatprep.mubr.msk.bf16.mxu1 %vm6104_vm8, %v6101_v2 }
0x1c56   :  { %5472 = vmatprep.subr.bf16.mxu1 %v6101_v2 }
0x1c59   :  { %5473 = vmatpush3.bf16.msra.mxu1 %v7516_v13 }
0x1c5a   :  { %5478 = vmatprep.subr.bf16.mxu1 %v6101_v2 }
0x1c5c   :  { %5475 = vmatmul.mubr.bf16.vlgmr.msra.gmra.mrb[68].mxu1 %v6105_v40 }
0x1c5d   :  { %5479 = vmatpush3.bf16.msra.mxu1 %v7509_v5  ;;  %5482 = vmatprep.mubr.msk.bf16.mxu1 %vm6104_vm8, %v6101_v2 }
0x1c5e   :  { %5480 = vmatprep.subr.bf16.mxu1 %v6101_v2 }
0x1c61   :  { %5481 = vmatpush3.bf16.msra.mxu1 %v7516_v13 }
0x1c62   :  { %5486 = vmatprep.subr.bf16.mxu1 %v6101_v2 }
0x1d27   :  { %v4112_v6 = vpop.f32.mrb[64].mxu1 }
0x1d28   :  { %v5468_v50 = vpop.f32.mrb[65].mxu1  ;;  %v7535_v15 = vadd.f32 %v5185_v54, %v4112_v6 }
0x1d29   :  { %v4115_v14 = vpop.f32.mrb[66].mxu1 }
0x1d2a   :  { %v7533_v58 = vadd.f32 %v5185_v54, %v4115_v14  ;;  %v5469_v40 = vpop.f32.mrb[67].mxu1 }
0x1d2f   :  { %v4165_v51 = vpop.f32.mrb[68].mxu1 }
0x1d30   :  { %v4171_v31 = vadd.f32 %v4165_v51, %v7535_v15  ;;  %v5476_v55 = vpop.f32.mrb[69].mxu1 }
0x1d31   :  { %v4168_v19 = vpop.f32.mrb[70].mxu1 }
0x1d32   :  { %6037 = vtanh.f32 %v4171_v31  ;;  %v5477_v20 = vpop.f32.mrb[71].mxu1  ;;  %v5191_v22 = vmul.f32 -1.442695, %v4171_v31 }
0x1d34   :  { %6039 = vpow2.f32 %v5191_v22 }
0x1d3c   :  { %v6038_v21 = vpop.eup %6037 }
0x1d3d   :  { %4181 = vrot.lane.b32.xlu0 %v6038_v21, %s6106_s15 }
0x1d3e   :  { %v6040_v23 = vpop.eup %6039 }
0x1d3f   :  { %v4175_v24 = vadd.f32 1.0, %v6040_v23 }
0x1d41   :  { %6041 = vrcp.f32 %v4175_v24 }
0x1d4b   :  { %v6042_v25 = vpop.eup %6041 }
0x1d4c   :  { %v4179_v37 = vmul.f32 0.0, %v6042_v25 }
0x1daf   :  { %v4182_v33 = vpop.permute.xlu0 %4181 }
0x1db0   :  { %v4184_v42 = vmul.f32 %v6042_v25, %v4182_v33 }
0x1db2   :  { %4186 = vrot.lane.b32.xlu1 %v4184_v42, %s6107_s1 }
0x1e24   :  { %v4187_v56 = vpop.permute.xlu1 %4186 }
0x1e25   :  { %v4189_v34 = vadd.f32 %v4187_v56, %v4179_v37 }
0x1e27   :  { %6043 = vtanh.f32 %v4189_v34  ;;  %v4255_v48 = vrot.slane %v4189_v34, 6 }
0x1e31   :  { %v6044_v18 = vpop.eup %6043 }
0x1e32   :  { %4192 = vrot.lane.b32.xlu0 %v6044_v18, %s6106_s15 }
0x1ea4   :  { %v4193_v32 = vpop.permute.xlu0 %4192 }
0x1ea5   :  { %v7541_v52 = vmul.f32 %v6042_v25, %v4193_v32 }
0x1ea7   :  { %v4196_v45 = vpack.c.bf16 %v7541_v52, %v7541_v52 }
0x1ea9   :  { %4198 = vrot.lane.b32.xlu1 %v4196_v45, %s6107_s1 }
0x1f1b   :  { %v4199_v39 = vpop.permute.xlu1 %4198 }
0x1f1c   :  { %5483 = vmatmul.mubr.msk.bf16.vlgmr.msra.gmra.mrb[72].mxu1 %vm3420_vm10, %v4199_v39 }
0x1f1d   :  { %5487 = vmatpush3.bf16.msra.mxu1 %v7509_v5  ;;  %5490 = vmatprep.mubr.msk.bf16.mxu1 %vm6104_vm8, %v6101_v2 }
0x1f1e   :  { %5488 = vmatprep.subr.bf16.mxu1 %v6101_v2 }
0x1f21   :  { %5489 = vmatpush3.bf16.msra.mxu1 %v7516_v13 }
0x1f22   :  { %5494 = vmatprep.subr.bf16.mxu1 %v6101_v2 }
0x1fef   :  { %v4237_v11 = vpop.f32.mrb[72].mxu1 }
0x1ff0   :  { %v4244_v26 = vrot.slane %v4237_v11, 6  ;;  %v5484_v27 = vpop.f32.mrb[73].mxu1 }
0x1ff1   :  { %v4240_v28 = vpop.f32.mrb[74].mxu1 }
0x1ff2   :  { %v4246_v35 = vadd.f32 %v4244_v26, %v7535_v15  ;;  %v5485_v9 = vpop.f32.mrb[75].mxu1 }
0x1ff4   :  { %6045 = vtanh.f32 %v4246_v35  ;;  %v5193_v41 = vmul.f32 -1.442695, %v4246_v35 }
0x1ff6   :  { %6047 = vpow2.f32 %v5193_v41 }
0x1ffe   :  { %v6046_v60 = vpop.eup %6045 }
0x1fff   :  { %4259 = vrot.lane.b32.xlu0 %v6046_v60, %s6106_s15 }
0x2000   :  { %v6048_v43 = vpop.eup %6047 }
0x2001   :  { %v4250_v36 = vadd.f32 1.0, %v6048_v43 }
0x2003   :  { %6049 = vrcp.f32 %v4250_v36 }
0x200d   :  { %v6050_v44 = vpop.eup %6049 }
0x200e   :  { %v4257_v49 = vmul.f32 %v6050_v44, %v4255_v48 }
0x2071   :  { %v4260_v46 = vpop.permute.xlu0 %4259 }
0x2072   :  { %v4262_v47 = vmul.f32 %v6050_v44, %v4260_v46 }
0x2074   :  { %4264 = vrot.lane.b32.xlu1 %v4262_v47, %s6107_s1 }
0x20e6   :  { %v4265_v57 = vpop.permute.xlu1 %4264 }
0x20e7   :  { %v4267_v3 = vadd.f32 %v4265_v57, %v4257_v49 }
0x20e9   :  { %6051 = vtanh.f32 %v4267_v3  ;;  %v4334_v54 = vrot.slane %v4267_v3, 6 }
0x20f3   :  { %v6052_v61 = vpop.eup %6051 }
0x20f4   :  { %4270 = vrot.lane.b32.xlu0 %v6052_v61, %s6106_s15 }
0x2166   :  { %v4271_v30 = vpop.permute.xlu0 %4270 }
0x2167   :  { %v4273_v17 = vmul.f32 %v6050_v44, %v4271_v30 }
0x2169   :  { %v4274_v10 = vpack.c.bf16 %v4273_v17, %v4273_v17  ;;  %v4744_v20 = vsel %vm4045_vm11, %v7541_v52, %v4273_v17 }
0x216b   :  { %v4276_v29 = vrot.slane %v4274_v10, 1 }
0x216d   :  { %4277 = vrot.lane.b32.xlu1 %v4276_v29, %s6107_s1 }
0x21df   :  { %v4278_v38 = vpop.permute.xlu1 %4277 }
0x21e0   :  { %5491 = vmatmul.mubr.msk.bf16.vlgmr.msra.gmra.mrb[76].mxu1 %vm3420_vm10, %v4278_v38 }
0x21e1   :  { %5495 = vmatpush3.bf16.msra.mxu1 %v7509_v5  ;;  %5498 = vmatprep.mubr.msk.bf16.mxu1 %vm6104_vm8, %v6101_v2 }
0x21e2   :  { %5496 = vmatprep.subr.bf16.mxu1 %v6101_v2 }
0x21e5   :  { %5497 = vmatpush3.bf16.msra.mxu1 %v7516_v13 }
0x21e6   :  { %5502 = vmatprep.subr.bf16.mxu1 %v6101_v2 }
0x22b3   :  { %v4316_v62 = vpop.f32.mrb[76].mxu1 }
0x22b4   :  { %v4323_v53 = vrot.slane %v4316_v62, 4  ;;  %v5492_v63 = vpop.f32.mrb[77].mxu1 }
0x22b5   :  { %v4319_v0 = vpop.f32.mrb[78].mxu1 }
0x22b6   :  { %v4325_v1 = vadd.f32 %v4323_v53, %v7535_v15  ;;  %v5493_v4 = vpop.f32.mrb[79].mxu1 }
0x22b8   :  { %6053 = vtanh.f32 %v4325_v1  ;;  %v5195_v8 = vmul.f32 -1.442695, %v4325_v1 }
0x22ba   :  { %6055 = vpow2.f32 %v5195_v8 }
0x22c2   :  { %v6054_v7 = vpop.eup %6053 }
0x22c3   :  { %4338 = vrot.lane.b32.xlu0 %v6054_v7, %s6106_s15 }
0x22c4   :  { %v6056_v16 = vpop.eup %6055 }
0x22c5   :  { %v4329_v59 = vadd.f32 1.0, %v6056_v16 }
0x22c7   :  { %6057 = vrcp.f32 %v4329_v59 }
0x22d1   :  { %v6058_v12 = vpop.eup %6057 }
0x22d2   :  { %v4336_v14 = vmul.f32 %v6058_v12, %v4334_v54 }
0x2335   :  { %v4339_v6 = vpop.permute.xlu0 %4338 }
0x2336   :  { %v4341_v50 = vmul.f32 %v6058_v12, %v4339_v6 }
0x2338   :  { %4343 = vrot.lane.b32.xlu1 %v4341_v50, %s6107_s1 }
0x23aa   :  { %v4344_v40 = vpop.permute.xlu1 %4343 }
0x23ab   :  { %v4346_v51 = vadd.f32 %v4344_v40, %v4336_v14 }
0x23ad   :  { %6059 = vtanh.f32 %v4346_v51  ;;  %v4413_v27 = vrot.slane %v4346_v51, 6 }
0x23b7   :  { %v6060_v31 = vpop.eup %6059 }
0x23b8   :  { %4349 = vrot.lane.b32.xlu0 %v6060_v31, %s6106_s15 }
0x242a   :  { %v4350_v55 = vpop.permute.xlu0 %4349 }
0x242b   :  { %v4352_v19 = vmul.f32 %v6058_v12, %v4350_v55 }
0x242d   :  { %v4353_v21 = vpack.c.bf16 %v4352_v19, %v4352_v19  ;;  %v4745_v22 = vsel %vm108_vm0, %v4744_v20, %v4352_v19 }
0x242f   :  { %v4355_v23 = vrot.slane %v4353_v21, 2 }
0x2431   :  { %4356 = vrot.lane.b32.xlu1 %v4355_v23, %s6107_s1 }
0x24a3   :  { %v4357_v24 = vpop.permute.xlu1 %4356 }
0x24a4   :  { %5499 = vmatmul.mubr.msk.bf16.vlgmr.msra.gmra.mrb[80].mxu1 %vm3420_vm10, %v4357_v24 }
0x24a5   :  { %5503 = vmatpush3.bf16.msra.mxu1 %v7509_v5  ;;  %5506 = vmatprep.mubr.msk.bf16.mxu1 %vm6104_vm8, %v6101_v2 }
0x24a6   :  { %5504 = vmatprep.subr.bf16.mxu1 %v6101_v2 }
0x24a9   :  { %5505 = vmatpush3.bf16.msra.mxu1 %v7516_v13 }
0x24aa   :  { %5510 = vmatprep.subr.bf16.mxu1 %v6101_v2 }
0x2577   :  { %v4395_v25 = vpop.f32.mrb[80].mxu1 }
0x2578   :  { %v4402_v33 = vrot.slane %v4395_v25, 2  ;;  %v5500_v42 = vpop.f32.mrb[81].mxu1 }
0x2579   :  { %v4398_v37 = vpop.f32.mrb[82].mxu1 }
0x257a   :  { %v4404_v56 = vadd.f32 %v4402_v33, %v7535_v15  ;;  %v5501_v34 = vpop.f32.mrb[83].mxu1 }
0x257c   :  { %6061 = vtanh.f32 %v4404_v56  ;;  %v5197_v32 = vmul.f32 -1.442695, %v4404_v56 }
0x257e   :  { %6063 = vpow2.f32 %v5197_v32 }
0x2586   :  { %v6062_v18 = vpop.eup %6061 }
0x2587   :  { %4417 = vrot.lane.b32.xlu0 %v6062_v18, %s6106_s15 }
0x2588   :  { %v6064_v52 = vpop.eup %6063 }
0x2589   :  { %v4408_v45 = vadd.f32 1.0, %v6064_v52 }
0x258b   :  { %6065 = vrcp.f32 %v4408_v45 }
0x2595   :  { %v6066_v39 = vpop.eup %6065 }
0x2596   :  { %v4415_v28 = vmul.f32 %v6066_v39, %v4413_v27 }
0x25f9   :  { %v4418_v11 = vpop.permute.xlu0 %4417 }
0x25fa   :  { %v4420_v26 = vmul.f32 %v6066_v39, %v4418_v11 }
0x25fc   :  { %4422 = vrot.lane.b32.xlu1 %v4420_v26, %s6107_s1 }
0x266e   :  { %v4423_v35 = vpop.permute.xlu1 %4422 }
0x266f   :  { %v4425_v9 = vadd.f32 %v4423_v35, %v4415_v28 }
0x2671   :  { %6067 = vtanh.f32 %v4425_v9  ;;  %v4489_v53 = vrot.slane %v4425_v9, 6 }
0x267b   :  { %v6068_v15 = vpop.eup %6067 }
0x267c   :  { %4428 = vrot.lane.b32.xlu0 %v6068_v15, %s6106_s15 }
0x26ee   :  { %v4429_v60 = vpop.permute.xlu0 %4428 }
0x26ef   :  { %v4431_v41 = vmul.f32 %v6066_v39, %v4429_v60 }
0x26f1   :  { %v4432_v43 = vpack.c.bf16 %v4431_v41, %v4431_v41  ;;  %v7585_v36 = vsel %vm4048_vm12, %v4745_v22, %v4431_v41 }
0x26f3   :  { %v4434_v44 = vrot.slane %v4432_v43, 3 }
0x26f5   :  { %4435 = vrot.lane.b32.xlu1 %v4434_v44, %s6107_s1 }
0x2767   :  { %v4436_v46 = vpop.permute.xlu1 %4435 }
0x2768   :  { %5507 = vmatmul.mubr.msk.bf16.vlgmr.msra.gmra.mrb[84].mxu1 %vm3420_vm10, %v4436_v46 }
0x2769   :  { %5511 = vmatpush3.bf16.msra.mxu1 %v7509_v5  ;;  %5514 = vmatprep.mubr.msk.bf16.mxu1 %vm6104_vm8, %v6101_v2 }
0x276a   :  { %5512 = vmatprep.subr.bf16.mxu1 %v6101_v2 }
0x276d   :  { %5513 = vmatpush3.bf16.msra.mxu1 %v7516_v13 }
0x276e   :  { %5518 = vmatprep.subr.bf16.mxu1 %v6101_v2 }
0x283b   :  { %v4474_v47 = vpop.f32.mrb[84].mxu1 }
0x283c   :  { %v4480_v48 = vadd.f32 %v4474_v47, %v7533_v58  ;;  %v5508_v49 = vpop.f32.mrb[85].mxu1 }
0x283d   :  { %v4477_v57 = vpop.f32.mrb[86].mxu1 }
0x283e   :  { %6069 = vtanh.f32 %v4480_v48  ;;  %v5509_v3 = vpop.f32.mrb[87].mxu1  ;;  %v5199_v30 = vmul.f32 -1.442695, %v4480_v48 }
0x2840   :  { %6071 = vpow2.f32 %v5199_v30 }
0x2848   :  { %v6070_v61 = vpop.eup %6069 }
0x2849   :  { %4493 = vrot.lane.b32.xlu0 %v6070_v61, %s6106_s15 }
0x284a   :  { %v6072_v17 = vpop.eup %6071 }
0x284b   :  { %v4484_v10 = vadd.f32 1.0, %v6072_v17 }
0x284d   :  { %6073 = vrcp.f32 %v4484_v10 }
0x2857   :  { %v6074_v29 = vpop.eup %6073 }
0x2858   :  { %v4491_v63 = vmul.f32 %v6074_v29, %v4489_v53 }
0x28bb   :  { %v4494_v38 = vpop.permute.xlu0 %4493 }
0x28bc   :  { %v4496_v62 = vmul.f32 %v6074_v29, %v4494_v38 }
0x28be   :  { %4498 = vrot.lane.b32.xlu1 %v4496_v62, %s6107_s1 }
0x2930   :  { %v4499_v0 = vpop.permute.xlu1 %4498 }
0x2931   :  { %v4501_v1 = vadd.f32 %v4499_v0, %v4491_v63 }
0x2933   :  { %6075 = vtanh.f32 %v4501_v1  ;;  %v4567_v23 = vrot.slane %v4501_v1, 6 }
0x293d   :  { %v6076_v4 = vpop.eup %6075 }
0x293e   :  { %4504 = vrot.lane.b32.xlu0 %v6076_v4, %s6106_s15 }
0x29b0   :  { %v4505_v7 = vpop.permute.xlu0 %4504 }
0x29b1   :  { %v7599_v8 = vmul.f32 %v6074_v29, %v4505_v7 }
0x29b3   :  { %v4508_v16 = vpack.c.bf16 %v7599_v8, %v7599_v8 }
0x29b5   :  { %4510 = vrot.lane.b32.xlu1 %v4508_v16, %s6107_s1 }
0x2a27   :  { %v4511_v59 = vpop.permute.xlu1 %4510 }
0x2a28   :  { %5515 = vmatmul.mubr.msk.bf16.vlgmr.msra.gmra.mrb[88].mxu1 %vm3420_vm10, %v4511_v59 }
0x2a29   :  { %5519 = vmatpush3.bf16.msra.mxu1 %v7509_v5  ;;  %5522 = vmatprep.mubr.msk.bf16.mxu1 %vm6104_vm8, %v6101_v2 }
0x2a2a   :  { %5520 = vmatprep.subr.bf16.mxu1 %v6101_v2 }
0x2a2d   :  { %5521 = vmatpush3.bf16.msra.mxu1 %v7516_v13 }
0x2a2e   :  { %5526 = vmatprep.subr.bf16.mxu1 %v6101_v2 }
0x2afb   :  { %v4549_v12 = vpop.f32.mrb[88].mxu1 }
0x2afc   :  { %v4556_v6 = vrot.slane %v4549_v12, 6  ;;  %v5516_v50 = vpop.f32.mrb[89].mxu1 }
0x2afd   :  { %v4552_v54 = vpop.f32.mrb[90].mxu1 }
0x2afe   :  { %v4558_v14 = vadd.f32 %v4556_v6, %v7533_v58  ;;  %v5517_v40 = vpop.f32.mrb[91].mxu1 }
0x2b00   :  { %6077 = vtanh.f32 %v4558_v14  ;;  %v5201_v31 = vmul.f32 -1.442695, %v4558_v14  ;;  %v5956_v14 = vld [vmem:[%s7677_s19 + $0x8] sm:$0xff]  }
0x2b02   :  { %6079 = vpow2.f32 %v5201_v31 }
0x2b0a   :  { %v6078_v51 = vpop.eup %6077 }
0x2b0b   :  { %4571 = vrot.lane.b32.xlu0 %v6078_v51, %s6106_s15 }
0x2b0c   :  { %v6080_v55 = vpop.eup %6079 }
0x2b0d   :  { %v4562_v19 = vadd.f32 1.0, %v6080_v55 }
0x2b0f   :  { %6081 = vrcp.f32 %v4562_v19 }
0x2b19   :  { %v6082_v20 = vpop.eup %6081 }
0x2b1a   :  { %v4569_v24 = vmul.f32 %v6082_v20, %v4567_v23 }
0x2b7d   :  { %v4572_v21 = vpop.permute.xlu0 %4571 }
0x2b7e   :  { %v4574_v22 = vmul.f32 %v6082_v20, %v4572_v21  ;;  %v5206_v21 = vld [vmem:[%s7678_s20] ss:$0 sm:$0xff] }
0x2b80   :  { %4576 = vrot.lane.b32.xlu1 %v4574_v22, %s6107_s1 }
0x2bf2   :  { %v4577_v25 = vpop.permute.xlu1 %4576 }
0x2bf3   :  { %v4579_v33 = vadd.f32 %v4577_v25, %v4569_v24 }
0x2bf5   :  { %6083 = vtanh.f32 %v4579_v33  ;;  %v4646_v41 = vrot.slane %v4579_v33, 6 }
0x2bff   :  { %v6084_v42 = vpop.eup %6083 }
0x2c00   :  { %4582 = vrot.lane.b32.xlu0 %v6084_v42, %s6106_s15 }
0x2c72   :  { %v4583_v37 = vpop.permute.xlu0 %4582 }
0x2c73   :  { %v4585_v56 = vmul.f32 %v6082_v20, %v4583_v37 }
0x2c75   :  { %v4586_v34 = vpack.c.bf16 %v4585_v56, %v4585_v56  ;;  %v4747_v57 = vsel %vm4045_vm11, %v7599_v8, %v4585_v56 }
0x2c77   :  { %v4588_v18 = vrot.slane %v4586_v34, 1 }
0x2c79   :  { %4589 = vrot.lane.b32.xlu1 %v4588_v18, %s6107_s1 }
0x2ceb   :  { %v4590_v32 = vpop.permute.xlu1 %4589 }
0x2cec   :  { %5523 = vmatmul.mubr.msk.bf16.vlgmr.msra.gmra.mrb[92].mxu1 %vm3420_vm10, %v4590_v32 }
0x2ced   :  { %5527 = vmatpush3.bf16.msra.mxu1 %v7509_v5  ;;  %5530 = vmatprep.mubr.msk.bf16.mxu1 %vm6104_vm8, %v6101_v2 }
0x2cee   :  { %5528 = vmatprep.subr.bf16.mxu1 %v6101_v2 }
0x2cf1   :  { %5529 = vmatpush3.bf16.msra.mxu1 %v7516_v13 }
0x2cf2   :  { %5534 = vmatprep.subr.bf16.mxu1 %v6101_v2 }
0x2dbf   :  { %v4628_v52 = vpop.f32.mrb[92].mxu1 }
0x2dc0   :  { %v4635_v45 = vrot.slane %v4628_v52, 4  ;;  %v5524_v39 = vpop.f32.mrb[93].mxu1 }
0x2dc1   :  { %v4631_v11 = vpop.f32.mrb[94].mxu1 }
0x2dc2   :  { %v4637_v26 = vadd.f32 %v4635_v45, %v7533_v58  ;;  %v5525_v27 = vpop.f32.mrb[95].mxu1 }
0x2dc4   :  { %6085 = vtanh.f32 %v4637_v26  ;;  %v5203_v5 = vmul.f32 -1.442695, %v4637_v26 }
0x2dc6   :  { %6087 = vpow2.f32 %v5203_v5 }
0x2dce   :  { %v6086_v28 = vpop.eup %6085 }
0x2dcf   :  { %4650 = vrot.lane.b32.xlu0 %v6086_v28, %s6106_s15 }
0x2dd0   :  { %v6088_v35 = vpop.eup %6087 }
0x2dd1   :  { %v4641_v9 = vadd.f32 1.0, %v6088_v35 }
0x2dd3   :  { %6089 = vrcp.f32 %v4641_v9 }
0x2ddd   :  { %v6090_v15 = vpop.eup %6089 }
0x2dde   :  { %v4648_v43 = vmul.f32 %v6090_v15, %v4646_v41 }
0x2e41   :  { %v4651_v13 = vpop.permute.xlu0 %4650 }
0x2e42   :  { %v4653_v60 = vmul.f32 %v6090_v15, %v4651_v13 }
0x2e44   :  { %4655 = vrot.lane.b32.xlu1 %v4653_v60, %s6107_s1 }
0x2eb6   :  { %v4656_v44 = vpop.permute.xlu1 %4655 }
0x2eb7   :  { %v4658_v46 = vadd.f32 %v4656_v44, %v4648_v43 }
0x2eb9   :  { %6091 = vtanh.f32 %v4658_v46  ;;  %v4725_v12 = vrot.slane %v4658_v46, 6 }
0x2ec3   :  { %v6092_v47 = vpop.eup %6091 }
0x2ec4   :  { %4661 = vrot.lane.b32.xlu0 %v6092_v47, %s6106_s15 }
0x2f36   :  { %v4662_v48 = vpop.permute.xlu0 %4661 }
0x2f37   :  { %v4664_v49 = vmul.f32 %v6090_v15, %v4662_v48 }
0x2f39   :  { %v4665_v3 = vpack.c.bf16 %v4664_v49, %v4664_v49  ;;  %v4748_v61 = vsel %vm108_vm0, %v4747_v57, %v4664_v49 }
0x2f3b   :  { %v4667_v30 = vrot.slane %v4665_v3, 2 }
0x2f3d   :  { %4668 = vrot.lane.b32.xlu1 %v4667_v30, %s6107_s1 }
0x2faf   :  { %v4669_v17 = vpop.permute.xlu1 %4668 }
0x2fb0   :  { %5531 = vmatmul.mubr.msk.bf16.vlgmr.msra.gmra.mrb[96].mxu1 %vm3420_vm10, %v4669_v17 }
0x2fb1   :  { %5538 = vmatprep.mubr.msk.bf16.mxu1 %vm6104_vm8, %v6101_v2 }
0x3083   :  { %v4707_v10 = vpop.f32.mrb[96].mxu1 }
0x3084   :  { %v4714_v29 = vrot.slane %v4707_v10, 2  ;;  %v5532_v38 = vpop.f32.mrb[97].mxu1 }
0x3085   :  { %v4710_v62 = vpop.f32.mrb[98].mxu1 }
0x3086   :  { %v4716_v53 = vadd.f32 %v4714_v29, %v7533_v58  ;;  %v5533_v63 = vpop.f32.mrb[99].mxu1  ;;  %v5955_v58 = vld [vmem:[%s7677_s19] sm:$0xff]  }
0x3087   :  { %5535 = vmatpush3.bf16.msra.mxu1 %v5955_v58 }
0x3088   :  { %6093 = vtanh.f32 %v4716_v53  ;;  %v5205_v1 = vmul.f32 -1.442695, %v4716_v53  ;;  %5536 = vmatprep.subr.bf16.mxu1 %v6101_v2 }
0x308a   :  { %6095 = vpow2.f32 %v5205_v1 }
0x308b   :  { %5537 = vmatpush3.bf16.msra.mxu1 %v5956_v14 }
0x3092   :  { %v6094_v0 = vpop.eup %6093 }
0x3093   :  { %4729 = vrot.lane.b32.xlu0 %v6094_v0, %s6106_s15 }
0x3094   :  { %v6096_v4 = vpop.eup %6095 }
0x3095   :  { %v4720_v7 = vadd.f32 1.0, %v6096_v4 }
0x3097   :  { %6097 = vrcp.f32 %v4720_v7 }
0x30a1   :  { %v6098_v8 = vpop.eup %6097 }
0x30a2   :  { %v4727_v6 = vmul.f32 %v6098_v8, %v4725_v12 }
0x3105   :  { %v4730_v16 = vpop.permute.xlu0 %4729 }
0x3106   :  { %v4732_v59 = vmul.f32 %v6098_v8, %v4730_v16 }
0x3108   :  { %4734 = vrot.lane.b32.xlu1 %v4732_v59, %s6107_s1 }
0x317a   :  { %v4735_v50 = vpop.permute.xlu1 %4734 }
0x317b   :  { %v4737_v54 = vadd.f32 %v4735_v50, %v4727_v6 }
0x317d   :  { %6099 = vtanh.f32 %v4737_v54 }
0x3187   :  { %v6100_v40 = vpop.eup %6099 }
0x3188   :  { %4740 = vrot.lane.b32.xlu0 %v6100_v40, %s6106_s15 }
0x31fa   :  { %v4741_v51 = vpop.permute.xlu0 %4740 }
0x31fb   :  { %v4743_v31 = vmul.f32 %v6098_v8, %v4741_v51 }
0x31fd   :  { %v4749_v55 = vsel %vm4048_vm12, %v4748_v61, %v4743_v31 }
0x31fe   :  { %v4750_v19 = vpack.c.bf16 %v4749_v55, %v7585_v36 }
0x3200   :  { %4758 = vrot.lane.b32.xlu1 %v4750_v19, %s6107_s1 }
0x3272   :  { %v4759_v20 = vpop.permute.xlu1 %4758 }
0x3273   :  { %5539 = vmatmul.mubr.msk.bf16.vlgmr.msra.gmra.mrb[100].mxu1 %vm3420_vm10, %v4759_v20 }
0x3346   :  { %v4809_v2 = vpop.f32.mrb[100].mxu1 }
0x3347   :  { %v4810_v22 = vadd.f32 %v5206_v21, %v4809_v2  ;;  %v5540_v23 = vpop.f32.mrb[101].mxu1 }
0x3348   :  { %v4812_v24 = vpop.f32.mrb[102].mxu1 }
0x3349   :  { %4817 = vst.msk [vmem:[%s7679_s21] sm:$0xff] %vm4816_vm13, %v4810_v22  ;;  %v4813_v25 = vadd.f32 %v5206_v21, %v4812_v24  ;;  %v5541_v36 = vpop.f32.mrb[103].mxu1 }
0x334b   :  { %4818 = vst.msk [vmem:[%s7679_s21 + $0x8] sm:$0xff] %vm4816_vm13, %v4813_v25 }

</bundles_post_ra>
